<compile_context>
chip_gen: v6e
topology: v6e:2x2x1
jax: 0.10.0
libtpu: 0.0.40
codegen_flags: <defaults>
</compile_context>

<pallas_src>
import jax
import jax.numpy as jnp
from jax.experimental import pallas as pl
from jax.experimental.pallas import tpu as pltpu


# --------------------------------------------------------------------- geometry
def _round_up(v, m):
    return (v + m - 1) // m * m


def _geometry(H, W):
    """Flat 'padded half-resolution grid' layout used for every activation."""
    Hq, Wq = H // 2, W // 2
    G = Wq + 2                              # padded grid width (1 halo each side)
    NG = (Hq + 2) * G                       # padded grid cells
    R0 = G + 1                              # grid cell g <-> buffer row R0 + g
    MROWS = _round_up(NG, 8)                # rows computed per batch element
    R = _round_up(R0 + MROWS + G + 1, 8)    # total rows of every row buffer
    return Hq, Wq, G, NG, R0, MROWS, R


def _interior_mask(H, W):
    """1.0 on rows that are real (non-halo) half-res pixels, else 0.0."""
    Hq, Wq, G, NG, _, MROWS, _ = _geometry(H, W)
    g = jnp.arange(MROWS)
    yb, xb = g // G, g % G
    valid = (g < NG) & (yb >= 1) & (yb <= Hq) & (xb >= 1) & (xb <= Wq)
    return valid.astype(jnp.float32)[:, None]            # (MROWS, 1)


# ----------------------------------------------------------------------- kernel
def _make_kernel(H, W):
    Hq, Wq, G, NG, R0, MROWS, R = _geometry(H, W)
    OFF3 = [(dy, dx) for dy in (-1, 0, 1) for dx in (-1, 0, 1)]   # 3x3 stride-1 taps
    OFF2 = [(dy, dx) for dy in (-1, 0) for dx in (-1, 0)]         # 2x2 block taps
    bf16 = jnp.bfloat16

    def mish(y):
        # mish(y) = y * tanh(softplus(y)) = y * t / (t + 2),  t = e^y (e^y + 2)
        e = jnp.exp(jnp.minimum(y, 20.0))
        t = e * (e + 2.0)
        return y * t * pl.reciprocal(t + 2.0, approx=True)

    def kernel(x0_ref, mask_ref,
               w0_ref, w1_ref, w32_ref, w4_ref, w5_ref, w6_ref,
               w7a_ref, w7r_ref, b_ref,
               o_ref, a0_ext, a4_ext):
        mask = mask_ref[...]                                      # (MROWS, 1) f32
        B = b_ref[...]                                            # (8, 128)  f32 biases

        def tap_sum(src_ref, w_ref, offsets):
            # back-to-back dots summed into one accumulator (no zero-init)
            acc = None
            for t, (dy, dx) in enumerate(offsets):
                s = R0 + dy * G + dx
                term = jnp.dot(src_ref[s:s + MROWS, :].astype(bf16), w_ref[t],
                               preferred_element_type=jnp.float32)
                acc = term if acc is None else acc + term
            return acc

        # The masked interior writes below never touch the head/tail rows of the
        # row buffers, so re-zero only those few rows each step (cheap, and
        # independent of any scratch state from other grid steps / cores).
        a0_ext[0:R0, :] = jnp.zeros((R0, a0_ext.shape[1]), jnp.float32)
        a0_ext[R0 + MROWS:R, :] = jnp.zeros((R - R0 - MROWS, a0_ext.shape[1]),
                                            jnp.float32)
        a4_ext[0:R0, :] = jnp.zeros((R0, a4_ext.shape[1]), jnp.float32)
        a4_ext[R0 + MROWS:R, :] = jnp.zeros((R - R0 - MROWS, a4_ext.shape[1]),
                                            jnp.float32)

        # conv0: 3x3/s1 on the raw image == ONE K=128 matmul on the s2d im2col
        a0 = mish(jnp.dot(x0_ref[...], w0_ref[...],
                          preferred_element_type=jnp.float32) + B[0:1, :])
        a0_ext[R0:R0 + MROWS, :] = a0 * mask                      # zero grid halo

        # conv1: 3x3/s2 == stride-1 2x2 block conv on the s2d conv0 output
        a1 = mish(tap_sum(a0_ext, w1_ref, OFF2) + B[1:2, :64])    # (MROWS, 64)

        # conv3 | conv2 fused: lanes [0:64] = shortcut, lanes [64:128] = route
        a23 = mish(jnp.dot(a1.astype(bf16), w32_ref[...],
                           preferred_element_type=jnp.float32) + B[2:3, :])
        a23b = a23.astype(bf16)
        shortcut = a23[:, :64]                                    # f32, for residual

        # conv4 (reads only the shortcut lanes: route rows of w4 are zero)
        a4 = mish(jnp.dot(a23b, w4_ref[...],
                          preferred_element_type=jnp.float32) + B[3:4, :32])
        a4_ext[R0:R0 + MROWS, :] = a4 * mask

        # conv5 (3x3/s1) + residual add (post-activation, as in the reference)
        a5 = mish(tap_sum(a4_ext, w5_ref, OFF3) + B[4:5, :64]) + shortcut
        a6 = mish(jnp.dot(a5.astype(bf16), w6_ref[...],
                          preferred_element_type=jnp.float32) + B[5:6, :64])

        # conv7 on cat([a6, route]) == two accumulated matmuls (route comes from
        # a23; its shortcut rows are zero in w7r) -> 128-lane dense store
        y7 = (jnp.dot(a6.astype(bf16), w7a_ref[...],
                      preferred_element_type=jnp.float32)
              + jnp.dot(a23b, w7r_ref[...],
                        preferred_element_type=jnp.float32)
              + B[6:7, :])
        o_ref[...] = mish(y7).astype(o_ref.dtype)

    return kernel, (Hq, Wq, G, NG, R0, MROWS, R)


# ----------------------------------------------------------------------- params
_CONV_DEFS = {
    # name:   (kernel, Cin, Cout, stride)
    "conv0": (3, 3, 32, 1),
    "conv1": (3, 32, 64, 2),
    "conv2": (1, 64, 64, 1),
    "conv3": (1, 64, 64, 1),
    "conv4": (1, 64, 32, 1),
    "conv5": (3, 32, 64, 1),
    "conv6": (1, 64, 64, 1),
    "conv7": (1, 128, 64, 1),
}


def init_downsample_params(key):
    params = {}
    keys = jax.random.split(key, len(_CONV_DEFS))
    for kk, (name, (k, cin, cout, _)) in zip(keys, _CONV_DEFS.items()):
        kw, ks, kb = jax.random.split(kk, 3)
        w = jax.random.normal(kw, (k, k, cin, cout), jnp.float32) * (2.0 / (k * k * cin)) ** 0.5
        scale = 1.0 + 0.1 * jax.random.normal(ks, (cout,), jnp.float32)
        bias = 0.1 * jax.random.normal(kb, (cout,), jnp.float32)
        params[name] = (w, scale, bias)
    return params


def _fold(w, scale):
    """Fold BatchNorm scale into the conv weights (bias kept separate)."""
    return w * scale.reshape(1, 1, 1, -1)


def _s2d_weight_in(w):
    """3x3/s1 conv whose IN and OUT are space-to-depth'd (conv0): (9, 4Cin, 4Cout)."""
    cin, cout = w.shape[2], w.shape[3]
    out = jnp.zeros((3, 3, 4 * cin, 4 * cout), w.dtype)
    for dy in range(2):
        for dx in range(2):
            for ky in range(3):
                for kx in range(3):
                    qy, py = divmod(dy + ky - 1, 2)
                    qx, px = divmod(dx + kx - 1, 2)
                    ci0 = (2 * py + px) * cin
                    co0 = (2 * dy + dx) * cout
                    out = out.at[qy + 1, qx + 1,
                                 ci0:ci0 + cin, co0:co0 + cout].set(w[ky, kx])
    return out.reshape(9, 4 * cin, 4 * cout)


def _s2d_weight_stride2(w):
    """3x3/s2 conv whose IN is space-to-depth'd (conv1): (4, 4Cin, Cout)."""
    cin, cout = w.shape[2], w.shape[3]
    out = jnp.zeros((2, 2, 4 * cin, cout), w.dtype)
    for ky in range(3):
        qy, py = divmod(ky - 1, 2)
        for kx in range(3):
            qx, px = divmod(kx - 1, 2)
            ci0 = (2 * py + px) * cin
            out = out.at[qy + 1, qx + 1, ci0:ci0 + cin, :].set(w[ky, kx])
    return out.reshape(4, 4 * cin, cout)


def prepare_kernel_params(params):
    """Fold BN scale, rearrange/fuse weights for the kernel, cast to bf16."""
    f = {n: (_fold(w, s), b.reshape(1, -1)) for n, (w, s, b) in params.items()}
    bf = jnp.bfloat16

    # conv0: s2d 3x3 taps flattened to a single (108,128) matmul, K padded to 128
    w0 = _s2d_weight_in(f["conv0"][0]).reshape(9 * 12, 128)
    w0 = jnp.pad(w0, ((0, 128 - 108), (0, 0))).astype(bf)                 # (128, 128)

    w1 = _s2d_weight_stride2(f["conv1"][0]).astype(bf)                    # (4, 128, 64)

    # conv3 | conv2 fused (shortcut in lanes [:64], route in lanes [64:])
    w32 = jnp.concatenate([f["conv3"][0].reshape(64, 64),
                           f["conv2"][0].reshape(64, 64)], axis=1).astype(bf)  # (64,128)

    # conv4 consumes a23's shortcut lanes; route rows are zero
    w4 = jnp.pad(f["conv4"][0].reshape(64, 32), ((0, 64), (0, 0))).astype(bf)  # (128,32)

    w5 = f["conv5"][0].reshape(9, 32, 64).astype(bf)
    w6 = f["conv6"][0].reshape(64, 64).astype(bf)

    # conv7 split: a6 part (K=64) and route part (K=128, shortcut rows zeroed);
    # output channels zero-padded 64 -> 128 for a lane-dense final store
    w7 = f["conv7"][0].reshape(128, 64)
    w7a = jnp.pad(w7[:64], ((0, 0), (0, 64))).astype(bf)                  # (64, 128)
    w7r = jnp.pad(w7[64:], ((64, 0), (0, 64))).astype(bf)                 # (128, 128)

    # all biases packed into one (8,128) f32 block (zero-padded lanes)
    def row(b, width):
        return jnp.pad(b.reshape(1, -1), ((0, 0), (0, 128 - width)))

    bpack = jnp.concatenate([
        jnp.tile(f["conv0"][1], (1, 4)),                                  # conv0 (s2d)
        row(f["conv1"][1], 64),                                           # conv1
        jnp.concatenate([f["conv3"][1], f["conv2"][1]], axis=1),          # conv3|conv2
        row(f["conv4"][1], 32),                                           # conv4
        row(f["conv5"][1], 64),                                           # conv5
        row(f["conv6"][1], 64),                                           # conv6
        row(f["conv7"][1], 64),                                           # conv7
        jnp.zeros((1, 128), jnp.float32),                                 # pad row
    ], axis=0)                                                            # (8, 128)

    return dict(w0=w0, w1=w1, w32=w32, w4=w4, w5=w5, w6=w6,
                w7a=w7a, w7r=w7r, b=bpack)


# ---------------------------------------------------------------------- forward
def downsample_forward(x_nchw, kp):
    N, C, H, W = x_nchw.shape
    assert C == 3 and H % 2 == 0 and W % 2 == 0
    kernel, (Hq, Wq, G, NG, R0, MROWS, R) = _make_kernel(H, W)

    # NCHW -> NHWC -> space-to-depth (half res, 12 ch)
    x = jnp.transpose(x_nchw, (0, 2, 3, 1)).astype(jnp.float32)
    xs = x.reshape(N, Hq, 2, Wq, 2, 3).transpose(0, 1, 3, 2, 4, 5).reshape(N, Hq, Wq, 12)

    # wrapper-side im2col for conv0 over the 1-halo padded grid (bf16, K pad -> 128)
    xs2 = jnp.pad(xs, ((0, 0), (2, 2), (2, 2), (0, 0)))          # (N, Hq+4, Wq+4, 12)
    cols = []
    for dy in (-1, 0, 1):
        for dx in (-1, 0, 1):
            cols.append(xs2[:, 1 + dy:1 + dy + Hq + 2, 1 + dx:1 + dx + Wq + 2, :])
    im = jnp.concatenate(cols, axis=-1).reshape(N, NG, 9 * 12)
    im = jnp.pad(im, ((0, 0), (0, MROWS - NG), (0, 128 - 9 * 12)))
    x0 = im.astype(jnp.bfloat16)                                 # (N, MROWS, 128)

    mask = _interior_mask(H, W)                                  # (MROWS, 1) f32

    def full(shape):
        return pl.BlockSpec(shape, lambda b: (0,) * len(shape))

    in_specs = [
        pl.BlockSpec((None, MROWS, 128), lambda b: (b, 0, 0)),   # conv0 im2col (per batch)
        full((MROWS, 1)),                                        # interior mask
        full(kp["w0"].shape), full(kp["w1"].shape), full(kp["w32"].shape),
        full(kp["w4"].shape), full(kp["w5"].shape), full(kp["w6"].shape),
        full(kp["w7a"].shape), full(kp["w7r"].shape), full(kp["b"].shape),
    ]

    out = pl.pallas_call(
        kernel,
        out_shape=jax.ShapeDtypeStruct((N, MROWS, 128), jnp.float32),
        grid=(N,),
        in_specs=in_specs,
        out_specs=pl.BlockSpec((None, MROWS, 128), lambda b: (b, 0, 0)),
        scratch_shapes=[pltpu.VMEM((R, 128), jnp.float32),   # conv0 out (s2d, halo-zeroed)
                        pltpu.VMEM((R, 32), jnp.float32)],   # conv4 out (halo-zeroed)
        compiler_params=pltpu.CompilerParams(dimension_semantics=("parallel",)),
    )(x0, mask, kp["w0"], kp["w1"], kp["w32"], kp["w4"], kp["w5"],
      kp["w6"], kp["w7a"], kp["w7r"], kp["b"])

    # drop halo rows / padded channels, back to NCHW
    out = out[:, :NG, :64].reshape(N, Hq + 2, Wq + 2, 64)[:, 1:Hq + 1, 1:Wq + 1, :]
    return jnp.transpose(out, (0, 3, 1, 2))


# ---------------------------------------------------------- plain-JAX reference
def _mish_exact(y):
    return y * jnp.tanh(jax.nn.softplus(y))


def _conv_ref(x, w, b, stride):
    k = w.shape[0]
    p = (k - 1) // 2
    y = jax.lax.conv_general_dilated(
        x, w, window_strides=(stride, stride), padding=((p, p), (p, p)),
        dimension_numbers=("NHWC", "HWIO", "NHWC"))
    return _mish_exact(y + b.reshape(1, 1, 1, -1))


def downsample_reference(x_nchw, params):
    f = {n: (_fold(w, s), b) for n, (w, s, b) in params.items()}
    x = jnp.transpose(x_nchw, (0, 2, 3, 1)).astype(jnp.float32)
    x = _conv_ref(x, *f["conv0"], 1)
    x = _conv_ref(x, *f["conv1"], 2)
    route = _conv_ref(x, *f["conv2"], 1)
    shortcut = _conv_ref(x, *f["conv3"], 1)
    x = _conv_ref(shortcut, *f["conv4"], 1)
    x = _conv_ref(x, *f["conv5"], 1) + shortcut
    x = _conv_ref(x, *f["conv6"], 1)
    x = jnp.concatenate([x, route], axis=-1)
    x = _conv_ref(x, *f["conv7"], 1)
    return jnp.transpose(x, (0, 3, 1, 2))


if __name__ == "__main__":
    key = jax.random.PRNGKey(0)
    k_params, k_x = jax.random.split(key)
    params = init_downsample_params(k_params)
    kparams = prepare_kernel_params(params)

    # PyTorch-style NCHW input: batch=2, channels=3 (RGB), spatial 16x16
    x = jax.random.normal(k_x, (2, 3, 16, 16), dtype=jnp.float32)

    out = jax.jit(downsample_forward)(x, kparams)
    out = jax.block_until_ready(out)

    assert out.shape == (2, 64, 8, 8), out.shape
    assert bool(jnp.all(jnp.isfinite(out)))

    # loose check vs an f32 XLA reference (bf16 MXU + approx reciprocal in-kernel)
    ref = downsample_reference(x, params)
    err = float(jnp.max(jnp.abs(out - ref)))
    assert err < 0.15, err

    print("KERNEL_OK")
</pallas_src>

<mosaic_0001>
module attributes {stable_mosaic.version = 11 : i64} {
  func.func @kernel(%arg0: i32, %arg1: memref<1x104x128xbf16, #tpu.memory_space<vmem>>, %arg2: memref<104x1xf32, #tpu.memory_space<vmem>>, %arg3: memref<128x128xbf16, #tpu.memory_space<vmem>>, %arg4: memref<4x128x64xbf16, #tpu.memory_space<vmem>>, %arg5: memref<64x128xbf16, #tpu.memory_space<vmem>>, %arg6: memref<128x32xbf16, #tpu.memory_space<vmem>>, %arg7: memref<9x32x64xbf16, #tpu.memory_space<vmem>>, %arg8: memref<64x64xbf16, #tpu.memory_space<vmem>>, %arg9: memref<64x128xbf16, #tpu.memory_space<vmem>>, %arg10: memref<128x128xbf16, #tpu.memory_space<vmem>>, %arg11: memref<8x128xf32, #tpu.memory_space<vmem>>, %arg12: memref<1x104x128xf32, #tpu.memory_space<vmem>>, %arg13: memref<128x128xf32, #tpu.memory_space<vmem>>, %arg14: memref<128x32xf32, #tpu.memory_space<vmem>>) attributes {dimension_semantics = [#tpu.dimension_semantics<parallel>], iteration_bounds = array<i64: 2>, scalar_prefetch = 0 : i64, scratch_operands = 2 : i64, tpu.core_type = #tpu.core_type<tc>, window_params = [{transform_indices = @transform_0, window_bounds = array<i64: 1, 104, 128>}, {pipeline_mode = #tpu.pipeline_mode<synchronous>, transform_indices = @transform_1, window_bounds = array<i64: 104, 1>}, {pipeline_mode = #tpu.pipeline_mode<synchronous>, transform_indices = @transform_2, window_bounds = array<i64: 128, 128>}, {pipeline_mode = #tpu.pipeline_mode<synchronous>, transform_indices = @transform_3, window_bounds = array<i64: 4, 128, 64>}, {pipeline_mode = #tpu.pipeline_mode<synchronous>, transform_indices = @transform_4, window_bounds = array<i64: 64, 128>}, {pipeline_mode = #tpu.pipeline_mode<synchronous>, transform_indices = @transform_5, window_bounds = array<i64: 128, 32>}, {pipeline_mode = #tpu.pipeline_mode<synchronous>, transform_indices = @transform_6, window_bounds = array<i64: 9, 32, 64>}, {pipeline_mode = #tpu.pipeline_mode<synchronous>, transform_indices = @transform_7, window_bounds = array<i64: 64, 64>}, {pipeline_mode = #tpu.pipeline_mode<synchronous>, transform_indices = @transform_8, window_bounds = array<i64: 64, 128>}, {pipeline_mode = #tpu.pipeline_mode<synchronous>, transform_indices = @transform_9, window_bounds = array<i64: 128, 128>}, {pipeline_mode = #tpu.pipeline_mode<synchronous>, transform_indices = @transform_10, window_bounds = array<i64: 8, 128>}, {transform_indices = @transform_11, window_bounds = array<i64: 1, 104, 128>}]} {
    %c0 = arith.constant 0 : index
    %c0_0 = arith.constant 0 : index
    %0 = vector.load %arg2[%c0, %c0_0] : memref<104x1xf32, #tpu.memory_space<vmem>>, vector<104x1xf32>
    %c0_1 = arith.constant 0 : index
    %c0_2 = arith.constant 0 : index
    %1 = vector.load %arg11[%c0_1, %c0_2] : memref<8x128xf32, #tpu.memory_space<vmem>>, vector<8x128xf32>
    %cst = arith.constant 0.000000e+00 : f32
    %2 = vector.broadcast %cst : f32 to vector<11x128xf32>
    %c0_3 = arith.constant 0 : index
    %c0_4 = arith.constant 0 : index
    %3 = vector.load %arg13[%c0_3, %c0_4] : memref<128x128xf32, #tpu.memory_space<vmem>>, vector<11x128xf32>
    tpu.vector_store %arg13[%c0_3, %c0_4], %2 {strides = array<i32>} : memref<128x128xf32, #tpu.memory_space<vmem>>, vector<11x128xf32>,
    %cst_5 = arith.constant 0.000000e+00 : f32
    %4 = vector.broadcast %cst_5 : f32 to vector<13x128xf32>
    %c115 = arith.constant 115 : index
    %c0_6 = arith.constant 0 : index
    %5 = vector.load %arg13[%c115, %c0_6] : memref<128x128xf32, #tpu.memory_space<vmem>>, vector<13x128xf32>
    tpu.vector_store %arg13[%c115, %c0_6], %4 {strides = array<i32>} : memref<128x128xf32, #tpu.memory_space<vmem>>, vector<13x128xf32>,
    %cst_7 = arith.constant 0.000000e+00 : f32
    %6 = vector.broadcast %cst_7 : f32 to vector<11x32xf32>
    %c0_8 = arith.constant 0 : index
    %c0_9 = arith.constant 0 : index
    %7 = vector.load %arg14[%c0_8, %c0_9] : memref<128x32xf32, #tpu.memory_space<vmem>>, vector<11x32xf32>
    tpu.vector_store %arg14[%c0_8, %c0_9], %6 {strides = array<i32>} : memref<128x32xf32, #tpu.memory_space<vmem>>, vector<11x32xf32>,
    %cst_10 = arith.constant 0.000000e+00 : f32
    %8 = vector.broadcast %cst_10 : f32 to vector<13x32xf32>
    %c115_11 = arith.constant 115 : index
    %c0_12 = arith.constant 0 : index
    %9 = vector.load %arg14[%c115_11, %c0_12] : memref<128x32xf32, #tpu.memory_space<vmem>>, vector<13x32xf32>
    tpu.vector_store %arg14[%c115_11, %c0_12], %8 {strides = array<i32>} : memref<128x32xf32, #tpu.memory_space<vmem>>, vector<13x32xf32>,
    %c0_13 = arith.constant 0 : index
    %c0_14 = arith.constant 0 : index
    %c0_15 = arith.constant 0 : index
    %10 = vector.load %arg1[%c0_13, %c0_14, %c0_15] : memref<1x104x128xbf16, #tpu.memory_space<vmem>>, vector<1x104x128xbf16>
    %11 = vector.shape_cast %10 : vector<1x104x128xbf16> to vector<104x128xbf16>
    %c0_16 = arith.constant 0 : index
    %c0_17 = arith.constant 0 : index
    %12 = vector.load %arg3[%c0_16, %c0_17] : memref<128x128xbf16, #tpu.memory_space<vmem>>, vector<128x128xbf16>
    %cst_18 = arith.constant dense<0.000000e+00> : vector<104x128xf32>
    %13 = tpu.matmul %11, %12, %cst_18 {dimension_numbers = #tpu.dot_dimension_numbers<[1], [0], [0], [1], [0, 0, 1, 1], [], []>} : vector<104x128xbf16>, vector<128x128xbf16>, vector<104x128xf32> -> vector<104x128xf32>
    %14 = vector.extract_strided_slice %1 {offsets = [0, 0], sizes = [1, 128], strides = [1, 1]} : vector<8x128xf32> to vector<1x128xf32>
    %15 = vector.broadcast %14 : vector<1x128xf32> to vector<104x128xf32>
    %16 = arith.addf %13, %15 : vector<104x128xf32>
    %cst_19 = arith.constant 2.000000e+01 : f32
    %17 = vector.broadcast %cst_19 : f32 to vector<104x128xf32>
    %18 = arith.minimumf %16, %17 : vector<104x128xf32>
    %19 = math.exp %18 : vector<104x128xf32>
    %cst_20 = arith.constant 2.000000e+00 : f32
    %20 = vector.broadcast %cst_20 : f32 to vector<104x128xf32>
    %21 = arith.addf %19, %20 : vector<104x128xf32>
    %22 = arith.mulf %19, %21 : vector<104x128xf32>
    %23 = arith.mulf %16, %22 : vector<104x128xf32>
    %cst_21 = arith.constant 2.000000e+00 : f32
    %24 = vector.broadcast %cst_21 : f32 to vector<104x128xf32>
    %25 = arith.addf %22, %24 : vector<104x128xf32>
    %26 = tpu.reciprocal %25 {approx = true} : vector<104x128xf32> -> vector<104x128xf32>
    %27 = arith.mulf %23, %26 : vector<104x128xf32>
    %28 = vector.broadcast %0 : vector<104x1xf32> to vector<104x128xf32>
    %29 = arith.mulf %27, %28 : vector<104x128xf32>
    %c11 = arith.constant 11 : index
    %c0_22 = arith.constant 0 : index
    %30 = vector.load %arg13[%c11, %c0_22] : memref<128x128xf32, #tpu.memory_space<vmem>>, vector<104x128xf32>
    tpu.vector_store %arg13[%c11, %c0_22], %29 {strides = array<i32>} : memref<128x128xf32, #tpu.memory_space<vmem>>, vector<104x128xf32>,
    %c0_23 = arith.constant 0 : index
    %c0_24 = arith.constant 0 : index
    %31 = vector.load %arg13[%c0_23, %c0_24] : memref<128x128xf32, #tpu.memory_space<vmem>>, vector<104x128xf32>
    %32 = arith.truncf %31 : vector<104x128xf32> to vector<104x128xbf16>
    %c0_25 = arith.constant 0 : index
    %c0_26 = arith.constant 0 : index
    %c0_27 = arith.constant 0 : index
    %33 = vector.load %arg4[%c0_25, %c0_26, %c0_27] : memref<4x128x64xbf16, #tpu.memory_space<vmem>>, vector<1x128x64xbf16>
    %34 = vector.shape_cast %33 : vector<1x128x64xbf16> to vector<128x64xbf16>
    %cst_28 = arith.constant dense<0.000000e+00> : vector<104x64xf32>
    %35 = tpu.matmul %32, %34, %cst_28 {dimension_numbers = #tpu.dot_dimension_numbers<[1], [0], [0], [1], [0, 0, 1, 1], [], []>} : vector<104x128xbf16>, vector<128x64xbf16>, vector<104x64xf32> -> vector<104x64xf32>
    %c1 = arith.constant 1 : index
    %c0_29 = arith.constant 0 : index
    %36 = vector.load %arg13[%c1, %c0_29] : memref<128x128xf32, #tpu.memory_space<vmem>>, vector<104x128xf32>
    %37 = arith.truncf %36 : vector<104x128xf32> to vector<104x128xbf16>
    %c1_30 = arith.constant 1 : index
    %c0_31 = arith.constant 0 : index
    %c0_32 = arith.constant 0 : index
    %38 = vector.load %arg4[%c1_30, %c0_31, %c0_32] : memref<4x128x64xbf16, #tpu.memory_space<vmem>>, vector<1x128x64xbf16>
    %39 = vector.shape_cast %38 : vector<1x128x64xbf16> to vector<128x64xbf16>
    %cst_33 = arith.constant dense<0.000000e+00> : vector<104x64xf32>
    %40 = tpu.matmul %37, %39, %cst_33 {dimension_numbers = #tpu.dot_dimension_numbers<[1], [0], [0], [1], [0, 0, 1, 1], [], []>} : vector<104x128xbf16>, vector<128x64xbf16>, vector<104x64xf32> -> vector<104x64xf32>
    %41 = arith.addf %35, %40 : vector<104x64xf32>
    %c10 = arith.constant 10 : index
    %c0_34 = arith.constant 0 : index
    %42 = vector.load %arg13[%c10, %c0_34] : memref<128x128xf32, #tpu.memory_space<vmem>>, vector<104x128xf32>
    %43 = arith.truncf %42 : vector<104x128xf32> to vector<104x128xbf16>
    %c2 = arith.constant 2 : index
    %c0_35 = arith.constant 0 : index
    %c0_36 = arith.constant 0 : index
    %44 = vector.load %arg4[%c2, %c0_35, %c0_36] : memref<4x128x64xbf16, #tpu.memory_space<vmem>>, vector<1x128x64xbf16>
    %45 = vector.shape_cast %44 : vector<1x128x64xbf16> to vector<128x64xbf16>
    %cst_37 = arith.constant dense<0.000000e+00> : vector<104x64xf32>
    %46 = tpu.matmul %43, %45, %cst_37 {dimension_numbers = #tpu.dot_dimension_numbers<[1], [0], [0], [1], [0, 0, 1, 1], [], []>} : vector<104x128xbf16>, vector<128x64xbf16>, vector<104x64xf32> -> vector<104x64xf32>
    %47 = arith.addf %41, %46 : vector<104x64xf32>
    %c11_38 = arith.constant 11 : index
    %c0_39 = arith.constant 0 : index
    %48 = vector.load %arg13[%c11_38, %c0_39] : memref<128x128xf32, #tpu.memory_space<vmem>>, vector<104x128xf32>
    %49 = arith.truncf %48 : vector<104x128xf32> to vector<104x128xbf16>
    %c3 = arith.constant 3 : index
    %c0_40 = arith.constant 0 : index
    %c0_41 = arith.constant 0 : index
    %50 = vector.load %arg4[%c3, %c0_40, %c0_41] : memref<4x128x64xbf16, #tpu.memory_space<vmem>>, vector<1x128x64xbf16>
    %51 = vector.shape_cast %50 : vector<1x128x64xbf16> to vector<128x64xbf16>
    %cst_42 = arith.constant dense<0.000000e+00> : vector<104x64xf32>
    %52 = tpu.matmul %49, %51, %cst_42 {dimension_numbers = #tpu.dot_dimension_numbers<[1], [0], [0], [1], [0, 0, 1, 1], [], []>} : vector<104x128xbf16>, vector<128x64xbf16>, vector<104x64xf32> -> vector<104x64xf32>
    %53 = arith.addf %47, %52 : vector<104x64xf32>
    %54 = vector.extract_strided_slice %1 {offsets = [1, 0], sizes = [1, 64], strides = [1, 1]} : vector<8x128xf32> to vector<1x64xf32>
    %55 = vector.broadcast %54 : vector<1x64xf32> to vector<104x64xf32>
    %56 = arith.addf %53, %55 : vector<104x64xf32>
    %cst_43 = arith.constant 2.000000e+01 : f32
    %57 = vector.broadcast %cst_43 : f32 to vector<104x64xf32>
    %58 = arith.minimumf %56, %57 : vector<104x64xf32>
    %59 = math.exp %58 : vector<104x64xf32>
    %cst_44 = arith.constant 2.000000e+00 : f32
    %60 = vector.broadcast %cst_44 : f32 to vector<104x64xf32>
    %61 = arith.addf %59, %60 : vector<104x64xf32>
    %62 = arith.mulf %59, %61 : vector<104x64xf32>
    %63 = arith.mulf %56, %62 : vector<104x64xf32>
    %cst_45 = arith.constant 2.000000e+00 : f32
    %64 = vector.broadcast %cst_45 : f32 to vector<104x64xf32>
    %65 = arith.addf %62, %64 : vector<104x64xf32>
    %66 = tpu.reciprocal %65 {approx = true} : vector<104x64xf32> -> vector<104x64xf32>
    %67 = arith.mulf %63, %66 : vector<104x64xf32>
    %68 = arith.truncf %67 : vector<104x64xf32> to vector<104x64xbf16>
    %c0_46 = arith.constant 0 : index
    %c0_47 = arith.constant 0 : index
    %69 = vector.load %arg5[%c0_46, %c0_47] : memref<64x128xbf16, #tpu.memory_space<vmem>>, vector<64x128xbf16>
    %cst_48 = arith.constant dense<0.000000e+00> : vector<104x128xf32>
    %70 = tpu.matmul %68, %69, %cst_48 {dimension_numbers = #tpu.dot_dimension_numbers<[1], [0], [0], [1], [0, 0, 1, 1], [], []>} : vector<104x64xbf16>, vector<64x128xbf16>, vector<104x128xf32> -> vector<104x128xf32>
    %71 = vector.extract_strided_slice %1 {offsets = [2, 0], sizes = [1, 128], strides = [1, 1]} : vector<8x128xf32> to vector<1x128xf32>
    %72 = vector.broadcast %71 : vector<1x128xf32> to vector<104x128xf32>
    %73 = arith.addf %70, %72 : vector<104x128xf32>
    %cst_49 = arith.constant 2.000000e+01 : f32
    %74 = vector.broadcast %cst_49 : f32 to vector<104x128xf32>
    %75 = arith.minimumf %73, %74 : vector<104x128xf32>
    %76 = math.exp %75 : vector<104x128xf32>
    %cst_50 = arith.constant 2.000000e+00 : f32
    %77 = vector.broadcast %cst_50 : f32 to vector<104x128xf32>
    %78 = arith.addf %76, %77 : vector<104x128xf32>
    %79 = arith.mulf %76, %78 : vector<104x128xf32>
    %80 = arith.mulf %73, %79 : vector<104x128xf32>
    %cst_51 = arith.constant 2.000000e+00 : f32
    %81 = vector.broadcast %cst_51 : f32 to vector<104x128xf32>
    %82 = arith.addf %79, %81 : vector<104x128xf32>
    %83 = tpu.reciprocal %82 {approx = true} : vector<104x128xf32> -> vector<104x128xf32>
    %84 = arith.mulf %80, %83 : vector<104x128xf32>
    %85 = arith.truncf %84 : vector<104x128xf32> to vector<104x128xbf16>
    %86 = vector.extract_strided_slice %84 {offsets = [0, 0], sizes = [104, 64], strides = [1, 1]} : vector<104x128xf32> to vector<104x64xf32>
    %c0_52 = arith.constant 0 : index
    %c0_53 = arith.constant 0 : index
    %87 = vector.load %arg6[%c0_52, %c0_53] : memref<128x32xbf16, #tpu.memory_space<vmem>>, vector<128x32xbf16>
    %cst_54 = arith.constant dense<0.000000e+00> : vector<104x32xf32>
    %88 = tpu.matmul %85, %87, %cst_54 {dimension_numbers = #tpu.dot_dimension_numbers<[1], [0], [0], [1], [0, 0, 1, 1], [], []>} : vector<104x128xbf16>, vector<128x32xbf16>, vector<104x32xf32> -> vector<104x32xf32>
    %89 = vector.extract_strided_slice %1 {offsets = [3, 0], sizes = [1, 32], strides = [1, 1]} : vector<8x128xf32> to vector<1x32xf32>
    %90 = vector.broadcast %89 : vector<1x32xf32> to vector<104x32xf32>
    %91 = arith.addf %88, %90 : vector<104x32xf32>
    %cst_55 = arith.constant 2.000000e+01 : f32
    %92 = vector.broadcast %cst_55 : f32 to vector<104x32xf32>
    %93 = arith.minimumf %91, %92 : vector<104x32xf32>
    %94 = math.exp %93 : vector<104x32xf32>
    %cst_56 = arith.constant 2.000000e+00 : f32
    %95 = vector.broadcast %cst_56 : f32 to vector<104x32xf32>
    %96 = arith.addf %94, %95 : vector<104x32xf32>
    %97 = arith.mulf %94, %96 : vector<104x32xf32>
    %98 = arith.mulf %91, %97 : vector<104x32xf32>
    %cst_57 = arith.constant 2.000000e+00 : f32
    %99 = vector.broadcast %cst_57 : f32 to vector<104x32xf32>
    %100 = arith.addf %97, %99 : vector<104x32xf32>
    %101 = tpu.reciprocal %100 {approx = true} : vector<104x32xf32> -> vector<104x32xf32>
    %102 = arith.mulf %98, %101 : vector<104x32xf32>
    %103 = vector.broadcast %0 : vector<104x1xf32> to vector<104x32xf32>
    %104 = arith.mulf %102, %103 : vector<104x32xf32>
    %c11_58 = arith.constant 11 : index
    %c0_59 = arith.constant 0 : index
    %105 = vector.load %arg14[%c11_58, %c0_59] : memref<128x32xf32, #tpu.memory_space<vmem>>, vector<104x32xf32>
    tpu.vector_store %arg14[%c11_58, %c0_59], %104 {strides = array<i32>} : memref<128x32xf32, #tpu.memory_space<vmem>>, vector<104x32xf32>,
    %c0_60 = arith.constant 0 : index
    %c0_61 = arith.constant 0 : index
    %106 = vector.load %arg14[%c0_60, %c0_61] : memref<128x32xf32, #tpu.memory_space<vmem>>, vector<104x32xf32>
    %107 = arith.truncf %106 : vector<104x32xf32> to vector<104x32xbf16>
    %c0_62 = arith.constant 0 : index
    %c0_63 = arith.constant 0 : index
    %c0_64 = arith.constant 0 : index
    %108 = vector.load %arg7[%c0_62, %c0_63, %c0_64] : memref<9x32x64xbf16, #tpu.memory_space<vmem>>, vector<1x32x64xbf16>
    %109 = vector.shape_cast %108 : vector<1x32x64xbf16> to vector<32x64xbf16>
    %cst_65 = arith.constant dense<0.000000e+00> : vector<104x64xf32>
    %110 = tpu.matmul %107, %109, %cst_65 {dimension_numbers = #tpu.dot_dimension_numbers<[1], [0], [0], [1], [0, 0, 1, 1], [], []>} : vector<104x32xbf16>, vector<32x64xbf16>, vector<104x64xf32> -> vector<104x64xf32>
    %c1_66 = arith.constant 1 : index
    %c0_67 = arith.constant 0 : index
    %111 = vector.load %arg14[%c1_66, %c0_67] : memref<128x32xf32, #tpu.memory_space<vmem>>, vector<104x32xf32>
    %112 = arith.truncf %111 : vector<104x32xf32> to vector<104x32xbf16>
    %c1_68 = arith.constant 1 : index
    %c0_69 = arith.constant 0 : index
    %c0_70 = arith.constant 0 : index
    %113 = vector.load %arg7[%c1_68, %c0_69, %c0_70] : memref<9x32x64xbf16, #tpu.memory_space<vmem>>, vector<1x32x64xbf16>
    %114 = vector.shape_cast %113 : vector<1x32x64xbf16> to vector<32x64xbf16>
    %cst_71 = arith.constant dense<0.000000e+00> : vector<104x64xf32>
    %115 = tpu.matmul %112, %114, %cst_71 {dimension_numbers = #tpu.dot_dimension_numbers<[1], [0], [0], [1], [0, 0, 1, 1], [], []>} : vector<104x32xbf16>, vector<32x64xbf16>, vector<104x64xf32> -> vector<104x64xf32>
    %116 = arith.addf %110, %115 : vector<104x64xf32>
    %c2_72 = arith.constant 2 : index
    %c0_73 = arith.constant 0 : index
    %117 = vector.load %arg14[%c2_72, %c0_73] : memref<128x32xf32, #tpu.memory_space<vmem>>, vector<104x32xf32>
    %118 = arith.truncf %117 : vector<104x32xf32> to vector<104x32xbf16>
    %c2_74 = arith.constant 2 : index
    %c0_75 = arith.constant 0 : index
    %c0_76 = arith.constant 0 : index
    %119 = vector.load %arg7[%c2_74, %c0_75, %c0_76] : memref<9x32x64xbf16, #tpu.memory_space<vmem>>, vector<1x32x64xbf16>
    %120 = vector.shape_cast %119 : vector<1x32x64xbf16> to vector<32x64xbf16>
    %cst_77 = arith.constant dense<0.000000e+00> : vector<104x64xf32>
    %121 = tpu.matmul %118, %120, %cst_77 {dimension_numbers = #tpu.dot_dimension_numbers<[1], [0], [0], [1], [0, 0, 1, 1], [], []>} : vector<104x32xbf16>, vector<32x64xbf16>, vector<104x64xf32> -> vector<104x64xf32>
    %122 = arith.addf %116, %121 : vector<104x64xf32>
    %c10_78 = arith.constant 10 : index
    %c0_79 = arith.constant 0 : index
    %123 = vector.load %arg14[%c10_78, %c0_79] : memref<128x32xf32, #tpu.memory_space<vmem>>, vector<104x32xf32>
    %124 = arith.truncf %123 : vector<104x32xf32> to vector<104x32xbf16>
    %c3_80 = arith.constant 3 : index
    %c0_81 = arith.constant 0 : index
    %c0_82 = arith.constant 0 : index
    %125 = vector.load %arg7[%c3_80, %c0_81, %c0_82] : memref<9x32x64xbf16, #tpu.memory_space<vmem>>, vector<1x32x64xbf16>
    %126 = vector.shape_cast %125 : vector<1x32x64xbf16> to vector<32x64xbf16>
    %cst_83 = arith.constant dense<0.000000e+00> : vector<104x64xf32>
    %127 = tpu.matmul %124, %126, %cst_83 {dimension_numbers = #tpu.dot_dimension_numbers<[1], [0], [0], [1], [0, 0, 1, 1], [], []>} : vector<104x32xbf16>, vector<32x64xbf16>, vector<104x64xf32> -> vector<104x64xf32>
    %128 = arith.addf %122, %127 : vector<104x64xf32>
    %c11_84 = arith.constant 11 : index
    %c0_85 = arith.constant 0 : index
    %129 = vector.load %arg14[%c11_84, %c0_85] : memref<128x32xf32, #tpu.memory_space<vmem>>, vector<104x32xf32>
    %130 = arith.truncf %129 : vector<104x32xf32> to vector<104x32xbf16>
    %c4 = arith.constant 4 : index
    %c0_86 = arith.constant 0 : index
    %c0_87 = arith.constant 0 : index
    %131 = vector.load %arg7[%c4, %c0_86, %c0_87] : memref<9x32x64xbf16, #tpu.memory_space<vmem>>, vector<1x32x64xbf16>
    %132 = vector.shape_cast %131 : vector<1x32x64xbf16> to vector<32x64xbf16>
    %cst_88 = arith.constant dense<0.000000e+00> : vector<104x64xf32>
    %133 = tpu.matmul %130, %132, %cst_88 {dimension_numbers = #tpu.dot_dimension_numbers<[1], [0], [0], [1], [0, 0, 1, 1], [], []>} : vector<104x32xbf16>, vector<32x64xbf16>, vector<104x64xf32> -> vector<104x64xf32>
    %134 = arith.addf %128, %133 : vector<104x64xf32>
    %c12 = arith.constant 12 : index
    %c0_89 = arith.constant 0 : index
    %135 = vector.load %arg14[%c12, %c0_89] : memref<128x32xf32, #tpu.memory_space<vmem>>, vector<104x32xf32>
    %136 = arith.truncf %135 : vector<104x32xf32> to vector<104x32xbf16>
    %c5 = arith.constant 5 : index
    %c0_90 = arith.constant 0 : index
    %c0_91 = arith.constant 0 : index
    %137 = vector.load %arg7[%c5, %c0_90, %c0_91] : memref<9x32x64xbf16, #tpu.memory_space<vmem>>, vector<1x32x64xbf16>
    %138 = vector.shape_cast %137 : vector<1x32x64xbf16> to vector<32x64xbf16>
    %cst_92 = arith.constant dense<0.000000e+00> : vector<104x64xf32>
    %139 = tpu.matmul %136, %138, %cst_92 {dimension_numbers = #tpu.dot_dimension_numbers<[1], [0], [0], [1], [0, 0, 1, 1], [], []>} : vector<104x32xbf16>, vector<32x64xbf16>, vector<104x64xf32> -> vector<104x64xf32>
    %140 = arith.addf %134, %139 : vector<104x64xf32>
    %c20 = arith.constant 20 : index
    %c0_93 = arith.constant 0 : index
    %141 = vector.load %arg14[%c20, %c0_93] : memref<128x32xf32, #tpu.memory_space<vmem>>, vector<104x32xf32>
    %142 = arith.truncf %141 : vector<104x32xf32> to vector<104x32xbf16>
    %c6 = arith.constant 6 : index
    %c0_94 = arith.constant 0 : index
    %c0_95 = arith.constant 0 : index
    %143 = vector.load %arg7[%c6, %c0_94, %c0_95] : memref<9x32x64xbf16, #tpu.memory_space<vmem>>, vector<1x32x64xbf16>
    %144 = vector.shape_cast %143 : vector<1x32x64xbf16> to vector<32x64xbf16>
    %cst_96 = arith.constant dense<0.000000e+00> : vector<104x64xf32>
    %145 = tpu.matmul %142, %144, %cst_96 {dimension_numbers = #tpu.dot_dimension_numbers<[1], [0], [0], [1], [0, 0, 1, 1], [], []>} : vector<104x32xbf16>, vector<32x64xbf16>, vector<104x64xf32> -> vector<104x64xf32>
    %146 = arith.addf %140, %145 : vector<104x64xf32>
    %c21 = arith.constant 21 : index
    %c0_97 = arith.constant 0 : index
    %147 = vector.load %arg14[%c21, %c0_97] : memref<128x32xf32, #tpu.memory_space<vmem>>, vector<104x32xf32>
    %148 = arith.truncf %147 : vector<104x32xf32> to vector<104x32xbf16>
    %c7 = arith.constant 7 : index
    %c0_98 = arith.constant 0 : index
    %c0_99 = arith.constant 0 : index
    %149 = vector.load %arg7[%c7, %c0_98, %c0_99] : memref<9x32x64xbf16, #tpu.memory_space<vmem>>, vector<1x32x64xbf16>
    %150 = vector.shape_cast %149 : vector<1x32x64xbf16> to vector<32x64xbf16>
    %cst_100 = arith.constant dense<0.000000e+00> : vector<104x64xf32>
    %151 = tpu.matmul %148, %150, %cst_100 {dimension_numbers = #tpu.dot_dimension_numbers<[1], [0], [0], [1], [0, 0, 1, 1], [], []>} : vector<104x32xbf16>, vector<32x64xbf16>, vector<104x64xf32> -> vector<104x64xf32>
    %152 = arith.addf %146, %151 : vector<104x64xf32>
    %c22 = arith.constant 22 : index
    %c0_101 = arith.constant 0 : index
    %153 = vector.load %arg14[%c22, %c0_101] : memref<128x32xf32, #tpu.memory_space<vmem>>, vector<104x32xf32>
    %154 = arith.truncf %153 : vector<104x32xf32> to vector<104x32xbf16>
    %c8 = arith.constant 8 : index
    %c0_102 = arith.constant 0 : index
    %c0_103 = arith.constant 0 : index
    %155 = vector.load %arg7[%c8, %c0_102, %c0_103] : memref<9x32x64xbf16, #tpu.memory_space<vmem>>, vector<1x32x64xbf16>
    %156 = vector.shape_cast %155 : vector<1x32x64xbf16> to vector<32x64xbf16>
    %cst_104 = arith.constant dense<0.000000e+00> : vector<104x64xf32>
    %157 = tpu.matmul %154, %156, %cst_104 {dimension_numbers = #tpu.dot_dimension_numbers<[1], [0], [0], [1], [0, 0, 1, 1], [], []>} : vector<104x32xbf16>, vector<32x64xbf16>, vector<104x64xf32> -> vector<104x64xf32>
    %158 = arith.addf %152, %157 : vector<104x64xf32>
    %159 = vector.extract_strided_slice %1 {offsets = [4, 0], sizes = [1, 64], strides = [1, 1]} : vector<8x128xf32> to vector<1x64xf32>
    %160 = vector.broadcast %159 : vector<1x64xf32> to vector<104x64xf32>
    %161 = arith.addf %158, %160 : vector<104x64xf32>
    %cst_105 = arith.constant 2.000000e+01 : f32
    %162 = vector.broadcast %cst_105 : f32 to vector<104x64xf32>
    %163 = arith.minimumf %161, %162 : vector<104x64xf32>
    %164 = math.exp %163 : vector<104x64xf32>
    %cst_106 = arith.constant 2.000000e+00 : f32
    %165 = vector.broadcast %cst_106 : f32 to vector<104x64xf32>
    %166 = arith.addf %164, %165 : vector<104x64xf32>
    %167 = arith.mulf %164, %166 : vector<104x64xf32>
    %168 = arith.mulf %161, %167 : vector<104x64xf32>
    %cst_107 = arith.constant 2.000000e+00 : f32
    %169 = vector.broadcast %cst_107 : f32 to vector<104x64xf32>
    %170 = arith.addf %167, %169 : vector<104x64xf32>
    %171 = tpu.reciprocal %170 {approx = true} : vector<104x64xf32> -> vector<104x64xf32>
    %172 = arith.mulf %168, %171 : vector<104x64xf32>
    %173 = arith.addf %172, %86 : vector<104x64xf32>
    %174 = arith.truncf %173 : vector<104x64xf32> to vector<104x64xbf16>
    %c0_108 = arith.constant 0 : index
    %c0_109 = arith.constant 0 : index
    %175 = vector.load %arg8[%c0_108, %c0_109] : memref<64x64xbf16, #tpu.memory_space<vmem>>, vector<64x64xbf16>
    %cst_110 = arith.constant dense<0.000000e+00> : vector<104x64xf32>
    %176 = tpu.matmul %174, %175, %cst_110 {dimension_numbers = #tpu.dot_dimension_numbers<[1], [0], [0], [1], [0, 0, 1, 1], [], []>} : vector<104x64xbf16>, vector<64x64xbf16>, vector<104x64xf32> -> vector<104x64xf32>
    %177 = vector.extract_strided_slice %1 {offsets = [5, 0], sizes = [1, 64], strides = [1, 1]} : vector<8x128xf32> to vector<1x64xf32>
    %178 = vector.broadcast %177 : vector<1x64xf32> to vector<104x64xf32>
    %179 = arith.addf %176, %178 : vector<104x64xf32>
    %cst_111 = arith.constant 2.000000e+01 : f32
    %180 = vector.broadcast %cst_111 : f32 to vector<104x64xf32>
    %181 = arith.minimumf %179, %180 : vector<104x64xf32>
    %182 = math.exp %181 : vector<104x64xf32>
    %cst_112 = arith.constant 2.000000e+00 : f32
    %183 = vector.broadcast %cst_112 : f32 to vector<104x64xf32>
    %184 = arith.addf %182, %183 : vector<104x64xf32>
    %185 = arith.mulf %182, %184 : vector<104x64xf32>
    %186 = arith.mulf %179, %185 : vector<104x64xf32>
    %cst_113 = arith.constant 2.000000e+00 : f32
    %187 = vector.broadcast %cst_113 : f32 to vector<104x64xf32>
    %188 = arith.addf %185, %187 : vector<104x64xf32>
    %189 = tpu.reciprocal %188 {approx = true} : vector<104x64xf32> -> vector<104x64xf32>
    %190 = arith.mulf %186, %189 : vector<104x64xf32>
    %191 = arith.truncf %190 : vector<104x64xf32> to vector<104x64xbf16>
    %c0_114 = arith.constant 0 : index
    %c0_115 = arith.constant 0 : index
    %192 = vector.load %arg9[%c0_114, %c0_115] : memref<64x128xbf16, #tpu.memory_space<vmem>>, vector<64x128xbf16>
    %cst_116 = arith.constant dense<0.000000e+00> : vector<104x128xf32>
    %193 = tpu.matmul %191, %192, %cst_116 {dimension_numbers = #tpu.dot_dimension_numbers<[1], [0], [0], [1], [0, 0, 1, 1], [], []>} : vector<104x64xbf16>, vector<64x128xbf16>, vector<104x128xf32> -> vector<104x128xf32>
    %c0_117 = arith.constant 0 : index
    %c0_118 = arith.constant 0 : index
    %194 = vector.load %arg10[%c0_117, %c0_118] : memref<128x128xbf16, #tpu.memory_space<vmem>>, vector<128x128xbf16>
    %cst_119 = arith.constant dense<0.000000e+00> : vector<104x128xf32>
    %195 = tpu.matmul %85, %194, %cst_119 {dimension_numbers = #tpu.dot_dimension_numbers<[1], [0], [0], [1], [0, 0, 1, 1], [], []>} : vector<104x128xbf16>, vector<128x128xbf16>, vector<104x128xf32> -> vector<104x128xf32>
    %196 = arith.addf %193, %195 : vector<104x128xf32>
    %197 = vector.extract_strided_slice %1 {offsets = [6, 0], sizes = [1, 128], strides = [1, 1]} : vector<8x128xf32> to vector<1x128xf32>
    %198 = vector.broadcast %197 : vector<1x128xf32> to vector<104x128xf32>
    %199 = arith.addf %196, %198 : vector<104x128xf32>
    %cst_120 = arith.constant 2.000000e+01 : f32
    %200 = vector.broadcast %cst_120 : f32 to vector<104x128xf32>
    %201 = arith.minimumf %199, %200 : vector<104x128xf32>
    %202 = math.exp %201 : vector<104x128xf32>
    %cst_121 = arith.constant 2.000000e+00 : f32
    %203 = vector.broadcast %cst_121 : f32 to vector<104x128xf32>
    %204 = arith.addf %202, %203 : vector<104x128xf32>
    %205 = arith.mulf %202, %204 : vector<104x128xf32>
    %206 = arith.mulf %199, %205 : vector<104x128xf32>
    %cst_122 = arith.constant 2.000000e+00 : f32
    %207 = vector.broadcast %cst_122 : f32 to vector<104x128xf32>
    %208 = arith.addf %205, %207 : vector<104x128xf32>
    %209 = tpu.reciprocal %208 {approx = true} : vector<104x128xf32> -> vector<104x128xf32>
    %210 = arith.mulf %206, %209 : vector<104x128xf32>
    %c0_123 = arith.constant 0 : index
    %c0_124 = arith.constant 0 : index
    %c0_125 = arith.constant 0 : index
    %211 = vector.load %arg12[%c0_123, %c0_124, %c0_125] : memref<1x104x128xf32, #tpu.memory_space<vmem>>, vector<1x104x128xf32>
    %212 = vector.shape_cast %211 : vector<1x104x128xf32> to vector<104x128xf32>
    %213 = vector.shape_cast %210 : vector<104x128xf32> to vector<1x104x128xf32>
    tpu.vector_store %arg12[%c0_123, %c0_124, %c0_125], %213 {strides = array<i32>} : memref<1x104x128xf32, #tpu.memory_space<vmem>>, vector<1x104x128xf32>,
    return
  }
  func.func @transform_0(%arg0: i32) -> (i32, i32, i32) {
    %c0_i32 = arith.constant 0 : i32
    %c0_i32_0 = arith.constant 0 : i32
    %c0_i32_1 = arith.constant 0 : i32
    return %arg0, %c0_i32, %c0_i32_0 : i32, i32, i32
  }
  func.func @transform_1(%arg0: i32) -> (i32, i32) {
    %c0_i32 = arith.constant 0 : i32
    %c0_i32_0 = arith.constant 0 : i32
    %c0_i32_1 = arith.constant 0 : i32
    return %c0_i32, %c0_i32_0 : i32, i32
  }
  func.func @transform_2(%arg0: i32) -> (i32, i32) {
    %c0_i32 = arith.constant 0 : i32
    %c0_i32_0 = arith.constant 0 : i32
    %c0_i32_1 = arith.constant 0 : i32
    return %c0_i32, %c0_i32_0 : i32, i32
  }
  func.func @transform_3(%arg0: i32) -> (i32, i32, i32) {
    %c0_i32 = arith.constant 0 : i32
    %c0_i32_0 = arith.constant 0 : i32
    %c0_i32_1 = arith.constant 0 : i32
    %c0_i32_2 = arith.constant 0 : i32
    return %c0_i32, %c0_i32_0, %c0_i32_1 : i32, i32, i32
  }
  func.func @transform_4(%arg0: i32) -> (i32, i32) {
    %c0_i32 = arith.constant 0 : i32
    %c0_i32_0 = arith.constant 0 : i32
    %c0_i32_1 = arith.constant 0 : i32
    return %c0_i32, %c0_i32_0 : i32, i32
  }
  func.func @transform_5(%arg0: i32) -> (i32, i32) {
    %c0_i32 = arith.constant 0 : i32
    %c0_i32_0 = arith.constant 0 : i32
    %c0_i32_1 = arith.constant 0 : i32
    return %c0_i32, %c0_i32_0 : i32, i32
  }
  func.func @transform_6(%arg0: i32) -> (i32, i32, i32) {
    %c0_i32 = arith.constant 0 : i32
    %c0_i32_0 = arith.constant 0 : i32
    %c0_i32_1 = arith.constant 0 : i32
    %c0_i32_2 = arith.constant 0 : i32
    return %c0_i32, %c0_i32_0, %c0_i32_1 : i32, i32, i32
  }
  func.func @transform_7(%arg0: i32) -> (i32, i32) {
    %c0_i32 = arith.constant 0 : i32
    %c0_i32_0 = arith.constant 0 : i32
    %c0_i32_1 = arith.constant 0 : i32
    return %c0_i32, %c0_i32_0 : i32, i32
  }
  func.func @transform_8(%arg0: i32) -> (i32, i32) {
    %c0_i32 = arith.constant 0 : i32
    %c0_i32_0 = arith.constant 0 : i32
    %c0_i32_1 = arith.constant 0 : i32
    return %c0_i32, %c0_i32_0 : i32, i32
  }
  func.func @transform_9(%arg0: i32) -> (i32, i32) {
    %c0_i32 = arith.constant 0 : i32
    %c0_i32_0 = arith.constant 0 : i32
    %c0_i32_1 = arith.constant 0 : i32
    return %c0_i32, %c0_i32_0 : i32, i32
  }
  func.func @transform_10(%arg0: i32) -> (i32, i32) {
    %c0_i32 = arith.constant 0 : i32
    %c0_i32_0 = arith.constant 0 : i32
    %c0_i32_1 = arith.constant 0 : i32
    return %c0_i32, %c0_i32_0 : i32, i32
  }
  func.func @transform_11(%arg0: i32) -> (i32, i32, i32) {
    %c0_i32 = arith.constant 0 : i32
    %c0_i32_0 = arith.constant 0 : i32
    %c0_i32_1 = arith.constant 0 : i32
    return %arg0, %c0_i32, %c0_i32_0 : i32, i32, i32
  }
}

</mosaic_0001>

<bundles_post_ra>
// kernel: downsample_forward.1
= control target key start
LH: loop header
LB: loop body
LE: loop exit
PB: predicated region body
PF: predicated region fallthrough
CT: control target
= control target key end

     0   :  { %s6334_s17 = smov 0   ;;  %s8275_s0 = inlined_call_operand.vmem [shape: bf16[2,104,128], index: 0, kind: input, shape index: {}]   ;;  %s8276_s1 = inlined_call_operand.vmem [shape: f32[104,1], index: 1, kind: input, shape index: {}]   ;;  %s8277_s2 = inlined_call_operand.vmem [shape: bf16[128,128], index: 2, kind: input, shape index: {}]   ;;  %s8278_s3 = inlined_call_operand.vmem [shape: bf16[4,128,64], index: 3, kind: input, shape index: {}]   ;;  %s8279_s4 = inlined_call_operand.vmem [shape: bf16[64,128], index: 4, kind: input, shape index: {}]   ;;  %s8280_s5 = inlined_call_operand.vmem [shape: bf16[128,32], index: 5, kind: input, shape index: {}]   ;;  %s8281_s6 = inlined_call_operand.vmem [shape: bf16[9,32,64], index: 6, kind: input, shape index: {}]   ;;  %s8282_s7 = inlined_call_operand.vmem [shape: bf16[64,64], index: 7, kind: input, shape index: {}]   ;;  %s8283_s8 = inlined_call_operand.vmem [shape: bf16[64,128], index: 8, kind: input, shape index: {}]   ;;  %s8284_s9 = inlined_call_operand.vmem [shape: bf16[128,128], index: 9, kind: input, shape index: {}]   ;;  %s8285_s10 = inlined_call_operand.vmem [shape: f32[8,128], index: 10, kind: input, shape index: {}]   ;;  %s8286_s11 = inlined_call_operand.vmem [shape: f32[2,104,128], index: 11, kind: output, shape index: {}]  }
   0x1 LB: > { %s4579_s18 = sadd.s32 4294967295, %s6269_s17   ;;  %p4583_p0 = scmp.ge.s32.totalorder %s6269_s17, 1  ;;  %s6269_s17 = sphi %s6334_s17, %s21_s17  }
   0x2   : > { %p337_p1 = scmp.lt.s32.totalorder %s6269_s17, 3 }
   0x4   : > { %p338_p2 = pnand %p4583_p0, %p337_p1 }
   0x6   : > { %341 = sbr.rel (%p338_p2) target bundleno = 2082 (0x822), region = 64 }
   0xb   : > { %v5799_v0 = vld [vmem:[%s8277_s2 + $0x38] sm:$0xff]   ;;  %v6271_v1 = vmov 0.0   ;;  %v5800_v2 = vld [vmem:[%s8277_s2 + $0x30] sm:$0xff]   ;;  %p377_p3 = scmp.lt.s32.totalorder %s4579_s18, 1  ;;  %vm6272_vm0 = vmmov 0   ;;  %v6273_v3 = vmov 0   ;;  %v442_v46 = vlaneseq }
   0xc   : > { %404 = vst [vmem:[#allocation2 + $0x73] sm:$0xff] %v6271_v1  ;;  %5064 = vmatprep.subr.bf16.mxu0 %v6271_v1  ;;  %402 = vst [vmem:[#allocation2] sm:$0xff] %v6271_v1  ;;  %5768 = vmatprep.subr.bf16.mxu1 %v6271_v1  ;;  %v5801_v4 = vld [vmem:[%s8277_s2 + $0x28] sm:$0xff]   ;;  %v388_v5 = vld [vmem:[%s8276_s1] sm:$0xff]  ;;  %vm1724_vm1 = vcmask 523264   ;;  %vm406_vm2 = vcmask 261120  }
   0xd   : > { %403 = vst [vmem:[#allocation2 + $0x8] sm:$0x7] %v6271_v1  ;;  %5065 = vmatpush3.bf16.msra.mxu0 %v5799_v0  ;;  %5776 = vmatpush3.bf16.msra.mxu1 %v5799_v0  ;;  %s8298_s18 = smov (!%p377_p3, %s4579_s18), 1  ;;  %v5802_v6 = vld [vmem:[%s8277_s2 + $0x20] sm:$0xff]   ;;  %v389_v7 = vld [vmem:[%s8276_s1 + $0x8] sm:$0xff]  ;;  %v5803_v8 = vld [vmem:[%s8277_s2 + $0x18] sm:$0xff]  }
   0xe   : > { %5066 = vmatprep.subr.bf16.mxu0 %v6271_v1  ;;  %5769 = vmatprep.subr.bf16.mxu1 %v6271_v1  ;;  %s5784_s25 = smul.u32 52, %s8298_s18  ;;  %v392_v9 = vld [vmem:[%s8276_s1 + $0x20] sm:$0xff]  ;;  %v390_v10 = vld [vmem:[%s8276_s1 + $0x10] sm:$0xff]  ;;  %v391_v11 = vld [vmem:[%s8276_s1 + $0x18] sm:$0xff]  ;;  %v6523_v47 = vshrl.u32 %v442_v46, 7  ;;  %vm408_vm3 = vcmask 256000  }
   0xf   : > { %5080 = vmatprep.mubr.msk.bf16.mxu0 %vm6272_vm0, %v6271_v1  ;;  %5096 = vmatprep.mubr.msk.bf16.mxu1 %vm6272_vm0, %v6271_v1  ;;  %v5804_v12 = vld [vmem:[%s8277_s2 + $0x10] sm:$0xff]   ;;  %v393_v14 = vld [vmem:[%s8276_s1 + $0x28] sm:$0xff]  ;;  %v396_v16 = vld [vmem:[%s8276_s1 + $0x40] sm:$0xff]  ;;  %vm411_vm4 = vcmask 258048   ;;  %s5785_s24 = smul.u32 104, %s8298_s18 }
  0x10   : > { %5797 = vset.pattern.permute.xlu0 %v6273_v3  ;;  %5798 = vset.pattern.permute.xlu1 %v6273_v3  ;;  %s6370_s28 = scalar_lea.vmem %s8275_s0, %s5784_s25  ;;  %v394_v13 = vld [vmem:[%s8276_s1 + $0x30] sm:$0xff]  ;;  %v5805_v15 = vld [vmem:[%s8277_s2 + $0x8] sm:$0xff]   ;;  %v395_v17 = vld [vmem:[%s8276_s1 + $0x38] sm:$0xff]  ;;  %v444_v48 = vsub.s32 0, %v6523_v47 }
  0x11   : > { %5067 = vmatpush3.bf16.msra.mxu0 %v5800_v2  ;;  %5777 = vmatpush3.bf16.msra.mxu1 %v5800_v2  ;;  %v5806_v18 = vld [vmem:[%s8277_s2] sm:$0xff]   ;;  %v398_v19 = vld [vmem:[%s8276_s1 + $0x50] sm:$0xff]  ;;  %v397_v22 = vld [vmem:[%s8276_s1 + $0x48] sm:$0xff]  ;;  %s8229_s26 = scalar_lea.vmem %s8286_s11, %s5785_s24 }
  0x12   : > { %5068 = vmatprep.subr.bf16.mxu0 %v6271_v1  ;;  %5770 = vmatprep.subr.bf16.mxu1 %v6271_v1  ;;  %v5807_v20 = vld [vmem:[%s6370_s28] sm:$0xff]   ;;  %v399_v24 = vld [vmem:[%s8276_s1 + $0x58] sm:$0xff]  ;;  %v5809_v25 = vld [vmem:[%s6370_s28 + $0x8] sm:$0xff]  }
  0x13   : > { %741 = vperm.xlu0 %5797, %v388_v5   ;;  %751 = vperm.xlu1 %5798, %v390_v10   ;;  %v5808_v21 = vld [vmem:[%s6370_s28 + $0x20] sm:$0xff]   ;;  %v5810_v26 = vld [vmem:[%s6370_s28 + $0x28] sm:$0xff]   ;;  %v5811_v27 = vld [vmem:[%s6370_s28 + $0x10] sm:$0xff]  }
  0x14   : > { %v400_v23 = vld [vmem:[%s8276_s1 + $0x60] sm:$0xff]  ;;  %v5812_v28 = vld [vmem:[%s6370_s28 + $0x30] ss:$0 sps:$4 sm:$0xff]   ;;  %v5813_v29 = vld [vmem:[%s6370_s28 + $0x18] sm:$0xff]  }
  0x15   : > { %5069 = vmatpush3.bf16.msra.mxu0 %v5801_v4  ;;  %5778 = vmatpush3.bf16.msra.mxu1 %v5801_v4  ;;  %v5814_v30 = vld [vmem:[%s8278_s3 + $0x78] sm:$0xff]   ;;  %v5816_v32 = vld [vmem:[%s8278_s3 + $0x70] sm:$0xff]   ;;  %v5818_v34 = vld [vmem:[%s8278_s3 + $0x68] sm:$0xff]  }
  0x16   : > { %5070 = vmatprep.subr.bf16.mxu0 %v6271_v1  ;;  %5771 = vmatprep.subr.bf16.mxu1 %v6271_v1  ;;  %v5815_v31 = vld [vmem:[%s8278_s3 + $0x38] sm:$0xff]   ;;  %v5817_v33 = vld [vmem:[%s8278_s3 + $0x30] sm:$0xff]   ;;  %v5819_v35 = vld [vmem:[%s8278_s3 + $0x28] sm:$0xff]  }
  0x17   : > { %746 = vperm.xlu0 %5797, %v389_v7   ;;  %756 = vperm.xlu1 %5798, %v391_v11   ;;  %v5820_v36 = vld [vmem:[%s8278_s3 + $0x60] sm:$0xff]   ;;  %v5822_v38 = vld [vmem:[%s8278_s3 + $0x58] sm:$0xff]   ;;  %v5824_v40 = vld [vmem:[%s8278_s3 + $0x50] sm:$0xff]  }
  0x18   : > { %v5821_v37 = vld [vmem:[%s8278_s3 + $0x20] sm:$0xff]   ;;  %v5823_v39 = vld [vmem:[%s8278_s3 + $0x18] sm:$0xff]   ;;  %v5825_v41 = vld [vmem:[%s8278_s3 + $0x10] sm:$0xff]  }
  0x19   : > { %5071 = vmatpush3.bf16.msra.mxu0 %v5802_v6  ;;  %5779 = vmatpush3.bf16.msra.mxu1 %v5802_v6  ;;  %v5826_v42 = vld [vmem:[%s8278_s3 + $0x48] sm:$0xff]   ;;  %v5828_v44 = vld [vmem:[%s8278_s3 + $0x40] sm:$0xff]  }
  0x1a   : > { %5072 = vmatprep.subr.bf16.mxu0 %v6271_v1  ;;  %5772 = vmatprep.subr.bf16.mxu1 %v6271_v1  ;;  %v5827_v43 = vld [vmem:[%s8278_s3 + $0x8] sm:$0xff]   ;;  %v5829_v45 = vld [vmem:[%s8278_s3] sm:$0xff]  }
  0x1b   : > { %761 = vperm.xlu0 %5797, %v392_v9   ;;  %766 = vperm.xlu1 %5798, %v393_v14   ;;  %v6529_v49 = vld [vmem:[%s8285_s10] sm:$0xff] }
  0x1c   : > { %v6532_v50 = vrot.slane %v6529_v49, %v444_v48 }
  0x1d   : > { %5073 = vmatpush3.bf16.msra.mxu0 %v5803_v8  ;;  %5780 = vmatpush3.bf16.msra.mxu1 %v5803_v8 }
  0x1e   : > { %5074 = vmatprep.subr.bf16.mxu0 %v6271_v1  ;;  %5773 = vmatprep.subr.bf16.mxu1 %v6271_v1 }
  0x1f   : > { %771 = vperm.xlu0 %5797, %v394_v13   ;;  %776 = vperm.xlu1 %5798, %v395_v17  }
  0x21   : > { %5075 = vmatpush3.bf16.msra.mxu0 %v5804_v12  ;;  %5781 = vmatpush3.bf16.msra.mxu1 %v5804_v12 }
  0x22   : > { %5076 = vmatprep.subr.bf16.mxu0 %v6271_v1  ;;  %5774 = vmatprep.subr.bf16.mxu1 %v6271_v1 }
  0x23   : > { %781 = vperm.xlu0 %5797, %v396_v16   ;;  %786 = vperm.xlu1 %5798, %v397_v22  }
  0x25   : > { %5077 = vmatpush3.bf16.msra.mxu0 %v5805_v15  ;;  %5782 = vmatpush3.bf16.msra.mxu1 %v5805_v15 }
  0x26   : > { %5078 = vmatprep.subr.bf16.mxu0 %v6271_v1  ;;  %5775 = vmatprep.subr.bf16.mxu1 %v6271_v1 }
  0x27   : > { %791 = vperm.xlu0 %5797, %v398_v19   ;;  %796 = vperm.xlu1 %5798, %v399_v24  }
  0x29   : > { %5079 = vmatpush3.bf16.msra.mxu0 %v5806_v18  ;;  %5783 = vmatpush3.bf16.msra.mxu1 %v5806_v18 }
  0x2a   : > { %5108 = vmatprep.subr.bf16.mxu1 %v6271_v1  ;;  %5152 = vmatprep.subr.bf16.mxu0 %v6271_v1 }
  0x2b   : > { %801 = vperm.xlu0 %5797, %v400_v23  }
  0x2c   : > { %5081 = vmatmul.mubr.bf16.vlgmr.msra.gmra.mxu0 %v5807_v20  ;;  %5097 = vmatmul.mubr.bf16.vlgmr.msra.gmra.mxu1 %v5808_v21 }
  0x2d   : > { %5084 = vmatprep.mubr.msk.bf16.mxu0 %vm6272_vm0, %v6271_v1  ;;  %5100 = vmatprep.mubr.msk.bf16.mxu1 %vm6272_vm0, %v6271_v1 }
  0x2e   : > { %5109 = vmatpush3.bf16.msra.mxu1 %v5814_v30  ;;  %5153 = vmatpush3.bf16.msra.mxu0 %v5815_v31 }
  0x2f   : > { %5110 = vmatprep.subr.bf16.mxu1 %v6271_v1  ;;  %5154 = vmatprep.subr.bf16.mxu0 %v6271_v1 }
  0x32   : > { %5111 = vmatpush3.bf16.msra.mxu1 %v5816_v32  ;;  %5155 = vmatpush3.bf16.msra.mxu0 %v5817_v33 }
  0x33   : > { %5112 = vmatprep.subr.bf16.mxu1 %v6271_v1  ;;  %5156 = vmatprep.subr.bf16.mxu0 %v6271_v1 }
  0x34   : > { %5085 = vmatmul.mubr.bf16.gmra.mxu0 %v5809_v25  ;;  %5101 = vmatmul.mubr.bf16.gmra.mxu1 %v5810_v26 }
  0x35   : > { %5088 = vmatprep.mubr.msk.bf16.mxu0 %vm6272_vm0, %v6271_v1  ;;  %5104 = vmatprep.mubr.msk.bf16.mxu1 %vm6272_vm0, %v6271_v1 }
  0x36   : > { %5113 = vmatpush3.bf16.msra.mxu1 %v5818_v34  ;;  %5157 = vmatpush3.bf16.msra.mxu0 %v5819_v35 }
  0x37   : > { %5114 = vmatprep.subr.bf16.mxu1 %v6271_v1  ;;  %5158 = vmatprep.subr.bf16.mxu0 %v6271_v1 }
  0x3a   : > { %5115 = vmatpush3.bf16.msra.mxu1 %v5820_v36  ;;  %5159 = vmatpush3.bf16.msra.mxu0 %v5821_v37 }
  0x3b   : > { %5116 = vmatprep.subr.bf16.mxu1 %v6271_v1  ;;  %5160 = vmatprep.subr.bf16.mxu0 %v6271_v1 }
  0x3c   : > { %5089 = vmatmul.mubr.bf16.gmra.mxu0 %v5811_v27  ;;  %5105 = vmatmul.mubr.bf16.gmra.mxu1 %v5812_v28 }
  0x3d   : > { %5092 = vmatprep.mubr.msk.bf16.mxu0 %vm6272_vm0, %v6271_v1  ;;  %5124 = vmatprep.mubr.msk.bf16.mxu1 %vm6272_vm0, %v6271_v1 }
  0x3e   : > { %5117 = vmatpush3.bf16.msra.mxu1 %v5822_v38  ;;  %5161 = vmatpush3.bf16.msra.mxu0 %v5823_v39 }
  0x3f   : > { %5118 = vmatprep.subr.bf16.mxu1 %v6271_v1  ;;  %5162 = vmatprep.subr.bf16.mxu0 %v6271_v1 }
  0x42   : > { %5119 = vmatpush3.bf16.msra.mxu1 %v5824_v40  ;;  %5163 = vmatpush3.bf16.msra.mxu0 %v5825_v41 }
  0x43   : > { %5120 = vmatprep.subr.bf16.mxu1 %v6271_v1  ;;  %5164 = vmatprep.subr.bf16.mxu0 %v6271_v1 }
  0x44   : > { %5093 = vmatmul.mubr.bf16.gmra.mxu0 %v5813_v29 }
  0x45   : > { %5168 = vmatprep.mubr.msk.bf16.mxu0 %vm6272_vm0, %v6271_v1 }
  0x46   : > { %5121 = vmatpush3.bf16.msra.mxu1 %v5826_v42  ;;  %5165 = vmatpush3.bf16.msra.mxu0 %v5827_v43 }
  0x47   : > { %5122 = vmatprep.subr.bf16.mxu1 %v6271_v1  ;;  %5166 = vmatprep.subr.bf16.mxu0 %v6271_v1 }
  0x4a   : > { %5123 = vmatpush3.bf16.msra.mxu1 %v5828_v44  ;;  %5167 = vmatpush3.bf16.msra.mxu0 %v5829_v45 }
  0x4b   : > { %5196 = vmatprep.subr.bf16.mxu1 %v6271_v1  ;;  %5240 = vmatprep.subr.bf16.mxu0 %v6271_v1 }
  0x8e   : > { %v6574_v35 = vpop.permute.xlu0 %741  ;;  %v6579_v44 = vpop.permute.xlu1 %751 }
  0xec   : > { %v568_v51 = vpop.f32.mrf.mxu0  ;;  %v600_v52 = vpop.f32.mrf.mxu1 }
  0xed   : > { %v6535_v53 = vadd.f32 %v568_v51, %v6532_v50  ;;  %v6538_v54 = vadd.f32 %v600_v52, %v6532_v50 }
  0xee   : > { %v5082_v55 = vpop.f32.mrf.mxu0  ;;  %v5098_v56 = vpop.f32.mrf.mxu1 }
  0xef   : > { %v622_v57 = vmin.f32 %v6535_v53, 20.0  ;;  %v630_v58 = vmin.f32 %v6538_v54, 20.0 }
  0xf0   : > { %v571_v59 = vpop.f32.mrf.mxu0  ;;  %v603_v60 = vpop.f32.mrf.mxu1 }
  0xf1   : > { %v635_v61 = vmul.f32 1.442695, %v622_v57  ;;  %v651_v62 = vmul.f32 1.442695, %v630_v58  ;;  %v6543_v63 = vadd.f32 %v571_v59, %v6532_v50  ;;  %v6546_v0 = vadd.f32 %v603_v60, %v6532_v50 }
  0xf2   : > { %v5083_v1 = vpop.f32.mrf.mxu0  ;;  %v5099_v2 = vpop.f32.mrf.mxu1 }
  0xf3   : > { %5892 = vpow2.f32 %v635_v61  ;;  %v623_v3 = vmin.f32 %v6543_v63, 20.0  ;;  %v631_v4 = vmin.f32 %v6546_v0, 20.0 }
  0xf4   : > { %5894 = vpow2.f32 %v651_v62  ;;  %v576_v5 = vpop.f32.mrf.mxu0  ;;  %v608_v6 = vpop.f32.mrf.mxu1 }
  0xf5   : > { %v637_v7 = vmul.f32 1.442695, %v623_v3  ;;  %v653_v8 = vmul.f32 1.442695, %v631_v4  ;;  %v6551_v9 = vadd.f32 %v576_v5, %v6532_v50  ;;  %v6554_v10 = vadd.f32 %v608_v6, %v6532_v50  ;;  %v6582_v62 = vpop.permute.xlu0 %746  ;;  %v6587_v6 = vpop.permute.xlu1 %756 }
  0xf6   : > { %v5086_v11 = vpop.f32.mrf.mxu0  ;;  %v5102_v12 = vpop.f32.mrf.mxu1 }
  0xf7   : > { %5896 = vpow2.f32 %v637_v7  ;;  %v624_v13 = vmin.f32 %v6551_v9, 20.0  ;;  %v632_v14 = vmin.f32 %v6554_v10, 20.0 }
  0xf8   : > { %5898 = vpow2.f32 %v653_v8  ;;  %v579_v15 = vpop.f32.mrf.mxu0  ;;  %v611_v16 = vpop.f32.mrf.mxu1 }
  0xf9   : > { %v639_v17 = vmul.f32 1.442695, %v624_v13  ;;  %v655_v18 = vmul.f32 1.442695, %v632_v14  ;;  %v6559_v19 = vadd.f32 %v579_v15, %v6532_v50  ;;  %v6562_v20 = vadd.f32 %v611_v16, %v6532_v50 }
  0xfa   : > { %v5087_v21 = vpop.f32.mrf.mxu0  ;;  %v5103_v22 = vpop.f32.mrf.mxu1 }
  0xfb   : > { %5900 = vpow2.f32 %v639_v17  ;;  %v625_v23 = vmin.f32 %v6559_v19, 20.0  ;;  %v633_v24 = vmin.f32 %v6562_v20, 20.0 }
  0xfc   : > { %5902 = vpow2.f32 %v655_v18  ;;  %v584_v25 = vpop.f32.mrf.mxu0  ;;  %v616_v26 = vpop.f32.mrf.mxu1 }
  0xfd   : > { %v641_v27 = vmul.f32 1.442695, %v625_v23  ;;  %v657_v28 = vmul.f32 1.442695, %v633_v24  ;;  %v6567_v29 = vadd.f32 %v584_v25, %v6532_v50  ;;  %v6570_v30 = vadd.f32 %v616_v26, %v6532_v50  ;;  %v6590_v23 = vpop.permute.xlu0 %761 }
  0xfe   : > { %v5090_v31 = vpop.f32.mrf.mxu0  ;;  %v5106_v32 = vpop.f32.mrf.mxu1 }
  0xff   : > { %5904 = vpow2.f32 %v641_v27  ;;  %v626_v33 = vmin.f32 %v6567_v29, 20.0  ;;  %v634_v34 = vmin.f32 %v6570_v30, 20.0  ;;  %v6595_v32 = vpop.permute.xlu1 %766 }
 0x100   : > { %v5893_v36 = vpop.eup %5892  ;;  %5906 = vpow2.f32 %v657_v28  ;;  %v587_v37 = vpop.f32.mrf.mxu0 }
 0x101   : > { %v619_v38 = vpop.f32.mrf.mxu1  ;;  %v5895_v39 = vpop.eup %5894  ;;  %v661_v40 = vadd.f32 2.0, %v5893_v36  ;;  %v643_v41 = vmul.f32 1.442695, %v626_v33  ;;  %v659_v42 = vmul.f32 1.442695, %v634_v34  ;;  %v6577_v43 = vadd.f32 %v587_v37, %v6532_v50 }
 0x102   : > { %v669_v45 = vadd.f32 2.0, %v5895_v39  ;;  %v5091_v46 = vpop.f32.mrf.mxu0 }
 0x103   : > { %v5107_v48 = vpop.f32.mrf.mxu1  ;;  %v674_v51 = vmul.f32 %v5893_v36, %v661_v40  ;;  %5908 = vpow2.f32 %v643_v41  ;;  %v627_v52 = vmin.f32 %v6577_v43, 20.0 }
 0x104   : > { %v5897_v55 = vpop.eup %5896  ;;  %v682_v56 = vmul.f32 %v5895_v39, %v669_v45  ;;  %5910 = vpow2.f32 %v659_v42  ;;  %v592_v57 = vpop.f32.mrf.mxu0 }
 0x105   : > { %v5899_v58 = vpop.eup %5898  ;;  %v700_v59 = vadd.f32 2.0, %v674_v51  ;;  %v662_v60 = vadd.f32 2.0, %v5897_v55  ;;  %v645_v61 = vmul.f32 1.442695, %v627_v52  ;;  %v6585_v3 = vadd.f32 %v592_v57, %v6532_v50  ;;  %v6600_v45 = vpop.permute.xlu0 %771 }
 0x106   : > { %v708_v1 = vadd.f32 2.0, %v682_v56  ;;  %v670_v2 = vadd.f32 2.0, %v5899_v58  ;;  %v5094_v4 = vpop.f32.mrf.mxu0  ;;  %v687_v52 = vmul.f32 %v674_v51, %v6535_v53  ;;  %v6606_v57 = vpop.permute.xlu1 %776 }
 0x107   : > { %5912 = vrcp.f32 %v700_v59  ;;  %v675_v5 = vmul.f32 %v5897_v55, %v662_v60  ;;  %v628_v11 = vmin.f32 %v6585_v3, 20.0  ;;  %v695_v59 = vmul.f32 %v682_v56, %v6538_v54 }
 0x108   : > { %v5901_v7 = vpop.eup %5900  ;;  %5914 = vrcp.f32 %v708_v1  ;;  %v683_v8 = vmul.f32 %v5899_v58, %v670_v2  ;;  %v595_v12 = vpop.f32.mrf.mxu0 }
 0x109   : > { %v5903_v13 = vpop.eup %5902  ;;  %v701_v14 = vadd.f32 2.0, %v675_v5  ;;  %v663_v15 = vadd.f32 2.0, %v5901_v7  ;;  %5916 = vpow2.f32 %v645_v61  ;;  %v647_v18 = vmul.f32 1.442695, %v628_v11 }
 0x10a   : > { %v709_v16 = vadd.f32 2.0, %v683_v8  ;;  %v671_v17 = vadd.f32 2.0, %v5903_v13  ;;  %v5095_v21 = vpop.f32.mrf.mxu0  ;;  %v6593_v24 = vadd.f32 %v595_v12, %v6532_v50  ;;  %v688_v12 = vmul.f32 %v675_v5, %v6543_v63  ;;  %v6623_v5 = vpop.permute.xlu1 %786 }
 0x10b   : > { %5918 = vrcp.f32 %v701_v14  ;;  %v676_v22 = vmul.f32 %v5901_v7, %v663_v15  ;;  %v696_v54 = vmul.f32 %v683_v8, %v6546_v0 }
 0x10c   : > { %v5905_v25 = vpop.eup %5904  ;;  %5920 = vrcp.f32 %v709_v16  ;;  %v684_v26 = vmul.f32 %v5903_v13, %v671_v17  ;;  %v629_v36 = vmin.f32 %v6593_v24, 20.0  ;;  %v6614_v13 = vpop.permute.xlu0 %781 }
 0x10d   : > { %v5907_v27 = vpop.eup %5906  ;;  %v702_v28 = vadd.f32 2.0, %v676_v22  ;;  %v664_v31 = vadd.f32 2.0, %v5905_v25  ;;  %5922 = vpow2.f32 %v647_v18  ;;  %v689_v21 = vmul.f32 %v676_v22, %v6551_v9  ;;  %v866_v22 = vld [vmem:[#allocation2 + $0x1] sm:$0xff] }
 0x10e   : > { %v710_v33 = vadd.f32 2.0, %v684_v26  ;;  %v672_v34 = vadd.f32 2.0, %v5907_v27  ;;  %v649_v50 = vmul.f32 1.442695, %v629_v36 }
 0x10f   : > { %5924 = vrcp.f32 %v702_v28  ;;  %v677_v37 = vmul.f32 %v5905_v25, %v664_v31  ;;  %v697_v28 = vmul.f32 %v684_v26, %v6554_v10 }
 0x110   : > { %v5909_v38 = vpop.eup %5908  ;;  %5926 = vrcp.f32 %v710_v33  ;;  %v6598_v39 = vmul.f32 %v5907_v27, %v672_v34 }
 0x111   : > { %v5911_v40 = vpop.eup %5910  ;;  %v703_v41 = vadd.f32 2.0, %v677_v37  ;;  %v665_v42 = vadd.f32 2.0, %v5909_v38  ;;  %5928 = vpow2.f32 %v649_v50  ;;  %v690_v10 = vmul.f32 %v677_v37, %v6559_v19 }
 0x112   : > { %v711_v46 = vadd.f32 2.0, %v6598_v39  ;;  %v673_v48 = vadd.f32 2.0, %v5911_v40 }
 0x113   : > { %5930 = vrcp.f32 %v703_v41  ;;  %v6604_v55 = vmul.f32 %v5909_v38, %v665_v42  ;;  %v6646_v41 = vpop.permute.xlu0 %791  ;;  %v5830_v42 = vld [vmem:[%s8278_s3 + $0xb8] sm:$0xff]  }
 0x114   : > { %v5913_v58 = vpop.eup %5912  ;;  %5932 = vrcp.f32 %v711_v46  ;;  %v686_v60 = vmul.f32 %v5911_v40, %v673_v48  ;;  %v698_v48 = vmul.f32 %v6598_v39, %v6562_v20 }
 0x115   : > { %v5915_v61 = vpop.eup %5914  ;;  %v704_v1 = vadd.f32 2.0, %v6604_v55  ;;  %v726_v2 = vmul.f32 %v5913_v58, %v687_v52 }
 0x116   : > { %v5917_v4 = vpop.eup %5916  ;;  %v712_v7 = vadd.f32 2.0, %v686_v60  ;;  %v734_v11 = vmul.f32 %v5915_v61, %v695_v59  ;;  %v5831_v59 = vld [vmem:[%s8278_s3 + $0xf8] sm:$0xff]   ;;  %v699_v39 = vmul.f32 %v686_v60, %v6570_v30  ;;  %v5832_v60 = vld [vmem:[%s8278_s3 + $0xb0] sm:$0xff]  }
 0x117   : > { %5934 = vrcp.f32 %v704_v1  ;;  %v6612_v53 = vmul.f32 %v6574_v35, %v726_v2  ;;  %v666_v51 = vadd.f32 2.0, %v5917_v4 }
 0x118   : > { %v5919_v14 = vpop.eup %5918  ;;  %5936 = vrcp.f32 %v712_v7  ;;  %v6618_v56 = vmul.f32 %v6614_v13, %v734_v11 }
 0x119   : > { %v5921_v15 = vpop.eup %5920  ;;  %817 = vst [vmem:[#allocation2 + $0xb] sm:$0xff] %v6612_v53  ;;  %v6621_v16 = vmul.f32 %v5917_v4, %v666_v51  ;;  %v727_v63 = vmul.f32 %v5919_v14, %v688_v12  ;;  %v6660_v4 = vld [vmem:[#allocation2 + $0x73] sm:$0xff]  ;;  %v691_v12 = vmul.f32 %v6604_v55, %v6567_v29  ;;  %v6672_v14 = vpop.permute.xlu1 %796 }
 0x11a   : > { %v5923_v17 = vpop.eup %5922  ;;  %825 = vst [vmem:[#allocation2 + $0x4b] sm:$0xff] %v6618_v56  ;;  %v735_v18 = vmul.f32 %v5921_v15, %v696_v54  ;;  %v5833_v29 = vld [vmem:[%s8278_s3 + $0xf0] sm:$0xff]  }
 0x11b   : > { %v705_v0 = vadd.f32 2.0, %v6621_v16  ;;  %v6629_v8 = vmul.f32 %v6582_v62, %v727_v63  ;;  %v667_v25 = vadd.f32 2.0, %v5923_v17 }
 0x11c   : > { %v5925_v27 = vpop.eup %5924  ;;  %v6633_v31 = vmul.f32 %v6623_v5, %v735_v18 }
 0x11d   : > { %v5927_v33 = vpop.eup %5926  ;;  %5938 = vrcp.f32 %v705_v0  ;;  %818 = vst [vmem:[#allocation2 + $0x13] sm:$0xff] %v6629_v8  ;;  %v6636_v34 = vmul.f32 %v5923_v17, %v667_v25  ;;  %v728_v36 = vmul.f32 %v5925_v27, %v689_v21  ;;  %v6697_v0 = vpop.permute.xlu0 %801  ;;  %v5834_v27 = vld [vmem:[%s8278_s3 + $0xa8] sm:$0xff]  }
 0x11e   : > { %v736_v9 = vmul.f32 %v5927_v33, %v697_v28  ;;  %826 = vst [vmem:[#allocation2 + $0x53] sm:$0xff] %v6633_v31  ;;  %v1378_v38 = vpack.c.bf16 %v6633_v31, %v6618_v56  ;;  %v5929_v50 = vpop.eup %5928 }
 0x11f   : > { %v706_v26 = vadd.f32 2.0, %v6636_v34  ;;  %v6644_v40 = vmul.f32 %v6579_v44, %v728_v36  ;;  %v668_v52 = vadd.f32 2.0, %v5929_v50 }
 0x120   : > { %v5931_v46 = vpop.eup %5930  ;;  %v6654_v58 = vmul.f32 %v6646_v41, %v736_v9  ;;  %v867_v19 = vld [vmem:[#allocation2 + $0x9] sm:$0xff] }
 0x121   : > { %v831_v37 = vld [vmem:[#allocation2 + $0x8] sm:$0xff]  ;;  %v5933_v61 = vpop.eup %5932  ;;  %5940 = vrcp.f32 %v706_v26  ;;  %819 = vst [vmem:[#allocation2 + $0x1b] sm:$0xff] %v6644_v40  ;;  %v729_v1 = vmul.f32 %v5931_v46, %v690_v10  ;;  %v879_v2 = vpack.c.bf16 %v867_v19, %v866_v22  ;;  %v6664_v7 = vmul.f32 %v5929_v50, %v668_v52  ;;  %v5837_v52 = vld [vmem:[%s8278_s3 + $0xe0] sm:$0xff]  }
 0x122   : > { %v843_v20 = vpack.c.bf16 %v831_v37, %v6660_v4  ;;  %827 = vst [vmem:[#allocation2 + $0x5b] sm:$0xff] %v6654_v58  ;;  %v737_v11 = vmul.f32 %v5933_v61, %v698_v48  ;;  %v692_v22 = vmul.f32 %v6621_v16, %v6577_v43  ;;  %v5835_v26 = vld [vmem:[%s8278_s3 + $0xe8] sm:$0xff]   ;;  %v5836_v43 = vld [vmem:[%s8278_s3 + $0xa0] sm:$0xff]   ;;  %v693_v16 = vmul.f32 %v6636_v34, %v6585_v3 }
 0x123   : > { %v6670_v51 = vmul.f32 %v6587_v6, %v729_v1  ;;  %5125 = vmatmul.mubr.bf16.vlgmr.msra.gmra.mxu1 %v879_v2  ;;  %v707_v15 = vadd.f32 2.0, %v6664_v7 }
 0x124   : > { %5169 = vmatmul.mubr.bf16.vlgmr.msra.gmra.mxu0 %v843_v20  ;;  %v5935_v54 = vpop.eup %5934  ;;  %v6676_v30 = vmul.f32 %v6672_v14, %v737_v11  ;;  %5197 = vmatpush3.bf16.msra.mxu1 %v5830_v42  ;;  %v868_v25 = vld [vmem:[#allocation2 + $0x11] sm:$0xff] }
 0x125   : > { %5241 = vmatpush3.bf16.msra.mxu0 %v5831_v59  ;;  %v5937_v55 = vpop.eup %5936  ;;  %v730_v63 = vmul.f32 %v5935_v54, %v691_v12  ;;  %820 = vst [vmem:[#allocation2 + $0x23] sm:$0xff] %v6670_v51  ;;  %5198 = vmatprep.subr.bf16.mxu1 %v6660_v4  ;;  %5942 = vrcp.f32 %v707_v15  ;;  %v832_v36 = vld [vmem:[#allocation2 + $0x10] sm:$0xff]  ;;  %v5839_v11 = vld [vmem:[%s8278_s3 + $0xd8] sm:$0xff]   ;;  %v694_v12 = vmul.f32 %v6664_v7, %v6593_v24 }
 0x126   : > { %5128 = vmatprep.mubr.msk.bf16.mxu1 %vm6272_vm0, %v6660_v4  ;;  %v738_v17 = vmul.f32 %v5937_v55, %v699_v39  ;;  %828 = vst [vmem:[#allocation2 + $0x63] sm:$0xff] %v6676_v30  ;;  %5172 = vmatprep.mubr.msk.bf16.mxu0 %vm6272_vm0, %v6660_v4  ;;  %v1379_v18 = vpack.c.bf16 %v6676_v30, %v6654_v58  ;;  %v5838_v39 = vld [vmem:[%s8278_s3 + $0x98] sm:$0xff]   ;;  %v5840_v24 = vld [vmem:[%s8278_s3 + $0x90] sm:$0xff]  }
 0x127   : > { %5242 = vmatprep.subr.bf16.mxu0 %v6660_v4  ;;  %v6695_v21 = vmul.f32 %v6590_v23, %v730_v63  ;;  %v5841_v7 = vld [vmem:[%s8278_s3 + $0xd0] sm:$0xff]   ;;  %v5846_v58 = vld [vmem:[%s8279_s4 + $0x18] sm:$0xff]  }
 0x128   : > { %v6703_v28 = vmul.f32 %v6697_v0, %v738_v17  ;;  %5199 = vmatpush3.bf16.msra.mxu1 %v5832_v60  ;;  %v869_v33 = vld [vmem:[#allocation2 + $0x19] sm:$0xff]  ;;  %v5847_v30 = vld [vmem:[%s8279_s4 + $0x10] sm:$0xff]  }
 0x129   : > { %v833_v9 = vld [vmem:[#allocation2 + $0x18] sm:$0xff]  ;;  %5243 = vmatpush3.bf16.msra.mxu0 %v5833_v29  ;;  %821 = vst [vmem:[#allocation2 + $0x2b] sm:$0xff] %v6695_v21  ;;  %v880_v50 = vpack.c.bf16 %v869_v33, %v868_v25  ;;  %5200 = vmatprep.subr.bf16.mxu1 %v6660_v4  ;;  %v5842_v33 = vld [vmem:[%s8278_s3 + $0x88] sm:$0xff]  }
 0x12a   : > { %v844_v10 = vpack.c.bf16 %v833_v9, %v832_v36  ;;  %5244 = vmatprep.subr.bf16.mxu0 %v6660_v4  ;;  %v5939_v42 = vpop.eup %5938  ;;  %829 = vst [vmem:[#allocation2 + $0x6b] sm:$0xff] %v6703_v28  ;;  %v5843_v36 = vld [vmem:[%s8278_s3 + $0xc8] sm:$0xff]  }
 0x12b   : > { %v731_v46 = vmul.f32 %v5939_v42, %v692_v22  ;;  %5129 = vmatmul.mubr.bf16.gmra.mxu1 %v880_v50  ;;  %v5844_v22 = vld [vmem:[%s8278_s3 + $0x80] sm:$0xff]  }
 0x12c   : > { %5173 = vmatmul.mubr.bf16.gmra.mxu0 %v844_v10  ;;  %5201 = vmatpush3.bf16.msra.mxu1 %v5834_v27  ;;  %v870_v3 = vld [vmem:[#allocation2 + $0x21] sm:$0xff] }
 0x12d   : > { %5132 = vmatprep.mubr.msk.bf16.mxu1 %vm6272_vm0, %v6660_v4  ;;  %v6722_v48 = vmul.f32 %v6595_v32, %v731_v46  ;;  %5176 = vmatprep.mubr.msk.bf16.mxu0 %vm6272_vm0, %v6660_v4  ;;  %v834_v59 = vld [vmem:[#allocation2 + $0x20] sm:$0xff] }
 0x12e   : > { %5245 = vmatpush3.bf16.msra.mxu0 %v5835_v26  ;;  %v5941_v19 = vpop.eup %5940  ;;  %5202 = vmatprep.subr.bf16.mxu1 %v6660_v4  ;;  %v5845_v50 = vld [vmem:[%s8278_s3 + $0xc0] sm:$0xff]  }
 0x12f   : > { %5246 = vmatprep.subr.bf16.mxu0 %v6660_v4  ;;  %v732_v37 = vmul.f32 %v5941_v19, %v693_v16  ;;  %822 = vst [vmem:[#allocation2 + $0x33] sm:$0xff] %v6722_v48  ;;  %v877_v16 = vld [vmem:[#allocation2 + $0x59] sm:$0xff]  ;;  %v876_v19 = vld [vmem:[#allocation2 + $0x51] sm:$0xff] }
 0x130   : > { %v871_v34 = vld [vmem:[#allocation2 + $0x29] sm:$0xff]  ;;  %5203 = vmatpush3.bf16.msra.mxu1 %v5836_v43 }
 0x131   : > { %v835_v61 = vld [vmem:[#allocation2 + $0x28] sm:$0xff]  ;;  %v6733_v1 = vmul.f32 %v6600_v45, %v732_v37  ;;  %v881_v2 = vpack.c.bf16 %v871_v34, %v870_v3  ;;  %5204 = vmatprep.subr.bf16.mxu1 %v6660_v4  ;;  %v840_v37 = vld [vmem:[#allocation2 + $0x50] sm:$0xff]  ;;  %v884_v3 = vpack.c.bf16 %v877_v16, %v876_v19 }
 0x132   : > { %v845_v20 = vpack.c.bf16 %v835_v61, %v834_v59  ;;  %5247 = vmatpush3.bf16.msra.mxu0 %v5837_v52  ;;  %v5943_v54 = vpop.eup %5942  ;;  %v841_v52 = vld [vmem:[#allocation2 + $0x58] sm:$0xff]  ;;  %v878_v59 = vld [vmem:[#allocation2 + $0x61] sm:$0xff]  ;;  %v1187_v56 = vld [vmem:[#allocation2 + $0x6a] sm:$0xff] }
 0x133   : > { %5248 = vmatprep.subr.bf16.mxu0 %v6660_v4  ;;  %823 = vst [vmem:[#allocation2 + $0x3b] sm:$0xff] %v6733_v1  ;;  %5133 = vmatmul.mubr.bf16.gmra.mxu1 %v881_v2  ;;  %v733_v15 = vmul.f32 %v5943_v54, %v694_v12  ;;  %v848_v34 = vpack.c.bf16 %v841_v52, %v840_v37  ;;  %v842_v61 = vld [vmem:[#allocation2 + $0x60] sm:$0xff] }
 0x134   : > { %5177 = vmatmul.mubr.bf16.gmra.mxu0 %v845_v20  ;;  %5136 = vmatprep.mubr.msk.bf16.mxu1 %vm6272_vm0, %v6660_v4  ;;  %v885_v2 = vpack.c.bf16 %v878_v59, %v878_v59  ;;  %v849_v20 = vpack.c.bf16 %v842_v61, %v842_v61  ;;  %v1374_v54 = vpack.c.bf16 %v6629_v8, %v6612_v53  ;;  %v1179_v8 = vld [vmem:[#allocation2 + $0x2a] sm:$0xff] }
 0x135   : > { %5180 = vmatprep.mubr.msk.bf16.mxu0 %vm6272_vm0, %v6660_v4  ;;  %5205 = vmatpush3.bf16.msra.mxu1 %v5838_v39  ;;  %v6757_v60 = vmul.f32 %v6606_v57, %v733_v15  ;;  %v1176_v39 = vld [vmem:[#allocation2 + $0x12] sm:$0xff]  ;;  %v1178_v15 = vld [vmem:[#allocation2 + $0x22] sm:$0xff]  ;;  %v1194_v31 = vpack.c.bf16 %v1187_v56, %v1187_v56 }
 0x136   : > { %5249 = vmatpush3.bf16.msra.mxu0 %v5839_v11  ;;  %5206 = vmatprep.subr.bf16.mxu1 %v6660_v4  ;;  %v872_v29 = vld [vmem:[#allocation2 + $0x31] sm:$0xff] }
 0x137   : > { %5250 = vmatprep.subr.bf16.mxu0 %v6660_v4  ;;  %824 = vst [vmem:[#allocation2 + $0x43] sm:$0xff] %v6757_v60  ;;  %v836_v63 = vld [vmem:[#allocation2 + $0x30] sm:$0xff] }
 0x138   : > { %v1175_v11 = vld [vmem:[#allocation2 + $0xa] sm:$0xff]  ;;  %v1180_v53 = vld [vmem:[#allocation2 + $0x32] sm:$0xff] }
 0x139   : > { %5207 = vmatpush3.bf16.msra.mxu1 %v5840_v24  ;;  %v1188_v12 = vpack.c.bf16 %v1176_v39, %v1175_v11  ;;  %v1177_v24 = vld [vmem:[#allocation2 + $0x1a] sm:$0xff] }
 0x13a   : > { %5251 = vmatpush3.bf16.msra.mxu0 %v5841_v7  ;;  %v873_v55 = vld [vmem:[#allocation2 + $0x39] sm:$0xff]  ;;  %5208 = vmatprep.subr.bf16.mxu1 %v6660_v4  ;;  %v1189_v7 = vpack.c.bf16 %v1178_v15, %v1177_v24 }
 0x13b   : > { %v837_v17 = vld [vmem:[#allocation2 + $0x38] sm:$0xff]  ;;  %5252 = vmatprep.subr.bf16.mxu0 %v6660_v4  ;;  %v882_v25 = vpack.c.bf16 %v873_v55, %v872_v29  ;;  %v1375_v29 = vpack.c.bf16 %v6670_v51, %v6644_v40  ;;  %v1190_v55 = vpack.c.bf16 %v1180_v53, %v1179_v8 }
 0x13c   : > { %v846_v27 = vpack.c.bf16 %v837_v17, %v836_v63  ;;  %v1376_v63 = vpack.c.bf16 %v6722_v48, %v6695_v21  ;;  %v1181_v51 = vld [vmem:[#allocation2 + $0x3a] sm:$0xff]  ;;  %v1184_v48 = vld [vmem:[#allocation2 + $0x52] sm:$0xff] }
 0x13d   : > { %5137 = vmatmul.mubr.bf16.gmra.mxu1 %v882_v25  ;;  %v1377_v25 = vpack.c.bf16 %v6757_v60, %v6733_v1  ;;  %v1186_v1 = vld [vmem:[#allocation2 + $0x62] sm:$0xff]  ;;  %v1185_v60 = vld [vmem:[#allocation2 + $0x5a] sm:$0xff] }
 0x13e   : > { %5181 = vmatmul.mubr.bf16.gmra.mxu0 %v846_v27  ;;  %5140 = vmatprep.mubr.msk.bf16.mxu1 %vm6272_vm0, %v6660_v4  ;;  %v874_v9 = vld [vmem:[#allocation2 + $0x41] sm:$0xff]  ;;  %v875_v10 = vld [vmem:[#allocation2 + $0x49] sm:$0xff] }
 0x13f   : > { %5184 = vmatprep.mubr.msk.bf16.mxu0 %vm6272_vm0, %v6660_v4  ;;  %5209 = vmatpush3.bf16.msra.mxu1 %v5842_v33  ;;  %v838_v26 = vld [vmem:[#allocation2 + $0x40] sm:$0xff]  ;;  %v839_v42 = vld [vmem:[#allocation2 + $0x48] sm:$0xff]  ;;  %v883_v46 = vpack.c.bf16 %v875_v10, %v874_v9  ;;  %v1193_v33 = vpack.c.bf16 %v1186_v1, %v1185_v60 }
 0x140   : > { %5253 = vmatpush3.bf16.msra.mxu0 %v5843_v36  ;;  %5210 = vmatprep.subr.bf16.mxu1 %v6660_v4  ;;  %v847_v43 = vpack.c.bf16 %v839_v42, %v838_v26  ;;  %v1182_v40 = vld [vmem:[#allocation2 + $0x42] sm:$0xff]  ;;  %v1183_v21 = vld [vmem:[#allocation2 + $0x4a] sm:$0xff] }
 0x141   : > { %5254 = vmatprep.subr.bf16.mxu0 %v6660_v4  ;;  %v1191_v17 = vpack.c.bf16 %v1182_v40, %v1181_v51  ;;  %v1192_v27 = vpack.c.bf16 %v1184_v48, %v1183_v21  ;;  %v5850_v51 = vld [vmem:[%s8280_s5 + $0x38] sm:$0xff]  }
 0x143   : > { %5211 = vmatpush3.bf16.msra.mxu1 %v5844_v22 }
 0x144   : > { %5255 = vmatpush3.bf16.msra.mxu0 %v5845_v50  ;;  %5284 = vmatprep.subr.bf16.mxu1 %v6660_v4 }
 0x145   : > { %5320 = vmatprep.subr.bf16.mxu0 %v6660_v4  ;;  %5141 = vmatmul.mubr.bf16.gmra.mxu1 %v883_v46 }
 0x146   : > { %5185 = vmatmul.mubr.bf16.gmra.mxu0 %v847_v43  ;;  %5144 = vmatprep.mubr.msk.bf16.mxu1 %vm6272_vm0, %v6660_v4 }
 0x147   : > { %5188 = vmatprep.mubr.msk.bf16.mxu0 %vm6272_vm0, %v6660_v4 }
 0x14d   : > { %5145 = vmatmul.mubr.bf16.gmra.mxu1 %v884_v3 }
 0x14e   : > { %5189 = vmatmul.mubr.bf16.gmra.mxu0 %v848_v34  ;;  %5148 = vmatprep.mubr.msk.bf16.mxu1 %vm6272_vm0, %v6660_v4 }
 0x14f   : > { %5192 = vmatprep.mubr.msk.bf16.mxu0 %vm6272_vm0, %v6660_v4 }
 0x155   : > { %5149 = vmatmul.mubr.bf16.gmra.mxu1 %v885_v2 }
 0x156   : > { %5193 = vmatmul.mubr.bf16.gmra.mxu0 %v849_v20  ;;  %5212 = vmatprep.mubr.msk.bf16.mxu1 %vm6272_vm0, %v6660_v4 }
 0x157   : > { %5256 = vmatprep.mubr.msk.bf16.mxu0 %vm6272_vm0, %v6660_v4 }
 0x15d   : > { %5213 = vmatmul.mubr.bf16.vlgmr.msra.gmra.mxu1 %v1188_v12 }
 0x15e   : > { %5257 = vmatmul.mubr.bf16.vlgmr.msra.gmra.mxu0 %v1374_v54  ;;  %5216 = vmatprep.mubr.msk.bf16.mxu1 %vm6272_vm0, %v6660_v4 }
 0x15f   : > { %5260 = vmatprep.mubr.msk.bf16.mxu0 %vm6272_vm0, %v6660_v4  ;;  %5285 = vmatpush3.bf16.msra.mxu1 %v5846_v58 }
 0x160   : > { %5286 = vmatprep.subr.bf16.mxu1 %v6660_v4  ;;  %5321 = vmatpush3.bf16.msra.mxu0 %v5850_v51 }
 0x161   : > { %5322 = vmatprep.subr.bf16.mxu0 %v6660_v4 }
 0x163   : > { %5287 = vmatpush3.bf16.msra.mxu1 %v5847_v30 }
 0x164   : > { %5288 = vmatprep.subr.bf16.mxu1 %v6660_v4 }
 0x165   : > { %5217 = vmatmul.mubr.bf16.gmra.mxu1 %v1189_v7 }
 0x166   : > { %5261 = vmatmul.mubr.bf16.gmra.mxu0 %v1375_v29  ;;  %5220 = vmatprep.mubr.msk.bf16.mxu1 %vm6272_vm0, %v6660_v4 }
 0x167   : > { %5264 = vmatprep.mubr.msk.bf16.mxu0 %vm6272_vm0, %v6660_v4 }
 0x16d   : > { %5221 = vmatmul.mubr.bf16.gmra.mxu1 %v1190_v55 }
 0x16e   : > { %5265 = vmatmul.mubr.bf16.gmra.mxu0 %v1376_v63  ;;  %5224 = vmatprep.mubr.msk.bf16.mxu1 %vm6272_vm0, %v6660_v4 }
 0x16f   : > { %5268 = vmatprep.mubr.msk.bf16.mxu0 %vm6272_vm0, %v6660_v4 }
 0x175   : > { %5225 = vmatmul.mubr.bf16.gmra.mxu1 %v1191_v17 }
 0x176   : > { %5269 = vmatmul.mubr.bf16.gmra.mxu0 %v1377_v25  ;;  %5228 = vmatprep.mubr.msk.bf16.mxu1 %vm6272_vm0, %v6660_v4 }
 0x177   : > { %5272 = vmatprep.mubr.msk.bf16.mxu0 %vm6272_vm0, %v6660_v4 }
 0x17d   : > { %5229 = vmatmul.mubr.bf16.gmra.mxu1 %v1192_v27 }
 0x17e   : > { %5273 = vmatmul.mubr.bf16.gmra.mxu0 %v1378_v38  ;;  %5232 = vmatprep.mubr.msk.bf16.mxu1 %vm6272_vm0, %v6660_v4  ;;  %v1380_v38 = vpack.c.bf16 %v6703_v28, %v6703_v28  ;;  %v5849_v28 = vld [vmem:[%s8279_s4] sm:$0xff]  }
 0x17f   : > { %5276 = vmatprep.mubr.msk.bf16.mxu0 %vm6272_vm0, %v6660_v4 }
 0x185   : > { %5233 = vmatmul.mubr.bf16.gmra.mxu1 %v1193_v33 }
 0x186   : > { %5277 = vmatmul.mubr.bf16.gmra.mxu0 %v1379_v18  ;;  %5236 = vmatprep.mubr.msk.bf16.mxu1 %vm6272_vm0, %v6660_v4  ;;  %v5848_v18 = vld [vmem:[%s8279_s4 + $0x8] sm:$0xff]  }
 0x187   : > { %5280 = vmatprep.mubr.msk.bf16.mxu0 %vm6272_vm0, %v6660_v4  ;;  %5289 = vmatpush3.bf16.msra.mxu1 %v5848_v18 }
 0x188   : > { %5290 = vmatprep.subr.bf16.mxu1 %v6660_v4 }
 0x18b   : > { %5291 = vmatpush3.bf16.msra.mxu1 %v5849_v28 }
 0x18c   : > { %5364 = vmatprep.subr.bf16.mxu1 %v6660_v4 }
 0x18d   : > { %5237 = vmatmul.mubr.bf16.gmra.mxu1 %v1194_v31 }
 0x18e   : > { %5281 = vmatmul.mubr.bf16.gmra.mxu0 %v1380_v38  ;;  %5292 = vmatprep.mubr.msk.bf16.mxu1 %vm6272_vm0, %v6660_v4 }
 0x18f   : > { %5336 = vmatprep.mubr.msk.bf16.mxu0 %vm6272_vm0, %v6660_v4 }
 0x1e3   : > { %v985_v36 = vpop.f32.mrf.mxu1 }
 0x1e4   : > { %v1121_v9 = vpop.f32.mrf.mxu0 }
 0x1e5   : > { %v5126_v22 = vpop.f32.mrf.mxu1 }
 0x1e6   : > { %v5170_v50 = vpop.f32.mrf.mxu0 }
 0x1e7   : > { %v6856_v10 = vpop.f32.mrf.mxu1 }
 0x1e8   : > { %v1124_v26 = vpop.f32.mrf.mxu0 }
 0x1e9   : > { %v5127_v42 = vpop.f32.mrf.mxu1 }
 0x1ea   : > { %v5171_v46 = vpop.f32.mrf.mxu0 }
 0x1eb   : > { %v6858_v43 = vpop.f32.mrf.mxu1 }
 0x1ec   : > { %v6860_v16 = vpop.f32.mrf.mxu0 }
 0x1ed   : > { %v5130_v52 = vpop.f32.mrf.mxu1 }
 0x1ee   : > { %v5174_v19 = vpop.f32.mrf.mxu0 }
 0x1ef   : > { %v6862_v37 = vpop.f32.mrf.mxu1 }
 0x1f0   : > { %v6864_v3 = vpop.f32.mrf.mxu0 }
 0x1f1   : > { %v5131_v34 = vpop.f32.mrf.mxu1 }
 0x1f2   : > { %v5175_v59 = vpop.f32.mrf.mxu0 }
 0x1f3   : > { %v6866_v61 = vpop.f32.mrf.mxu1  ;;  %v1549_v59 = vsub.s32 1, %v6523_v47 }
 0x1f4   : > { %v6868_v2 = vpop.f32.mrf.mxu0 }
 0x1f5   : > { %v5134_v20 = vpop.f32.mrf.mxu1 }
 0x1f6   : > { %v5178_v39 = vpop.f32.mrf.mxu0 }
 0x1f7   : > { %v6870_v11 = vpop.f32.mrf.mxu1 }
 0x1f8   : > { %v6872_v12 = vpop.f32.mrf.mxu0 }
 0x1f9   : > { %v5135_v54 = vpop.f32.mrf.mxu1 }
 0x1fa   : > { %v5179_v15 = vpop.f32.mrf.mxu0  ;;  %v1122_v54 = vadd.f32 %v1121_v9, %v985_v36  ;;  %v1130_v36 = vadd.f32 %v6860_v16, %v6858_v43 }
 0x1fd   : > { %v6874_v24 = vpop.f32.mrf.mxu1 }
 0x1fe   : > { %v6876_v7 = vpop.f32.mrf.mxu0 }
 0x1ff   : > { %v5138_v29 = vpop.f32.mrf.mxu1 }
 0x200   : > { %v5182_v53 = vpop.f32.mrf.mxu0 }
 0x201   : > { %v6878_v8 = vpop.f32.mrf.mxu1 }
 0x202   : > { %v6880_v55 = vpop.f32.mrf.mxu0 }
 0x203   : > { %v5139_v63 = vpop.f32.mrf.mxu1 }
 0x204   : > { %v5183_v40 = vpop.f32.mrf.mxu0  ;;  %v6908_v63 = vrot.slane %v6529_v49, %v1549_v59 }
 0x205   : > { %v6885_v17 = vpop.f32.mrf.mxu1 }
 0x206   : > { %v6887_v25 = vpop.f32.mrf.mxu0 }
 0x207   : > { %v5142_v21 = vpop.f32.mrf.mxu1 }
 0x208   : > { %v5186_v48 = vpop.f32.mrf.mxu0  ;;  %v1125_v21 = vadd.f32 %v1124_v26, %v6856_v10 }
 0x209   : > { %v6890_v27 = vpop.f32.mrf.mxu1 }
 0x20a   : > { %v6892_v1 = vpop.f32.mrf.mxu0 }
 0x20b   : > { %v5143_v60 = vpop.f32.mrf.mxu1 }
 0x20c   : > { %v5187_v33 = vpop.f32.mrf.mxu0 }
 0x20d   : > { %v6894_v56 = vpop.f32.mrf.mxu1 }
 0x20e   : > { %v6896_v31 = vpop.f32.mrf.mxu0 }
 0x20f   : > { %v5146_v38 = vpop.f32.mrf.mxu1 }
 0x210   : > { %v5190_v58 = vpop.f32.mrf.mxu0 }
 0x211   : > { %v6898_v30 = vpop.f32.mrf.mxu1 }
 0x212   : > { %v6900_v18 = vpop.f32.mrf.mxu0 }
 0x213   : > { %v5147_v28 = vpop.f32.mrf.mxu1 }
 0x214   : > { %v5191_v22 = vpop.f32.mrf.mxu0 }
 0x215   : > { %v6902_v50 = vpop.f32.mrf.mxu1 }
 0x216   : > { %v6904_v42 = vpop.f32.mrf.mxu0 }
 0x217   : > { %v5150_v46 = vpop.f32.mrf.mxu1 }
 0x218   : > { %v5194_v52 = vpop.f32.mrf.mxu0 }
 0x219   : > { %v1036_v19 = vpop.f32.mrf.mxu1 }
 0x21a   : > { %v1172_v34 = vpop.f32.mrf.mxu0 }
 0x21b   : > { %v5151_v20 = vpop.f32.mrf.mxu1 }
 0x21c   : > { %v5195_v39 = vpop.f32.mrf.mxu0  ;;  %v1133_v20 = vadd.f32 %v6864_v3, %v6862_v37 }
 0x21d   : > { %v1294_v15 = vpop.f32.mrf.mxu1 }
 0x21e   : > { %v1480_v29 = vpop.f32.mrf.mxu0  ;;  %v1348_v53 = vadd.f32 %v1294_v15, %v1122_v54 }
 0x21f   : > { %v5214_v40 = vpop.f32.mrf.mxu1 }
 0x220   : > { %v5258_v51 = vpop.f32.mrf.mxu0  ;;  %v1534_v48 = vadd.f32 %v1480_v29, %v1348_v53 }
 0x221   : > { %v1297_v60 = vpop.f32.mrf.mxu1 }
 0x222   : > { %v1483_v33 = vpop.f32.mrf.mxu0  ;;  %v6912_v38 = vadd.f32 %v6908_v63, %v1534_v48  ;;  %v1349_v58 = vadd.f32 %v1297_v60, %v1125_v21  ;;  %v1138_v21 = vadd.f32 %v6868_v2, %v6866_v61 }
 0x223   : > { %v5215_v28 = vpop.f32.mrf.mxu1 }
 0x224   : > { %v5259_v22 = vpop.f32.mrf.mxu0  ;;  %v1564_v9 = vmin.f32 %v6912_v38, 20.0  ;;  %v1535_v49 = vadd.f32 %v1483_v33, %v1349_v58 }
 0x225   : > { %v1302_v46 = vpop.f32.mrf.mxu1 }
 0x226   : > { %v1488_v52 = vpop.f32.mrf.mxu0  ;;  %v1577_v19 = vmul.f32 1.442695, %v1564_v9  ;;  %v6918_v10 = vadd.f32 %v6908_v63, %v1535_v49  ;;  %v1350_v26 = vadd.f32 %v1302_v46, %v1130_v36  ;;  %v1141_v9 = vadd.f32 %v6872_v12, %v6870_v11 }
 0x227   : > { %v5218_v34 = vpop.f32.mrf.mxu1 }
 0x228   : > { %v5262_v59 = vpop.f32.mrf.mxu0  ;;  %5944 = vpow2.f32 %v1577_v19  ;;  %v1565_v39 = vmin.f32 %v6918_v10, 20.0  ;;  %v1536_v54 = vadd.f32 %v1488_v52, %v1350_v26 }
 0x229   : > { %v1305_v43 = vpop.f32.mrf.mxu1 }
 0x22a   : > { %v1491_v16 = vpop.f32.mrf.mxu0  ;;  %v1579_v15 = vmul.f32 1.442695, %v1565_v39  ;;  %v6924_v29 = vadd.f32 %v6908_v63, %v1536_v54  ;;  %v1351_v53 = vadd.f32 %v1305_v43, %v1133_v20  ;;  %v1146_v20 = vadd.f32 %v6876_v7, %v6874_v24 }
 0x22b   : > { %v5219_v40 = vpop.f32.mrf.mxu1 }
 0x22c   : > { %v5263_v51 = vpop.f32.mrf.mxu0  ;;  %5946 = vpow2.f32 %v1579_v15  ;;  %v1566_v48 = vmin.f32 %v6924_v29, 20.0  ;;  %v1537_v37 = vadd.f32 %v1491_v16, %v1351_v53 }
 0x22d   : > { %v1310_v3 = vpop.f32.mrf.mxu1 }
 0x22e   : > { %v1496_v60 = vpop.f32.mrf.mxu0  ;;  %v1581_v33 = vmul.f32 1.442695, %v1566_v48  ;;  %v6930_v58 = vadd.f32 %v6908_v63, %v1537_v37  ;;  %v1352_v28 = vadd.f32 %v1310_v3, %v1138_v21  ;;  %v1149_v3 = vadd.f32 %v6880_v55, %v6878_v8 }
 0x22f   : > { %v5222_v22 = vpop.f32.mrf.mxu1 }
 0x230   : > { %v5266_v36 = vpop.f32.mrf.mxu0  ;;  %5948 = vpow2.f32 %v1581_v33  ;;  %v1567_v49 = vmin.f32 %v6930_v58, 20.0  ;;  %v1538_v61 = vadd.f32 %v1496_v60, %v1352_v28 }
 0x231   : > { %v1313_v2 = vpop.f32.mrf.mxu1 }
 0x232   : > { %v1499_v46 = vpop.f32.mrf.mxu0  ;;  %v1583_v52 = vmul.f32 1.442695, %v1567_v49  ;;  %v6936_v19 = vadd.f32 %v6908_v63, %v1538_v61  ;;  %v1353_v26 = vadd.f32 %v1313_v2, %v1141_v9 }
 0x233   : > { %v5223_v34 = vpop.f32.mrf.mxu1 }
 0x234   : > { %v5267_v59 = vpop.f32.mrf.mxu0  ;;  %5950 = vpow2.f32 %v1583_v52  ;;  %v1568_v39 = vmin.f32 %v6936_v19, 20.0  ;;  %v1539_v11 = vadd.f32 %v1499_v46, %v1353_v26  ;;  %v1154_v46 = vadd.f32 %v6887_v25, %v6885_v17 }
 0x235   : > { %v5945_v12 = vpop.eup %5944  ;;  %v1318_v54 = vpop.f32.mrf.mxu1 }
 0x236   : > { %v1504_v43 = vpop.f32.mrf.mxu0  ;;  %v1603_v16 = vadd.f32 2.0, %v5945_v12  ;;  %v1585_v15 = vmul.f32 1.442695, %v1568_v39  ;;  %v6942_v53 = vadd.f32 %v6908_v63, %v1539_v11  ;;  %v1354_v40 = vadd.f32 %v1318_v54, %v1146_v20 }
 0x237   : > { %v5226_v51 = vpop.f32.mrf.mxu1 }
 0x238   : > { %v5270_v21 = vpop.f32.mrf.mxu0  ;;  %v6944_v48 = vmul.f32 %v5945_v12, %v1603_v16  ;;  %5952 = vpow2.f32 %v1585_v15  ;;  %v1569_v24 = vmin.f32 %v6942_v53, 20.0  ;;  %v1540_v7 = vadd.f32 %v1504_v43, %v1354_v40 }
 0x239   : > { %v5947_v37 = vpop.eup %5946  ;;  %v1321_v60 = vpop.f32.mrf.mxu1  ;;  %v1157_v40 = vadd.f32 %v6892_v1, %v6890_v27  ;;  %v1162_v1 = vadd.f32 %v6896_v31, %v6894_v56 }
 0x23a   : > { %v1507_v33 = vpop.f32.mrf.mxu0  ;;  %v1642_v28 = vadd.f32 2.0, %v6944_v48  ;;  %v1604_v22 = vadd.f32 2.0, %v5947_v37  ;;  %v1587_v36 = vmul.f32 1.442695, %v1569_v24  ;;  %v6951_v9 = vadd.f32 %v6908_v63, %v1540_v7 }
 0x23b   : > { %v1355_v49 = vadd.f32 %v1321_v60, %v1149_v3  ;;  %v5227_v61 = vpop.f32.mrf.mxu1 }
 0x23c   : > { %v5271_v2 = vpop.f32.mrf.mxu0  ;;  %v6955_v52 = vmul.f32 %v5947_v37, %v1604_v22  ;;  %5954 = vpow2.f32 %v1587_v36  ;;  %v1570_v8 = vmin.f32 %v6951_v9, 20.0 }
 0x23d   : > { %v5949_v26 = vpop.eup %5948  ;;  %v1541_v55 = vadd.f32 %v1507_v33, %v1355_v49  ;;  %v1326_v34 = vpop.f32.mrf.mxu1  ;;  %5956 = vrcp.f32 %v1642_v28 }
 0x23e   : > { %v1512_v59 = vpop.f32.mrf.mxu0  ;;  %v1643_v20 = vadd.f32 2.0, %v6955_v52  ;;  %v1605_v39 = vadd.f32 2.0, %v5949_v26  ;;  %v1356_v11 = vadd.f32 %v1326_v34, %v1154_v46  ;;  %v1589_v12 = vmul.f32 1.442695, %v1570_v8 }
 0x23f   : > { %v6960_v54 = vadd.f32 %v6908_v63, %v1541_v55  ;;  %v5230_v43 = vpop.f32.mrf.mxu1 }
 0x240   : > { %v5274_v17 = vpop.f32.mrf.mxu0  ;;  %5958 = vrcp.f32 %v1643_v20  ;;  %v6962_v25 = vmul.f32 %v5949_v26, %v1605_v39  ;;  %v1542_v16 = vadd.f32 %v1512_v59, %v1356_v11  ;;  %v1165_v11 = vadd.f32 %v6900_v18, %v6898_v30 }
 0x241   : > { %v5951_v15 = vpop.eup %5950  ;;  %5960 = vpow2.f32 %v1589_v12  ;;  %v1571_v51 = vmin.f32 %v6960_v54, 20.0  ;;  %v1329_v21 = vpop.f32.mrf.mxu1 }
 0x242   : > { %v1515_v24 = vpop.f32.mrf.mxu0  ;;  %v1644_v7 = vadd.f32 2.0, %v6962_v25  ;;  %v1606_v37 = vadd.f32 2.0, %v5951_v15  ;;  %v6969_v3 = vadd.f32 %v6908_v63, %v1542_v16  ;;  %v1357_v33 = vadd.f32 %v1329_v21, %v1157_v40 }
 0x243   : > { %v1591_v60 = vmul.f32 1.442695, %v1571_v51  ;;  %v5231_v28 = vpop.f32.mrf.mxu1 }
 0x244   : > { %v5275_v22 = vpop.f32.mrf.mxu0  ;;  %v6971_v36 = vmul.f32 %v5951_v15, %v1606_v37  ;;  %v1572_v49 = vmin.f32 %v6969_v3, 20.0  ;;  %v1543_v61 = vadd.f32 %v1515_v24, %v1357_v33  ;;  %v1170_v37 = vadd.f32 %v6904_v42, %v6902_v50 }
 0x245   : > { %v5953_v27 = vpop.eup %5952  ;;  %5962 = vpow2.f32 %v1591_v60  ;;  %v1334_v2 = vpop.f32.mrf.mxu1  ;;  %v1629_v60 = vmul.f32 %v6944_v48, %v6912_v38  ;;  %v1630_v33 = vmul.f32 %v6955_v52, %v6918_v10 }
 0x246   : > { %v1520_v46 = vpop.f32.mrf.mxu0  ;;  %5964 = vrcp.f32 %v1644_v7  ;;  %v1645_v26 = vadd.f32 2.0, %v6971_v36  ;;  %v1607_v8 = vadd.f32 2.0, %v5953_v27  ;;  %v1593_v55 = vmul.f32 1.442695, %v1572_v49 }
 0x247   : > { %v6978_v34 = vadd.f32 %v6908_v63, %v1543_v61  ;;  %v1358_v59 = vadd.f32 %v1334_v2, %v1162_v1  ;;  %v5234_v20 = vpop.f32.mrf.mxu1 }
 0x248   : > { %v5278_v39 = vpop.f32.mrf.mxu0  ;;  %5966 = vrcp.f32 %v1645_v26  ;;  %v6982_v56 = vmul.f32 %v5953_v27, %v1607_v8 }
 0x249   : > { %5968 = vpow2.f32 %v1593_v55  ;;  %v1573_v31 = vmin.f32 %v6978_v34, 20.0  ;;  %v1544_v12 = vadd.f32 %v1520_v46, %v1358_v59  ;;  %v1337_v43 = vpop.f32.mrf.mxu1  ;;  %v5955_v16 = vpop.eup %5954 }
 0x24a   : > { %v1523_v17 = vpop.f32.mrf.mxu0  ;;  %v1359_v15 = vadd.f32 %v1337_v43, %v1165_v11  ;;  %v5957_v40 = vpop.eup %5956  ;;  %v1646_v51 = vadd.f32 2.0, %v6982_v56  ;;  %v1608_v21 = vadd.f32 2.0, %v5955_v16 }
 0x24b   : > { %v1595_v24 = vmul.f32 1.442695, %v1573_v31  ;;  %v6987_v7 = vadd.f32 %v6908_v63, %v1544_v12  ;;  %v5235_v30 = vpop.f32.mrf.mxu1  ;;  %v1668_v46 = vmul.f32 %v5957_v40, %v1629_v60 }
 0x24c   : > { %v5279_v18 = vpop.f32.mrf.mxu0  ;;  %v1545_v28 = vadd.f32 %v1523_v17, %v1359_v15  ;;  %v1621_v49 = vmul.f32 %v5955_v16, %v1608_v21  ;;  %v1632_v30 = vmul.f32 %v6971_v36, %v6930_v58 }
 0x24d   : > { %v5959_v22 = vpop.eup %5958  ;;  %5970 = vpow2.f32 %v1595_v24  ;;  %v1574_v27 = vmin.f32 %v6987_v7, 20.0  ;;  %v1342_v1 = vpop.f32.mrf.mxu1  ;;  %v1631_v24 = vmul.f32 %v6962_v25, %v6924_v29 }
 0x24e   : > { %v1528_v61 = vpop.f32.mrf.mxu0  ;;  %v5961_v2 = vpop.eup %5960  ;;  %v1669_v26 = vmul.f32 %v5959_v22, %v1630_v33  ;;  %v6997_v50 = vadd.f32 %v6908_v63, %v1545_v28  ;;  %v1360_v42 = vadd.f32 %v1342_v1, %v1170_v37  ;;  %5972 = vrcp.f32 %v1646_v51 }
 0x24f   : > { %v1647_v38 = vadd.f32 2.0, %v1621_v49  ;;  %v1609_v48 = vadd.f32 2.0, %v5961_v2  ;;  %v1597_v10 = vmul.f32 1.442695, %v1574_v27  ;;  %v5238_v52 = vpop.f32.mrf.mxu1 }
 0x250   : > { %v5282_v8 = vpop.f32.mrf.mxu0  ;;  %v1681_v55 = vpack.c.bf16 %v1669_v26, %v1668_v46  ;;  %v1575_v59 = vmin.f32 %v6997_v50, 20.0  ;;  %v1546_v20 = vadd.f32 %v1528_v61, %v1360_v42  ;;  %v1633_v46 = vmul.f32 %v6982_v56, %v6936_v19 }
 0x251   : > { %5974 = vrcp.f32 %v1647_v38  ;;  %v1622_v39 = vmul.f32 %v5961_v2, %v1609_v48  ;;  %v1345_v11 = vpop.f32.mrf.mxu1  ;;  %v1634_v26 = vmul.f32 %v1621_v49, %v6942_v53 }
 0x252   : > { %v1531_v31 = vpop.f32.mrf.mxu0  ;;  %v5963_v12 = vpop.eup %5962  ;;  %5976 = vpow2.f32 %v1597_v10  ;;  %v1599_v43 = vmul.f32 1.442695, %v1575_v59  ;;  %v7001_v17 = vadd.f32 %v6908_v63, %v1546_v20  ;;  %5293 = vmatmul.mubr.msk.bf16.vlgmr.msra.gmra.mxu1 %vm1724_vm1, %v1681_v55 }
 0x253   : > { %v5965_v16 = vpop.eup %5964  ;;  %v1648_v15 = vadd.f32 2.0, %v1622_v39  ;;  %v1610_v40 = vadd.f32 2.0, %v5963_v12  ;;  %v5239_v51 = vpop.f32.mrf.mxu1  ;;  %5296 = vmatprep.mubr.msk.bf16.mxu1 %vm6272_vm0, %v6660_v4  ;;  %v1635_v56 = vmul.f32 %v1622_v39, %v6951_v9 }
 0x254   : > { %v5283_v21 = vpop.f32.mrf.mxu0  ;;  %5978 = vpow2.f32 %v1599_v43  ;;  %v1576_v63 = vmin.f32 %v7001_v17, 20.0  ;;  %v1670_v33 = vmul.f32 %v5965_v16, %v1631_v24 }
 0x255   : > { %v5967_v18 = vpop.eup %5966  ;;  %v1623_v37 = vmul.f32 %v5963_v12, %v1610_v40  ;;  %5980 = vrcp.f32 %v1648_v15 }
 0x256   : > { %v5969_v60 = vpop.eup %5968  ;;  %v1671_v28 = vmul.f32 %v5967_v18, %v1632_v30  ;;  %v1601_v22 = vmul.f32 1.442695, %v1576_v63 }
 0x257   : > { %v1649_v27 = vadd.f32 2.0, %v1623_v37  ;;  %v1611_v1 = vadd.f32 2.0, %v5969_v60  ;;  %v1636_v49 = vmul.f32 %v1623_v37, %v6960_v54 }
 0x258   : > { %5982 = vpow2.f32 %v1601_v22  ;;  %v1682_v61 = vpack.c.bf16 %v1671_v28, %v1670_v33 }
 0x259   : > { %5984 = vrcp.f32 %v1649_v27  ;;  %v1624_v2 = vmul.f32 %v5969_v60, %v1611_v1  ;;  %v7023_v60 = vld [vmem:[#allocation2 + $0x73] sm:$0xff] }
 0x25a   : > { %v5971_v29 = vpop.eup %5970  ;;  %5297 = vmatmul.mubr.msk.bf16.gmra.mxu1 %vm1724_vm1, %v1682_v61  ;;  %407 = vst.msk [vmem:[#allocation3] sm:$0xff] %vm406_vm2, %v7023_v60  ;;  %410 = vst.msk [vmem:[#allocation3 + $0x73] sm:$0xff] %vm406_vm2, %v7023_v60 }
 0x25b   : > { %v1650_v58 = vadd.f32 2.0, %v1624_v2  ;;  %v1612_v25 = vadd.f32 2.0, %v5971_v29  ;;  %5300 = vmatprep.mubr.msk.bf16.mxu1 %vm6272_vm0, %v6660_v4  ;;  %v5973_v36 = vpop.eup %5972  ;;  %409 = vst.msk [vmem:[#allocation3 + $0x8] sm:$0x7] %vm408_vm3, %v7023_v60 }
 0x25c   : > { %v1672_v10 = vmul.f32 %v5973_v36, %v1633_v46  ;;  %v5854_v36 = vld [vmem:[%s8280_s5 + $0x18] sm:$0xff]   ;;  %v5855_v46 = vld [vmem:[%s8280_s5 + $0x10] sm:$0xff]  }
 0x25d   : > { %v1625_v42 = vmul.f32 %v5971_v29, %v1612_v25  ;;  %5986 = vrcp.f32 %v1650_v58 }
 0x25e   : > { %v5975_v38 = vpop.eup %5974 }
 0x25f   : > { %v5977_v48 = vpop.eup %5976  ;;  %v1673_v52 = vmul.f32 %v5975_v38, %v1634_v26  ;;  %v1651_v8 = vadd.f32 2.0, %v1625_v42  ;;  %v1638_v9 = vmul.f32 %v1625_v42, %v6978_v34  ;;  %v5856_v26 = vld [vmem:[%s8280_s5 + $0x8] sm:$0xff]   ;;  %v5857_v42 = vld [vmem:[%s8280_s5] sm:$0xff]   ;;  %v5858_v38 = vld [vmem:[%s8281_s6 + $0x18] sm:$0xff]  }
 0x260   : > { %v1613_v55 = vadd.f32 2.0, %v5977_v48  ;;  %5365 = vmatpush3.bf16.msra.mxu1 %v5858_v38 }
 0x261   : > { %v5979_v59 = vpop.eup %5978  ;;  %5988 = vrcp.f32 %v1651_v8  ;;  %v1683_v20 = vpack.c.bf16 %v1673_v52, %v1672_v10  ;;  %5366 = vmatprep.subr.bf16.mxu1 %v7023_v60  ;;  %v7081_v10 = vld [vmem:[%s8285_s10] sm:$0xff] }
 0x262   : > { %v1626_v11 = vmul.f32 %v5977_v48, %v1613_v55  ;;  %v1614_v31 = vadd.f32 2.0, %v5979_v59  ;;  %v5981_v12 = vpop.eup %5980  ;;  %v1698_v48 = vsub.s32 2, %v6523_v47 }
 0x263   : > { %5301 = vmatmul.mubr.msk.bf16.gmra.mxu1 %vm1724_vm1, %v1683_v20  ;;  %v1674_v51 = vmul.f32 %v5981_v12, %v1635_v56 }
 0x264   : > { %v1652_v43 = vadd.f32 2.0, %v1626_v11  ;;  %v1627_v19 = vmul.f32 %v5979_v59, %v1614_v31  ;;  %5304 = vmatprep.mubr.msk.bf16.mxu1 %vm6272_vm0, %v6660_v4  ;;  %v1637_v4 = vmul.f32 %v1624_v2, %v6969_v3  ;;  %v1639_v22 = vmul.f32 %v1626_v11, %v6987_v7  ;;  %v5851_v7 = vld [vmem:[%s8280_s5 + $0x30] sm:$0xff]  }
 0x265   : > { %v5983_v53 = vpop.eup %5982  ;;  %5323 = vmatpush3.bf16.msra.mxu0 %v5851_v7  ;;  %v7084_v52 = vrot.slane %v7081_v10, %v1698_v48 }
 0x266   : > { %v5985_v16 = vpop.eup %5984  ;;  %5990 = vrcp.f32 %v1652_v43  ;;  %v1653_v15 = vadd.f32 2.0, %v1627_v19  ;;  %v1615_v40 = vadd.f32 2.0, %v5983_v53  ;;  %v1640_v27 = vmul.f32 %v1627_v19, %v6997_v50  ;;  %5324 = vmatprep.subr.bf16.mxu0 %v7023_v60  ;;  %v5852_v50 = vld [vmem:[%s8280_s5 + $0x28] sm:$0xff]  }
 0x267   : > { %v1675_v21 = vmul.f32 %v5985_v16, %v1636_v49 }
 0x268   : > { %5992 = vrcp.f32 %v1653_v15  ;;  %v1628_v24 = vmul.f32 %v5983_v53, %v1615_v40 }
 0x269   : > { %v1684_v30 = vpack.c.bf16 %v1675_v21, %v1674_v51  ;;  %5325 = vmatpush3.bf16.msra.mxu0 %v5852_v50 }
 0x26a   : > { %v1654_v63 = vadd.f32 2.0, %v1628_v24  ;;  %v5987_v18 = vpop.eup %5986  ;;  %v1641_v29 = vmul.f32 %v1628_v24, %v7001_v17  ;;  %5326 = vmatprep.subr.bf16.mxu0 %v7023_v60  ;;  %v5853_v17 = vld [vmem:[%s8280_s5 + $0x20] sm:$0xff]  }
 0x26b   : > { %5305 = vmatmul.mubr.msk.bf16.gmra.mxu1 %vm1724_vm1, %v1684_v30  ;;  %v1676_v39 = vmul.f32 %v5987_v18, %v1637_v4 }
 0x26c   : > { %5308 = vmatprep.mubr.msk.bf16.mxu1 %vm6272_vm0, %v7023_v60  ;;  %5994 = vrcp.f32 %v1654_v63 }
 0x26d   : > { %5327 = vmatpush3.bf16.msra.mxu0 %v5853_v17 }
 0x26e   : > { %v5989_v54 = vpop.eup %5988  ;;  %5328 = vmatprep.subr.bf16.mxu0 %v7023_v60 }
 0x26f   : > { %v1677_v37 = vmul.f32 %v5989_v54, %v1638_v9 }
 0x271   : > { %v1685_v33 = vpack.c.bf16 %v1677_v37, %v1676_v39  ;;  %5329 = vmatpush3.bf16.msra.mxu0 %v5854_v36 }
 0x272   : > { %5330 = vmatprep.subr.bf16.mxu0 %v7023_v60 }
 0x273   : > { %v5991_v28 = vpop.eup %5990  ;;  %5309 = vmatmul.mubr.msk.bf16.gmra.mxu1 %vm1724_vm1, %v1685_v33 }
 0x274   : > { %5312 = vmatprep.mubr.msk.bf16.mxu1 %vm6272_vm0, %v7023_v60  ;;  %v1678_v61 = vmul.f32 %v5991_v28, %v1639_v22 }
 0x275   : > { %v5993_v1 = vpop.eup %5992  ;;  %5331 = vmatpush3.bf16.msra.mxu0 %v5855_v46 }
 0x276   : > { %v1679_v3 = vmul.f32 %v5993_v1, %v1640_v27  ;;  %5332 = vmatprep.subr.bf16.mxu0 %v7023_v60 }
 0x278   : > { %v1686_v2 = vpack.c.bf16 %v1679_v3, %v1678_v61 }
 0x279   : > { %v5995_v34 = vpop.eup %5994  ;;  %5333 = vmatpush3.bf16.msra.mxu0 %v5856_v26 }
 0x27a   : > { %v1680_v58 = vmul.f32 %v5995_v34, %v1641_v29  ;;  %5334 = vmatprep.subr.bf16.mxu0 %v7023_v60 }
 0x27b   : > { %5313 = vmatmul.mubr.msk.bf16.gmra.mxu1 %vm1724_vm1, %v1686_v2 }
 0x27c   : > { %5316 = vmatprep.mubr.msk.bf16.mxu1 %vm6272_vm0, %v7023_v60  ;;  %v1687_v25 = vpack.c.bf16 %v1680_v58, %v1680_v58 }
 0x27d   : > { %5335 = vmatpush3.bf16.msra.mxu0 %v5857_v42 }
 0x27e   : > { %5396 = vmatprep.subr.bf16.mxu0 %v7023_v60 }
 0x283   : > { %5317 = vmatmul.mubr.msk.bf16.gmra.mxu1 %vm1724_vm1, %v1687_v25 }
 0x284   : > { %5368 = vmatprep.mubr.msk.bf16.mxu1 %vm6272_vm0, %v7023_v60 }
 0x312   : > { %v1780_v8 = vpop.f32.mrf.mxu1 }
 0x313   : > { %v7087_v55 = vadd.f32 %v1780_v8, %v7084_v52 }
 0x314   : > { %v5294_v59 = vpop.f32.mrf.mxu1 }
 0x315   : > { %v1834_v20 = vmin.f32 %v7087_v55, 20.0 }
 0x316   : > { %v1783_v11 = vpop.f32.mrf.mxu1 }
 0x317   : > { %v1847_v31 = vmul.f32 1.442695, %v1834_v20  ;;  %v7091_v12 = vadd.f32 %v1783_v11, %v7084_v52 }
 0x318   : > { %v5295_v43 = vpop.f32.mrf.mxu1 }
 0x319   : > { %5996 = vpow2.f32 %v1847_v31  ;;  %v1835_v19 = vmin.f32 %v7091_v12, 20.0 }
 0x31a   : > { %v1788_v53 = vpop.f32.mrf.mxu1 }
 0x31b   : > { %v1849_v56 = vmul.f32 1.442695, %v1835_v19  ;;  %v7095_v49 = vadd.f32 %v1788_v53, %v7084_v52 }
 0x31c   : > { %v5298_v16 = vpop.f32.mrf.mxu1 }
 0x31d   : > { %5998 = vpow2.f32 %v1849_v56  ;;  %v1836_v15 = vmin.f32 %v7095_v49, 20.0 }
 0x31e   : > { %v1791_v40 = vpop.f32.mrf.mxu1 }
 0x31f   : > { %v1851_v51 = vmul.f32 1.442695, %v1836_v15  ;;  %v7099_v21 = vadd.f32 %v1791_v40, %v7084_v52 }
 0x320   : > { %v5299_v24 = vpop.f32.mrf.mxu1 }
 0x321   : > { %6000 = vpow2.f32 %v1851_v51  ;;  %v1837_v30 = vmin.f32 %v7099_v21, 20.0 }
 0x323   : > { %v1853_v63 = vmul.f32 1.442695, %v1837_v30  ;;  %v1796_v18 = vpop.f32.mrf.mxu1 }
 0x324   : > { %v7103_v4 = vadd.f32 %v1796_v18, %v7084_v52 }
 0x325   : > { %6002 = vpow2.f32 %v1853_v63  ;;  %v5302_v9 = vpop.f32.mrf.mxu1 }
 0x326   : > { %v5997_v54 = vpop.eup %5996  ;;  %v1838_v39 = vmin.f32 %v7103_v4, 20.0 }
 0x327   : > { %v1873_v37 = vadd.f32 2.0, %v5997_v54  ;;  %v1799_v33 = vpop.f32.mrf.mxu1 }
 0x328   : > { %v1855_v28 = vmul.f32 1.442695, %v1838_v39  ;;  %v7107_v22 = vadd.f32 %v1799_v33, %v7084_v52 }
 0x329   : > { %v1886_v27 = vmul.f32 %v5997_v54, %v1873_v37  ;;  %v5303_v1 = vpop.f32.mrf.mxu1 }
 0x32a   : > { %v5999_v61 = vpop.eup %5998  ;;  %6004 = vpow2.f32 %v1855_v28  ;;  %v1839_v3 = vmin.f32 %v7107_v22, 20.0 }
 0x32b   : > { %v1912_v2 = vadd.f32 2.0, %v1886_v27  ;;  %v1874_v34 = vadd.f32 2.0, %v5999_v61  ;;  %v1804_v29 = vpop.f32.mrf.mxu1 }
 0x32c   : > { %v1857_v58 = vmul.f32 1.442695, %v1839_v3  ;;  %v7111_v25 = vadd.f32 %v1804_v29, %v7084_v52 }
 0x32d   : > { %v1887_v7 = vmul.f32 %v5999_v61, %v1874_v34  ;;  %v5306_v50 = vpop.f32.mrf.mxu1  ;;  %v1899_v34 = vmul.f32 %v1886_v27, %v7087_v55 }
 0x32e   : > { %v6001_v17 = vpop.eup %6000  ;;  %6006 = vpow2.f32 %v1857_v58  ;;  %v1840_v36 = vmin.f32 %v7111_v25, 20.0 }
 0x32f   : > { %6008 = vrcp.f32 %v1912_v2  ;;  %v1913_v46 = vadd.f32 2.0, %v1887_v7  ;;  %v1875_v26 = vadd.f32 2.0, %v6001_v17  ;;  %v1807_v42 = vpop.f32.mrf.mxu1  ;;  %v1900_v29 = vmul.f32 %v1887_v7, %v7091_v12 }
 0x330   : > { %v1859_v38 = vmul.f32 1.442695, %v1840_v36  ;;  %v7115_v48 = vadd.f32 %v1807_v42, %v7084_v52 }
 0x331   : > { %6010 = vrcp.f32 %v1913_v46  ;;  %v7117_v8 = vmul.f32 %v6001_v17, %v1875_v26  ;;  %v5307_v59 = vpop.f32.mrf.mxu1 }
 0x332   : > { %v6003_v20 = vpop.eup %6002  ;;  %6012 = vpow2.f32 %v1859_v38  ;;  %v1841_v11 = vmin.f32 %v7115_v48, 20.0 }
 0x333   : > { %v1914_v31 = vadd.f32 2.0, %v7117_v8  ;;  %v1876_v43 = vadd.f32 2.0, %v6003_v20  ;;  %v1812_v19 = vpop.f32.mrf.mxu1 }
 0x334   : > { %v1861_v53 = vmul.f32 1.442695, %v1841_v11  ;;  %v7122_v56 = vadd.f32 %v1812_v19, %v7084_v52 }
 0x335   : > { %v1889_v16 = vmul.f32 %v6003_v20, %v1876_v43  ;;  %v5310_v15 = vpop.f32.mrf.mxu1 }
 0x336   : > { %6014 = vpow2.f32 %v1861_v53  ;;  %v1842_v40 = vmin.f32 %v7122_v56, 20.0 }
 0x337   : > { %v6005_v51 = vpop.eup %6004  ;;  %6016 = vrcp.f32 %v1914_v31  ;;  %v1915_v24 = vadd.f32 2.0, %v1889_v16  ;;  %v1815_v30 = vpop.f32.mrf.mxu1 }
 0x338   : > { %v1877_v63 = vadd.f32 2.0, %v6005_v51  ;;  %v1863_v18 = vmul.f32 1.442695, %v1842_v40  ;;  %v7126_v9 = vadd.f32 %v1815_v30, %v7084_v52  ;;  %v1901_v30 = vmul.f32 %v7117_v8, %v7095_v49 }
 0x339   : > { %6018 = vrcp.f32 %v1915_v24  ;;  %v5311_v54 = vpop.f32.mrf.mxu1 }
 0x33a   : > { %v7128_v39 = vmul.f32 %v6005_v51, %v1877_v63  ;;  %6020 = vpow2.f32 %v1863_v18  ;;  %v1843_v37 = vmin.f32 %v7126_v9, 20.0  ;;  %v1902_v63 = vmul.f32 %v1889_v16, %v7099_v21 }
 0x33b   : > { %v6007_v33 = vpop.eup %6006  ;;  %v1820_v28 = vpop.f32.mrf.mxu1 }
 0x33c   : > { %v6009_v1 = vpop.eup %6008  ;;  %v1916_v61 = vadd.f32 2.0, %v7128_v39  ;;  %v1878_v3 = vadd.f32 2.0, %v6007_v33  ;;  %v1865_v2 = vmul.f32 1.442695, %v1843_v37  ;;  %v7135_v58 = vadd.f32 %v1820_v28, %v7084_v52 }
 0x33d   : > { %v5314_v50 = vpop.f32.mrf.mxu1  ;;  %v7137_v26 = vmul.f32 %v6009_v1, %v1899_v34 }
 0x33e   : > { %v6011_v17 = vpop.eup %6010  ;;  %v1891_v36 = vmul.f32 %v6007_v33, %v1878_v3  ;;  %6022 = vpow2.f32 %v1865_v2  ;;  %v1844_v38 = vmin.f32 %v7135_v58, 20.0 }
 0x33f   : > { %v6013_v46 = vpop.eup %6012  ;;  %v7139_v42 = vmul.f32 %v6011_v17, %v1900_v29  ;;  %v1823_v59 = vpop.f32.mrf.mxu1  ;;  %6024 = vrcp.f32 %v1916_v61 }
 0x340   : > { %v1917_v20 = vadd.f32 2.0, %v1891_v36  ;;  %v1879_v55 = vadd.f32 2.0, %v6013_v46  ;;  %v7143_v12 = vadd.f32 %v1823_v59, %v7084_v52  ;;  %v1867_v7 = vmul.f32 1.442695, %v1844_v38 }
 0x341   : > { %v7147_v27 = vpack.c.bf16 %v7139_v42, %v7137_v26  ;;  %v5315_v11 = vpop.f32.mrf.mxu1  ;;  %v1903_v38 = vmul.f32 %v7128_v39, %v7103_v4  ;;  %v1904_v59 = vmul.f32 %v1891_v36, %v7107_v22 }
 0x342   : > { %6026 = vrcp.f32 %v1917_v20  ;;  %v1892_v31 = vmul.f32 %v6013_v46, %v1879_v55  ;;  %v1845_v43 = vmin.f32 %v7143_v12, 20.0 }
 0x343   : > { %v6015_v19 = vpop.eup %6014  ;;  %6028 = vpow2.f32 %v1867_v7  ;;  %v1828_v53 = vpop.f32.mrf.mxu1  ;;  %5337 = vmatmul.mubr.bf16.vlgmr.msra.gmra.mxu0 %v7147_v27 }
 0x344   : > { %v6017_v15 = vpop.eup %6016  ;;  %v1918_v40 = vadd.f32 2.0, %v1892_v31  ;;  %v1880_v51 = vadd.f32 2.0, %v6015_v19  ;;  %v1869_v24 = vmul.f32 1.442695, %v1845_v43  ;;  %5340 = vmatprep.mubr.msk.bf16.mxu0 %vm6272_vm0, %v7023_v60  ;;  %v7157_v18 = vadd.f32 %v1828_v53, %v7084_v52 }
 0x345   : > { %v5318_v54 = vpop.f32.mrf.mxu1  ;;  %v7159_v1 = vmul.f32 %v6017_v15, %v1901_v30  ;;  %v1905_v36 = vmul.f32 %v1892_v31, %v7111_v25 }
 0x346   : > { %v6019_v37 = vpop.eup %6018  ;;  %v1893_v33 = vmul.f32 %v6015_v19, %v1880_v51  ;;  %6030 = vpow2.f32 %v1869_v24  ;;  %v1846_v3 = vmin.f32 %v7157_v18, 20.0 }
 0x347   : > { %v6021_v28 = vpop.eup %6020  ;;  %v7161_v61 = vmul.f32 %v6019_v37, %v1902_v63  ;;  %v1831_v2 = vpop.f32.mrf.mxu1  ;;  %6032 = vrcp.f32 %v1918_v40 }
 0x348   : > { %v1919_v34 = vadd.f32 2.0, %v1893_v33  ;;  %v1881_v49 = vadd.f32 2.0, %v6021_v28  ;;  %v1871_v8 = vmul.f32 1.442695, %v1846_v3  ;;  %v1906_v24 = vmul.f32 %v1893_v33, %v7115_v48 }
 0x349   : > { %v5319_v21 = vpop.f32.mrf.mxu1  ;;  %v7166_v52 = vpack.c.bf16 %v7161_v61, %v7159_v1 }
 0x34a   : > { %6034 = vrcp.f32 %v1919_v34  ;;  %v1894_v16 = vmul.f32 %v6021_v28, %v1881_v49 }
 0x34b   : > { %6036 = vpow2.f32 %v1871_v8  ;;  %5341 = vmatmul.mubr.bf16.gmra.mxu0 %v7166_v52  ;;  %v6023_v29 = vpop.eup %6022 }
 0x34c   : > { %5344 = vmatprep.mubr.msk.bf16.mxu0 %vm6272_vm0, %v7023_v60  ;;  %v6025_v50 = vpop.eup %6024  ;;  %v1920_v17 = vadd.f32 2.0, %v1894_v16  ;;  %v1882_v46 = vadd.f32 2.0, %v6023_v29  ;;  %v1907_v31 = vmul.f32 %v1894_v16, %v7122_v56 }
 0x34d   : > { %v7174_v11 = vmul.f32 %v6025_v50, %v1903_v38 }
 0x34e   : > { %v1895_v55 = vmul.f32 %v6023_v29, %v1882_v46  ;;  %6038 = vrcp.f32 %v1920_v17 }
 0x34f   : > { %v6027_v20 = vpop.eup %6026 }
 0x350   : > { %v6029_v7 = vpop.eup %6028  ;;  %v7176_v43 = vmul.f32 %v6027_v20, %v1904_v59  ;;  %v1921_v19 = vadd.f32 2.0, %v1895_v55  ;;  %v1908_v33 = vmul.f32 %v1895_v55, %v7126_v9 }
 0x351   : > { %v1883_v53 = vadd.f32 2.0, %v6029_v7 }
 0x352   : > { %v7180_v15 = vpack.c.bf16 %v7176_v43, %v7174_v11  ;;  %6040 = vrcp.f32 %v1921_v19  ;;  %v5861_v19 = vld [vmem:[%s8281_s6] sm:$0xff]  }
 0x353   : > { %v1896_v40 = vmul.f32 %v6029_v7, %v1883_v53  ;;  %v6031_v51 = vpop.eup %6030  ;;  %v5859_v7 = vld [vmem:[%s8281_s6 + $0x10] sm:$0xff]   ;;  %v1976_v53 = vsub.s32 3, %v6523_v47 }
 0x354   : > { %5345 = vmatmul.mubr.bf16.gmra.mxu0 %v7180_v15  ;;  %v6033_v4 = vpop.eup %6032  ;;  %v1884_v39 = vadd.f32 2.0, %v6031_v51  ;;  %5367 = vmatpush3.bf16.msra.mxu1 %v5859_v7 }
 0x355   : > { %v1922_v22 = vadd.f32 2.0, %v1896_v40  ;;  %5348 = vmatprep.mubr.msk.bf16.mxu0 %vm6272_vm0, %v7023_v60  ;;  %v7187_v37 = vmul.f32 %v6033_v4, %v1905_v36  ;;  %v1909_v56 = vmul.f32 %v1896_v40, %v7135_v58  ;;  %5428 = vmatprep.subr.bf16.mxu1 %v7023_v60  ;;  %v7249_v40 = vrot.slane %v7081_v10, %v1976_v53 }
 0x356   : > { %v1897_v63 = vmul.f32 %v6031_v51, %v1884_v39 }
 0x357   : > { %v6035_v30 = vpop.eup %6034  ;;  %6042 = vrcp.f32 %v1922_v22 }
 0x358   : > { %v6037_v54 = vpop.eup %6036  ;;  %v7189_v28 = vmul.f32 %v6035_v30, %v1906_v24  ;;  %v1923_v3 = vadd.f32 2.0, %v1897_v63  ;;  %v1910_v9 = vmul.f32 %v1897_v63, %v7143_v12 }
 0x359   : > { %v1885_v2 = vadd.f32 2.0, %v6037_v54 }
 0x35a   : > { %v7193_v34 = vpack.c.bf16 %v7189_v28, %v7187_v37  ;;  %6044 = vrcp.f32 %v1923_v3 }
 0x35b   : > { %v1898_v49 = vmul.f32 %v6037_v54, %v1885_v2  ;;  %v6039_v48 = vpop.eup %6038 }
 0x35c   : > { %5349 = vmatmul.mubr.bf16.gmra.mxu0 %v7193_v34  ;;  %v7200_v21 = vmul.f32 %v6039_v48, %v1907_v31 }
 0x35d   : > { %v1924_v25 = vadd.f32 2.0, %v1898_v49  ;;  %5352 = vmatprep.mubr.msk.bf16.mxu0 %vm6272_vm0, %v7023_v60  ;;  %v1911_v55 = vmul.f32 %v1898_v49, %v7157_v18  ;;  %v5860_v18 = vld [vmem:[%s8281_s6 + $0x8] sm:$0xff]  }
 0x35e   : > { %5397 = vmatpush3.bf16.msra.mxu0 %v5860_v18 }
 0x35f   : > { %6046 = vrcp.f32 %v1924_v25  ;;  %v6041_v8 = vpop.eup %6040  ;;  %5398 = vmatprep.subr.bf16.mxu0 %v7023_v60 }
 0x360   : > { %v7202_v29 = vmul.f32 %v6041_v8, %v1908_v33 }
 0x362   : > { %v7206_v50 = vpack.c.bf16 %v7202_v29, %v7200_v21  ;;  %5399 = vmatpush3.bf16.msra.mxu0 %v5861_v19 }
 0x363   : > { %5460 = vmatprep.subr.bf16.mxu0 %v7023_v60 }
 0x364   : > { %5353 = vmatmul.mubr.bf16.gmra.mxu0 %v7206_v50  ;;  %v6043_v17 = vpop.eup %6042 }
 0x365   : > { %5356 = vmatprep.mubr.msk.bf16.mxu0 %vm6272_vm0, %v7023_v60  ;;  %v7213_v46 = vmul.f32 %v6043_v17, %v1909_v56 }
 0x367   : > { %v6045_v16 = vpop.eup %6044 }
 0x368   : > { %v7215_v38 = vmul.f32 %v6045_v16, %v1910_v9 }
 0x36a   : > { %8291 = vst [vmem:[#allocation4_spill] sm:$0xff] %v7215_v38  ;;  %v7219_v59 = vpack.c.bf16 %v7215_v38, %v7213_v46 }
 0x36c   : > { %v6047_v20 = vpop.eup %6046  ;;  %5357 = vmatmul.mubr.bf16.gmra.mxu0 %v7219_v59 }
 0x36d   : > { %5360 = vmatprep.mubr.msk.bf16.mxu0 %vm6272_vm0, %v7023_v60  ;;  %v7225_v58 = vmul.f32 %v6047_v20, %v1911_v55 }
 0x36f   : > { %8292 = vst [vmem:[#allocation5_spill] sm:$0xff] %v7225_v58  ;;  %v7229_v12 = vpack.c.bf16 %v7225_v58, %v7225_v58 }
 0x374   : > { %5361 = vmatmul.mubr.bf16.gmra.mxu0 %v7229_v12 }
 0x375   : > { %5400 = vmatprep.mubr.msk.bf16.mxu0 %vm6272_vm0, %v7023_v60 }
 0x403   : > { %v2060_v51 = vpop.f32.mrf.mxu0 }
 0x404   : > { %v7252_v4 = vadd.f32 %v2060_v51, %v7249_v40 }
 0x405   : > { %v5338_v22 = vpop.f32.mrf.mxu0 }
 0x406   : > { %v2114_v39 = vmin.f32 %v7252_v4, 20.0 }
 0x407   : > { %v2063_v36 = vpop.f32.mrf.mxu0 }
 0x408   : > { %v2127_v24 = vmul.f32 1.442695, %v2114_v39  ;;  %v7256_v30 = vadd.f32 %v2063_v36, %v7249_v40 }
 0x409   : > { %v5339_v63 = vpop.f32.mrf.mxu0 }
 0x40a   : > { %6048 = vpow2.f32 %v2127_v24  ;;  %v2115_v54 = vmin.f32 %v7256_v30, 20.0 }
 0x40b   : > { %v2068_v3 = vpop.f32.mrf.mxu0 }
 0x40c   : > { %v2129_v2 = vmul.f32 1.442695, %v2115_v54  ;;  %v7260_v10 = vadd.f32 %v2068_v3, %v7249_v40 }
 0x40d   : > { %v5342_v49 = vpop.f32.mrf.mxu0 }
 0x40e   : > { %6050 = vpow2.f32 %v2129_v2  ;;  %v2116_v25 = vmin.f32 %v7260_v10, 20.0 }
 0x40f   : > { %v2071_v48 = vpop.f32.mrf.mxu0 }
 0x410   : > { %v2131_v31 = vmul.f32 1.442695, %v2116_v25  ;;  %v7264_v33 = vadd.f32 %v2071_v48, %v7249_v40 }
 0x411   : > { %v5343_v8 = vpop.f32.mrf.mxu0 }
 0x412   : > { %6052 = vpow2.f32 %v2131_v31  ;;  %v2117_v17 = vmin.f32 %v7264_v33, 20.0 }
 0x414   : > { %v2133_v56 = vmul.f32 1.442695, %v2117_v17  ;;  %v2076_v9 = vpop.f32.mrf.mxu0 }
 0x415   : > { %v7268_v16 = vadd.f32 %v2076_v9, %v7249_v40 }
 0x416   : > { %6054 = vpow2.f32 %v2133_v56  ;;  %v5346_v20 = vpop.f32.mrf.mxu0 }
 0x417   : > { %v6049_v55 = vpop.eup %6048  ;;  %v2118_v18 = vmin.f32 %v7268_v16, 20.0 }
 0x418   : > { %v2153_v7 = vadd.f32 2.0, %v6049_v55  ;;  %v2079_v19 = vpop.f32.mrf.mxu0 }
 0x419   : > { %v2135_v53 = vmul.f32 1.442695, %v2118_v18  ;;  %v7272_v51 = vadd.f32 %v2079_v19, %v7249_v40 }
 0x41a   : > { %v2166_v22 = vmul.f32 %v6049_v55, %v2153_v7  ;;  %v5347_v39 = vpop.f32.mrf.mxu0 }
 0x41b   : > { %v6051_v36 = vpop.eup %6050  ;;  %6056 = vpow2.f32 %v2135_v53  ;;  %v2119_v24 = vmin.f32 %v7272_v51, 20.0 }
 0x41c   : > { %v2192_v63 = vadd.f32 2.0, %v2166_v22  ;;  %v2154_v54 = vadd.f32 2.0, %v6051_v36  ;;  %v2084_v3 = vpop.f32.mrf.mxu0 }
 0x41d   : > { %v2137_v2 = vmul.f32 1.442695, %v2119_v24  ;;  %v7276_v49 = vadd.f32 %v2084_v3, %v7249_v40 }
 0x41e   : > { %6058 = vrcp.f32 %v2192_v63  ;;  %v2167_v25 = vmul.f32 %v6051_v36, %v2154_v54  ;;  %v5350_v48 = vpop.f32.mrf.mxu0 }
 0x41f   : > { %v6053_v31 = vpop.eup %6052  ;;  %6060 = vpow2.f32 %v2137_v2  ;;  %v2120_v8 = vmin.f32 %v7276_v49, 20.0 }
 0x420   : > { %v2193_v17 = vadd.f32 2.0, %v2167_v25  ;;  %v2155_v56 = vadd.f32 2.0, %v6053_v31  ;;  %v2087_v9 = vpop.f32.mrf.mxu0 }
 0x421   : > { %v2139_v20 = vmul.f32 1.442695, %v2120_v8  ;;  %v7280_v55 = vadd.f32 %v2087_v9, %v7249_v40  ;;  %v2179_v9 = vmul.f32 %v2166_v22, %v7252_v4  ;;  %v2180_v22 = vmul.f32 %v2167_v25, %v7256_v30 }
 0x422   : > { %6062 = vrcp.f32 %v2193_v17  ;;  %v2168_v18 = vmul.f32 %v6053_v31, %v2155_v56  ;;  %v5351_v7 = vpop.f32.mrf.mxu0 }
 0x423   : > { %v6055_v19 = vpop.eup %6054  ;;  %6064 = vpow2.f32 %v2139_v20  ;;  %v2121_v53 = vmin.f32 %v7280_v55, 20.0 }
 0x424   : > { %v2194_v39 = vadd.f32 2.0, %v2168_v18  ;;  %v2156_v36 = vadd.f32 2.0, %v6055_v19  ;;  %v2092_v63 = vpop.f32.mrf.mxu0 }
 0x425   : > { %v2141_v24 = vmul.f32 1.442695, %v2121_v53  ;;  %v7284_v3 = vadd.f32 %v2092_v63, %v7249_v40 }
 0x426   : > { %6066 = vrcp.f32 %v2194_v39  ;;  %v2169_v54 = vmul.f32 %v6055_v19, %v2156_v36  ;;  %v5354_v2 = vpop.f32.mrf.mxu0 }
 0x427   : > { %6068 = vpow2.f32 %v2141_v24  ;;  %v2122_v31 = vmin.f32 %v7284_v3, 20.0 }
 0x428   : > { %v6057_v48 = vpop.eup %6056  ;;  %v2195_v8 = vadd.f32 2.0, %v2169_v54  ;;  %v2095_v56 = vpop.f32.mrf.mxu0 }
 0x429   : > { %v2157_v17 = vadd.f32 2.0, %v6057_v48  ;;  %v2143_v20 = vmul.f32 1.442695, %v2122_v31  ;;  %v7289_v7 = vadd.f32 %v2095_v56, %v7249_v40 }
 0x42a   : > { %6070 = vrcp.f32 %v2195_v8  ;;  %v5355_v39 = vpop.f32.mrf.mxu0 }
 0x42b   : > { %v6059_v53 = vpop.eup %6058  ;;  %v7291_v19 = vmul.f32 %v6057_v48, %v2157_v17  ;;  %6072 = vpow2.f32 %v2143_v20  ;;  %v2123_v63 = vmin.f32 %v7289_v7, 20.0 }
 0x42c   : > { %v6061_v36 = vpop.eup %6060  ;;  %v2218_v24 = vmul.f32 %v6059_v53, %v2179_v9  ;;  %v2100_v38 = vpop.f32.mrf.mxu0 }
 0x42d   : > { %v2196_v2 = vadd.f32 2.0, %v7291_v19  ;;  %v2158_v58 = vadd.f32 2.0, %v6061_v36  ;;  %v2145_v8 = vmul.f32 1.442695, %v2123_v63  ;;  %v7298_v31 = vadd.f32 %v2100_v38, %v7249_v40 }
 0x42e   : > { %v2231_v4 = vmul.f32 %v2218_v24, %v6574_v35  ;;  %v5358_v56 = vpop.f32.mrf.mxu0  ;;  %v2181_v38 = vmul.f32 %v2168_v18, %v7260_v10  ;;  %v2281_v18 = vld [vmem:[#allocation3 + $0x1] sm:$0xff] }
 0x42f   : > { %v6063_v48 = vpop.eup %6062  ;;  %6074 = vrcp.f32 %v2196_v2  ;;  %v7300_v17 = vmul.f32 %v6061_v36, %v2158_v58  ;;  %v2124_v53 = vmin.f32 %v7298_v31, 20.0 }
 0x430   : > { %v6065_v9 = vpop.eup %6064  ;;  %2244 = vst.msk [vmem:[#allocation3 + $0xb] sm:$0xff] %vm406_vm2, %v2231_v4  ;;  %v2219_v20 = vmul.f32 %v6063_v48, %v2180_v22  ;;  %6076 = vpow2.f32 %v2145_v8  ;;  %v2103_v30 = vpop.f32.mrf.mxu0 }
 0x431   : > { %v2197_v35 = vadd.f32 2.0, %v7300_v17  ;;  %v2159_v39 = vadd.f32 2.0, %v6065_v9  ;;  %v2147_v24 = vmul.f32 1.442695, %v2124_v53  ;;  %v7308_v58 = vadd.f32 %v2103_v30, %v7249_v40 }
 0x432   : > { %v2232_v25 = vmul.f32 %v2219_v20, %v6582_v62  ;;  %v5359_v2 = vpop.f32.mrf.mxu0  ;;  %v2182_v20 = vmul.f32 %v2169_v54, %v7264_v33 }
 0x433   : > { %v6067_v36 = vpop.eup %6066  ;;  %6078 = vrcp.f32 %v2197_v35  ;;  %v7310_v63 = vmul.f32 %v6065_v9, %v2159_v39  ;;  %v2125_v8 = vmin.f32 %v7308_v58, 20.0  ;;  %v2257_v35 = vld [vmem:[#allocation3] sm:$0xff] }
 0x434   : > { %v6069_v4 = vpop.eup %6068  ;;  %2245 = vst.msk [vmem:[#allocation3 + $0x13] sm:$0xff] %vm406_vm2, %v2232_v25  ;;  %v2220_v22 = vmul.f32 %v6067_v36, %v2181_v38  ;;  %6080 = vpow2.f32 %v2147_v24  ;;  %v2108_v10 = vpop.f32.mrf.mxu0  ;;  %v5862_v36 = vld [vmem:[%s8281_s6 + $0x28] sm:$0xff]  }
 0x435   : > { %v2198_v62 = vadd.f32 2.0, %v7310_v63  ;;  %v2160_v48 = vadd.f32 2.0, %v6069_v4  ;;  %v2149_v53 = vmul.f32 1.442695, %v2125_v8  ;;  %v7318_v9 = vadd.f32 %v2108_v10, %v7249_v40  ;;  %v5864_v8 = vld [vmem:[%s8281_s6 + $0x38] sm:$0xff]  }
 0x436   : > { %v2233_v56 = vmul.f32 %v2220_v22, %v6579_v44  ;;  %v5362_v25 = vpop.f32.mrf.mxu0 }
 0x437   : > { %v6071_v39 = vpop.eup %6070  ;;  %6082 = vrcp.f32 %v2198_v62  ;;  %v7320_v30 = vmul.f32 %v6069_v4, %v2160_v48  ;;  %v2282_v38 = vld [vmem:[#allocation3 + $0x9] sm:$0xff]  ;;  %v2126_v33 = vmin.f32 %v7318_v9, 20.0 }
 0x438   : > { %v2258_v24 = vld [vmem:[#allocation3 + $0x8] sm:$0xff]  ;;  %2246 = vst.msk [vmem:[#allocation3 + $0x1b] sm:$0xff] %vm406_vm2, %v2233_v56  ;;  %v2221_v44 = vmul.f32 %v6071_v39, %v2182_v20  ;;  %6084 = vpow2.f32 %v2149_v53  ;;  %v2294_v40 = vpack.c.bf16 %v2282_v38, %v2281_v18  ;;  %v6073_v54 = vpop.eup %6072  ;;  %v2111_v22 = vpop.f32.mrf.mxu0  ;;  %v2183_v56 = vmul.f32 %v7291_v19, %v7268_v16  ;;  %v5863_v20 = vld [vmem:[%s8281_s6 + $0x20] sm:$0xff]  }
 0x439   : > { %v2199_v2 = vadd.f32 2.0, %v7320_v30  ;;  %v2270_v4 = vpack.c.bf16 %v2258_v24, %v2257_v35  ;;  %v2161_v48 = vadd.f32 2.0, %v6073_v54  ;;  %v2151_v10 = vmul.f32 1.442695, %v2126_v33  ;;  %v5865_v35 = vld [vmem:[%s8281_s6 + $0x30] sm:$0xff]  }
 0x43a   : > { %v2234_v62 = vmul.f32 %v2221_v44, %v6587_v6  ;;  %5369 = vmatmul.mubr.msk.bf16.vlgmr.msra.gmra.mxu1 %vm406_vm2, %v2294_v40  ;;  %v5363_v18 = vpop.f32.mrf.mxu0 }
 0x43b   : > { %6086 = vrcp.f32 %v2199_v2  ;;  %5401 = vmatmul.mubr.msk.bf16.vlgmr.msra.gmra.mxu0 %vm406_vm2, %v2270_v4  ;;  %5429 = vmatpush3.bf16.msra.mxu1 %v5862_v36  ;;  %v7340_v6 = vmul.f32 %v6073_v54, %v2161_v48  ;;  %v2283_v38 = vld [vmem:[#allocation3 + $0x11] sm:$0xff]  ;;  %v2184_v36 = vmul.f32 %v7300_v17, %v7272_v51  ;;  %v2185_v17 = vmul.f32 %v7310_v63, %v7276_v49 }
 0x43c   : > { %v6075_v53 = vpop.eup %6074  ;;  %2247 = vst.msk [vmem:[#allocation3 + $0x23] sm:$0xff] %vm406_vm2, %v2234_v62  ;;  %6088 = vpow2.f32 %v2151_v10  ;;  %5372 = vmatprep.mubr.msk.bf16.mxu1 %vm6272_vm0, %v7023_v60  ;;  %5404 = vmatprep.mubr.msk.bf16.mxu0 %vm6272_vm0, %v7023_v60  ;;  %v2259_v33 = vld [vmem:[#allocation3 + $0x10] sm:$0xff]  ;;  %v2186_v49 = vmul.f32 %v7320_v30, %v7280_v55 }
 0x43d   : > { %v6077_v16 = vpop.eup %6076  ;;  %v2222_v19 = vmul.f32 %v6075_v53, %v2183_v56  ;;  %5430 = vmatprep.subr.bf16.mxu1 %v7023_v60  ;;  %5461 = vmatpush3.bf16.msra.mxu0 %v5864_v8  ;;  %v2200_v39 = vadd.f32 2.0, %v7340_v6  ;;  %v2187_v55 = vmul.f32 %v7340_v6, %v7284_v3 }
 0x43e   : > { %v2162_v25 = vadd.f32 2.0, %v6077_v16  ;;  %5462 = vmatprep.subr.bf16.mxu0 %v7023_v60 }
 0x43f   : > { %v2235_v24 = vmul.f32 %v2222_v19, %v6590_v23  ;;  %v2284_v44 = vld [vmem:[#allocation3 + $0x19] sm:$0xff]  ;;  %5431 = vmatpush3.bf16.msra.mxu1 %v5863_v20  ;;  %6090 = vrcp.f32 %v2200_v39 }
 0x440   : > { %v2260_v40 = vld [vmem:[#allocation3 + $0x18] sm:$0xff]  ;;  %v6079_v54 = vpop.eup %6078  ;;  %v2175_v2 = vmul.f32 %v6077_v16, %v2162_v25  ;;  %v2295_v22 = vpack.c.bf16 %v2284_v44, %v2283_v38  ;;  %5492 = vmatprep.subr.bf16.mxu1 %v7023_v60 }
 0x441   : > { %v2271_v4 = vpack.c.bf16 %v2260_v40, %v2259_v33  ;;  %v6081_v8 = vpop.eup %6080  ;;  %2248 = vst.msk [vmem:[#allocation3 + $0x2b] sm:$0xff] %vm406_vm2, %v2235_v24  ;;  %v2223_v62 = vmul.f32 %v6079_v54, %v2184_v36  ;;  %5463 = vmatpush3.bf16.msra.mxu0 %v5865_v35 }
 0x442   : > { %v2201_v23 = vadd.f32 2.0, %v2175_v2  ;;  %v2163_v48 = vadd.f32 2.0, %v6081_v8  ;;  %5373 = vmatmul.mubr.msk.bf16.gmra.mxu1 %vm406_vm2, %v2295_v22  ;;  %5524 = vmatprep.subr.bf16.mxu0 %v7023_v60 }
 0x443   : > { %v2236_v51 = vmul.f32 %v2223_v62, %v6595_v32  ;;  %5405 = vmatmul.mubr.msk.bf16.gmra.mxu0 %vm406_vm2, %v2271_v4  ;;  %5376 = vmatprep.mubr.msk.bf16.mxu1 %vm6272_vm0, %v7023_v60  ;;  %v2285_v63 = vld [vmem:[#allocation3 + $0x21] sm:$0xff] }
 0x444   : > { %v6083_v10 = vpop.eup %6082  ;;  %6092 = vrcp.f32 %v2201_v23  ;;  %v2176_v56 = vmul.f32 %v6081_v8, %v2163_v48  ;;  %5408 = vmatprep.mubr.msk.bf16.mxu0 %vm6272_vm0, %v7023_v60  ;;  %v2261_v25 = vld [vmem:[#allocation3 + $0x20] sm:$0xff]  ;;  %v2188_v23 = vmul.f32 %v2175_v2, %v7289_v7 }
 0x445   : > { %v6085_v18 = vpop.eup %6084  ;;  %2249 = vst.msk [vmem:[#allocation3 + $0x33] sm:$0xff] %vm406_vm2, %v2236_v51  ;;  %v2224_v20 = vmul.f32 %v6083_v10, %v2185_v17 }
 0x446   : > { %v2202_v53 = vadd.f32 2.0, %v2176_v56  ;;  %v2164_v32 = vadd.f32 2.0, %v6085_v18 }
 0x447   : > { %v2237_v16 = vmul.f32 %v2224_v20, %v6600_v45  ;;  %v7389_v20 = vld [vmem:[#allocation2 + $0x73] sm:$0xff] }
 0x448   : > { %v6087_v19 = vpop.eup %6086  ;;  %6094 = vrcp.f32 %v2202_v53  ;;  %v2177_v35 = vmul.f32 %v6085_v18, %v2164_v32  ;;  %v2286_v39 = vld [vmem:[#allocation3 + $0x29] sm:$0xff]  ;;  %412 = vst.msk [vmem:[#allocation3 + $0x7b] sm:$0x1f] %vm411_vm4, %v7389_v20 }
 0x449   : > { %v2262_v38 = vld [vmem:[#allocation3 + $0x28] sm:$0xff]  ;;  %v6089_v24 = vpop.eup %6088  ;;  %2250 = vst.msk [vmem:[#allocation3 + $0x3b] sm:$0xff] %vm406_vm2, %v2237_v16  ;;  %v2225_v36 = vmul.f32 %v6087_v19, %v2186_v49  ;;  %v2296_v44 = vpack.c.bf16 %v2286_v39, %v2285_v63 }
 0x44a   : > { %v2272_v33 = vpack.c.bf16 %v2262_v38, %v2261_v25  ;;  %v2203_v40 = vadd.f32 2.0, %v2177_v35  ;;  %v2165_v54 = vadd.f32 2.0, %v6089_v24  ;;  %v2190_v32 = vmul.f32 %v2177_v35, %v7308_v58 }
 0x44b   : > { %v2238_v45 = vmul.f32 %v2225_v36, %v6606_v57  ;;  %5377 = vmatmul.mubr.msk.bf16.gmra.mxu1 %vm406_vm2, %v2296_v44 }
 0x44c   : > { %5409 = vmatmul.mubr.msk.bf16.gmra.mxu0 %vm406_vm2, %v2272_v33  ;;  %6096 = vrcp.f32 %v2203_v40  ;;  %v2178_v30 = vmul.f32 %v6089_v24, %v2165_v54  ;;  %5380 = vmatprep.mubr.msk.bf16.mxu1 %vm6272_vm0, %v7023_v60  ;;  %v6091_v22 = vpop.eup %6090  ;;  %v2287_v8 = vld [vmem:[#allocation3 + $0x31] sm:$0xff] }
 0x44d   : > { %5412 = vmatprep.mubr.msk.bf16.mxu0 %vm6272_vm0, %v7023_v60  ;;  %2251 = vst.msk [vmem:[#allocation3 + $0x43] sm:$0xff] %vm406_vm2, %v2238_v45  ;;  %v2226_v4 = vmul.f32 %v6091_v22, %v2187_v55  ;;  %v2263_v6 = vld [vmem:[#allocation3 + $0x30] sm:$0xff]  ;;  %v2548_v55 = vld [vmem:[#allocation3 + $0x2] sm:$0xff] }
 0x44e   : > { %v2204_v57 = vadd.f32 2.0, %v2178_v30  ;;  %v2191_v38 = vmul.f32 %v2178_v30, %v7318_v9  ;;  %v2549_v30 = vld [vmem:[#allocation3 + $0xa] sm:$0xff]  ;;  %v2708_v22 = vld [vmem:[#allocation3 + $0x12] sm:$0xff] }
 0x44f   : > { %v2239_v62 = vmul.f32 %v2226_v4, %v6614_v13  ;;  %v2189_v13 = vmul.f32 %v2176_v56, %v7298_v31  ;;  %v5866_v4 = vld [vmem:[%s8281_s6 + $0x48] sm:$0xff]  }
 0x450   : > { %6098 = vrcp.f32 %v2204_v57  ;;  %v2288_v3 = vld [vmem:[#allocation3 + $0x39] sm:$0xff]  ;;  %v2561_v57 = vpack.c.bf16 %v2549_v30, %v2548_v55 }
 0x451   : > { %v2264_v48 = vld [vmem:[#allocation3 + $0x38] sm:$0xff]  ;;  %v6093_v51 = vpop.eup %6092  ;;  %v2297_v17 = vpack.c.bf16 %v2288_v3, %v2287_v8  ;;  %2252 = vst.msk [vmem:[#allocation3 + $0x4b] sm:$0xff] %vm406_vm2, %v2239_v62  ;;  %v2720_v8 = vpack.c.bf16 %v2708_v22, %v2549_v30 }
 0x452   : > { %v2273_v10 = vpack.c.bf16 %v2264_v48, %v2263_v6  ;;  %v2227_v60 = vmul.f32 %v6093_v51, %v2188_v23  ;;  %v5868_v62 = vld [vmem:[%s8281_s6 + $0x58] sm:$0xff]   ;;  %v5867_v23 = vld [vmem:[%s8281_s6 + $0x40] sm:$0xff]   ;;  %v5869_v48 = vld [vmem:[%s8281_s6 + $0x50] sm:$0xff]  }
 0x453   : > { %5381 = vmatmul.mubr.msk.bf16.gmra.mxu1 %vm406_vm2, %v2297_v17  ;;  %v2551_v3 = vld [vmem:[#allocation3 + $0x1a] sm:$0xff]  ;;  %v2710_v6 = vld [vmem:[#allocation3 + $0x22] sm:$0xff] }
 0x454   : > { %5413 = vmatmul.mubr.msk.bf16.gmra.mxu0 %vm406_vm2, %v2273_v10  ;;  %v2240_v18 = vmul.f32 %v2227_v60, %v6623_v5  ;;  %5384 = vmatprep.mubr.msk.bf16.mxu1 %vm6272_vm0, %v7389_v20  ;;  %v2289_v16 = vld [vmem:[#allocation3 + $0x41] sm:$0xff]  ;;  %v2562_v51 = vpack.c.bf16 %v2551_v3, %v2708_v22  ;;  %v2721_v17 = vpack.c.bf16 %v2710_v6, %v2551_v3  ;;  %v2553_v10 = vld [vmem:[#allocation3 + $0x2a] sm:$0xff]  ;;  %v2712_v60 = vld [vmem:[#allocation3 + $0x32] sm:$0xff] }
 0x455   : > { %5416 = vmatprep.mubr.msk.bf16.mxu0 %vm6272_vm0, %v7389_v20  ;;  %v6095_v7 = vpop.eup %6094  ;;  %v2265_v31 = vld [vmem:[#allocation3 + $0x40] sm:$0xff] }
 0x456   : > { %2253 = vst.msk [vmem:[#allocation3 + $0x53] sm:$0xff] %vm406_vm2, %v2240_v18  ;;  %v2228_v2 = vmul.f32 %v6095_v7, %v2189_v13  ;;  %v2563_v18 = vpack.c.bf16 %v2553_v10, %v2710_v6  ;;  %v2722_v13 = vpack.c.bf16 %v2712_v60, %v2553_v10  ;;  %v2555_v7 = vld [vmem:[#allocation3 + $0x3a] sm:$0xff] }
 0x457   : > { %v2868_v55 = vld [vmem:[#allocation3 + $0x1b] sm:$0xff] }
 0x458   : > { %v2241_v53 = vmul.f32 %v2228_v2, %v6646_v41  ;;  %v2290_v49 = vld [vmem:[#allocation3 + $0x49] sm:$0xff]  ;;  %v7506_v30 = vld [vmem:[#allocation3 + $0x1c] sm:$0xff] }
 0x459   : > { %v6097_v5 = vpop.eup %6096  ;;  %v2266_v56 = vld [vmem:[#allocation3 + $0x48] sm:$0xff]  ;;  %v2298_v19 = vpack.c.bf16 %v2290_v49, %v2289_v16  ;;  %v3031_v10 = vld [vmem:[#allocation3 + $0x3c] sm:$0xff] }
 0x45a   : > { %2254 = vst.msk [vmem:[#allocation3 + $0x5b] sm:$0xff] %vm406_vm2, %v2241_v53  ;;  %v2229_v63 = vmul.f32 %v6097_v5, %v2190_v32  ;;  %v2274_v39 = vpack.c.bf16 %v2266_v56, %v2265_v31  ;;  %v2714_v2 = vld [vmem:[#allocation3 + $0x42] sm:$0xff]  ;;  %v2564_v53 = vpack.c.bf16 %v2555_v7, %v2712_v60  ;;  %v2557_v16 = vld [vmem:[#allocation3 + $0x4a] sm:$0xff] }
 0x45b   : > { %5385 = vmatmul.mubr.msk.bf16.gmra.mxu1 %vm406_vm2, %v2298_v19  ;;  %v2723_v32 = vpack.c.bf16 %v2714_v2, %v2555_v7  ;;  %v2565_v49 = vpack.c.bf16 %v2557_v16, %v2714_v2  ;;  %v2874_v2 = vld [vmem:[#allocation3 + $0x4b] sm:$0xff] }
 0x45c   : > { %v2242_v25 = vmul.f32 %v2229_v63, %v6672_v14  ;;  %5417 = vmatmul.mubr.msk.bf16.gmra.mxu0 %vm406_vm2, %v2274_v39  ;;  %5388 = vmatprep.mubr.msk.bf16.mxu1 %vm6272_vm0, %v7389_v20 }
 0x45d   : > { %v6099_v41 = vpop.eup %6098  ;;  %5420 = vmatprep.mubr.msk.bf16.mxu0 %vm6272_vm0, %v7389_v20  ;;  %v2291_v24 = vld [vmem:[#allocation3 + $0x51] sm:$0xff] }
 0x45e   : > { %2255 = vst.msk [vmem:[#allocation3 + $0x63] sm:$0xff] %vm406_vm2, %v2242_v25  ;;  %v2230_v58 = vmul.f32 %v6099_v41, %v2191_v38  ;;  %v2267_v36 = vld [vmem:[#allocation3 + $0x50] sm:$0xff] }
 0x45f   : > { %v2716_v5 = vld [vmem:[#allocation3 + $0x52] sm:$0xff] }
 0x460   : > { %v2243_v35 = vmul.f32 %v2230_v58, %v6697_v0  ;;  %v2724_v31 = vpack.c.bf16 %v2716_v5, %v2557_v16  ;;  %v2867_v58 = vld [vmem:[#allocation3 + $0x13] sm:$0xff] }
 0x461   : > { %v2292_v14 = vld [vmem:[#allocation3 + $0x59] sm:$0xff] }
 0x462   : > { %v2268_v9 = vld [vmem:[#allocation3 + $0x58] sm:$0xff]  ;;  %2256 = vst.msk [vmem:[#allocation3 + $0x6b] sm:$0xff] %vm406_vm2, %v2243_v35  ;;  %v2299_v44 = vpack.c.bf16 %v2292_v14, %v2291_v24  ;;  %v2866_v24 = vld [vmem:[#allocation3 + $0xb] sm:$0xff] }
 0x463   : > { %v2275_v33 = vpack.c.bf16 %v2268_v9, %v2267_v36  ;;  %v2559_v56 = vld [vmem:[#allocation3 + $0x5a] sm:$0xff]  ;;  %v3025_v14 = vld [vmem:[#allocation3 + $0xc] sm:$0xff]  ;;  %v2879_v9 = vpack.c.bf16 %v2867_v58, %v2866_v24 }
 0x464   : > { %5389 = vmatmul.mubr.msk.bf16.gmra.mxu1 %vm406_vm2, %v2299_v44  ;;  %v2566_v19 = vpack.c.bf16 %v2559_v56, %v2716_v5  ;;  %v7481_v35 = vld [vmem:[#allocation3 + $0x14] sm:$0xff]  ;;  %v5870_v36 = vld [vmem:[%s8281_s6 + $0x68] sm:$0xff]   ;;  %v3344_v58 = vld [vmem:[#allocation3 + $0x1d] sm:$0xff] }
 0x465   : > { %5421 = vmatmul.mubr.msk.bf16.gmra.mxu0 %vm406_vm2, %v2275_v33  ;;  %5392 = vmatprep.mubr.msk.bf16.mxu1 %vm6272_vm0, %v7389_v20  ;;  %v2293_v40 = vld [vmem:[#allocation3 + $0x61] sm:$0xff]  ;;  %v3038_v44 = vpack.c.bf16 %v7481_v35, %v3025_v14  ;;  %v5872_v33 = vld [vmem:[%s8281_s6 + $0x78] sm:$0xff]  }
 0x466   : > { %5424 = vmatprep.mubr.msk.bf16.mxu0 %vm6272_vm0, %v7389_v20  ;;  %v2269_v0 = vld [vmem:[#allocation3 + $0x60] sm:$0xff]  ;;  %v2300_v54 = vpack.c.bf16 %v2293_v40, %v2293_v40  ;;  %v7539_v7 = vld [vmem:[#allocation3 + $0x54] sm:$0xff]  ;;  %v5874_v14 = vld [vmem:[%s8281_s6 + $0x88] sm:$0xff]  }
 0x467   : > { %v2276_v45 = vpack.c.bf16 %v2269_v0, %v2269_v0  ;;  %v2718_v63 = vld [vmem:[#allocation3 + $0x62] sm:$0xff]  ;;  %v3343_v24 = vld [vmem:[#allocation3 + $0x15] sm:$0xff] }
 0x468   : > { %v2725_v39 = vpack.c.bf16 %v2718_v63, %v2559_v56  ;;  %v2567_v38 = vpack.c.bf16 %v2718_v63, %v2718_v63  ;;  %v5871_v40 = vld [vmem:[%s8281_s6 + $0x60] sm:$0xff]  }
 0x469   : > { %v2719_v25 = vld [vmem:[#allocation3 + $0x6a] sm:$0xff]  ;;  %v7553_v56 = vld [vmem:[#allocation3 + $0x5c] sm:$0xff] }
 0x46a   : > { %v2726_v41 = vpack.c.bf16 %v2719_v25, %v2719_v25  ;;  %v2869_v0 = vld [vmem:[#allocation3 + $0x23] sm:$0xff]  ;;  %v7563_v25 = vld [vmem:[#allocation3 + $0x6c] sm:$0xff] }
 0x46b   : > { %v2880_v22 = vpack.c.bf16 %v2869_v0, %v2868_v55  ;;  %v2877_v5 = vld [vmem:[#allocation3 + $0x63] sm:$0xff]  ;;  %v3347_v55 = vld [vmem:[#allocation3 + $0x35] sm:$0xff] }
 0x46c   : > { %5393 = vmatmul.mubr.msk.bf16.gmra.mxu1 %vm406_vm2, %v2300_v54  ;;  %v7500_v54 = vld [vmem:[#allocation3 + $0x24] sm:$0xff] }
 0x46d   : > { %5425 = vmatmul.mubr.msk.bf16.gmra.mxu0 %vm406_vm2, %v2276_v45  ;;  %5432 = vmatprep.mubr.msk.bf16.mxu1 %vm6272_vm0, %v7389_v20  ;;  %v5873_v45 = vld [vmem:[%s8281_s6 + $0x70] sm:$0xff]  }
 0x46e   : > { %5464 = vmatprep.mubr.msk.bf16.mxu0 %vm6272_vm0, %v7389_v20 }
 0x474   : > { %5433 = vmatmul.mubr.msk.bf16.vlgmr.msra.gmra.mxu1 %vm406_vm2, %v2561_v57  ;;  %v2871_v57 = vld [vmem:[#allocation3 + $0x33] sm:$0xff] }
 0x475   : > { %5465 = vmatmul.mubr.msk.bf16.vlgmr.msra.gmra.mxu0 %vm406_vm2, %v2720_v8  ;;  %5493 = vmatpush3.bf16.msra.mxu1 %v5866_v4  ;;  %v3039_v4 = vpack.c.bf16 %v7500_v54, %v7506_v30  ;;  %v7518_v8 = vld [vmem:[#allocation3 + $0x34] sm:$0xff] }
 0x476   : > { %5436 = vmatprep.mubr.msk.bf16.mxu1 %vm6272_vm0, %v7389_v20  ;;  %5468 = vmatprep.mubr.msk.bf16.mxu0 %vm6272_vm0, %v7389_v20 }
 0x477   : > { %5494 = vmatprep.subr.bf16.mxu1 %v7389_v20  ;;  %5525 = vmatpush3.bf16.msra.mxu0 %v5868_v62  ;;  %v2870_v62 = vld [vmem:[#allocation3 + $0x2b] sm:$0xff] }
 0x478   : > { %5526 = vmatprep.subr.bf16.mxu0 %v7389_v20  ;;  %v2881_v3 = vpack.c.bf16 %v2871_v57, %v2870_v62 }
 0x479   : > { %5495 = vmatpush3.bf16.msra.mxu1 %v5867_v23  ;;  %v7520_v23 = vld [vmem:[#allocation3 + $0x2c] sm:$0xff] }
 0x47a   : > { %5556 = vmatprep.subr.bf16.mxu1 %v7389_v20  ;;  %v3040_v6 = vpack.c.bf16 %v7518_v8, %v7520_v23 }
 0x47b   : > { %5527 = vmatpush3.bf16.msra.mxu0 %v5869_v48  ;;  %v2873_v48 = vld [vmem:[#allocation3 + $0x43] sm:$0xff] }
 0x47c   : > { %5437 = vmatmul.mubr.msk.bf16.gmra.mxu1 %vm406_vm2, %v2562_v51  ;;  %5588 = vmatprep.subr.bf16.mxu0 %v7389_v20  ;;  %v7530_v51 = vld [vmem:[#allocation3 + $0x44] sm:$0xff] }
 0x47d   : > { %5469 = vmatmul.mubr.msk.bf16.gmra.mxu0 %vm406_vm2, %v2721_v17  ;;  %5440 = vmatprep.mubr.msk.bf16.mxu1 %vm6272_vm0, %v7389_v20  ;;  %v2872_v17 = vld [vmem:[#allocation3 + $0x3b] sm:$0xff] }
 0x47e   : > { %5472 = vmatprep.mubr.msk.bf16.mxu0 %vm6272_vm0, %v7389_v20  ;;  %v2882_v60 = vpack.c.bf16 %v2873_v48, %v2872_v17 }
 0x484   : > { %5441 = vmatmul.mubr.msk.bf16.gmra.mxu1 %vm406_vm2, %v2563_v18  ;;  %v3041_v18 = vpack.c.bf16 %v7530_v51, %v3031_v10 }
 0x485   : > { %5473 = vmatmul.mubr.msk.bf16.gmra.mxu0 %vm406_vm2, %v2722_v13  ;;  %5444 = vmatprep.mubr.msk.bf16.mxu1 %vm6272_vm0, %v7389_v20  ;;  %v2875_v13 = vld [vmem:[#allocation3 + $0x53] sm:$0xff] }
 0x486   : > { %5476 = vmatprep.mubr.msk.bf16.mxu0 %vm6272_vm0, %v7389_v20 }
 0x48c   : > { %5445 = vmatmul.mubr.msk.bf16.gmra.mxu1 %vm406_vm2, %v2564_v53  ;;  %v7541_v53 = vld [vmem:[#allocation3 + $0x4c] sm:$0xff] }
 0x48d   : > { %5477 = vmatmul.mubr.msk.bf16.gmra.mxu0 %vm406_vm2, %v2723_v32  ;;  %5448 = vmatprep.mubr.msk.bf16.mxu1 %vm6272_vm0, %v7389_v20  ;;  %v2883_v32 = vpack.c.bf16 %v2875_v13, %v2874_v2  ;;  %v3042_v16 = vpack.c.bf16 %v7539_v7, %v7541_v53  ;;  %v3200_v62 = vpack.c.bf16 %v7541_v53, %v7530_v51  ;;  %v3351_v2 = vld [vmem:[#allocation3 + $0x55] sm:$0xff] }
 0x48e   : > { %5480 = vmatprep.mubr.msk.bf16.mxu0 %vm6272_vm0, %v7389_v20 }
 0x494   : > { %5449 = vmatmul.mubr.msk.bf16.gmra.mxu1 %vm406_vm2, %v2565_v49  ;;  %v7551_v49 = vld [vmem:[#allocation3 + $0x64] sm:$0xff] }
 0x495   : > { %5481 = vmatmul.mubr.msk.bf16.gmra.mxu0 %vm406_vm2, %v2724_v31  ;;  %5452 = vmatprep.mubr.msk.bf16.mxu1 %vm6272_vm0, %v7389_v20  ;;  %v2876_v31 = vld [vmem:[#allocation3 + $0x5b] sm:$0xff] }
 0x496   : > { %5484 = vmatprep.mubr.msk.bf16.mxu0 %vm6272_vm0, %v7389_v20  ;;  %v2884_v63 = vpack.c.bf16 %v2877_v5, %v2876_v31 }
 0x49c   : > { %5453 = vmatmul.mubr.msk.bf16.gmra.mxu1 %vm406_vm2, %v2566_v19  ;;  %v3043_v19 = vpack.c.bf16 %v7551_v49, %v7553_v56 }
 0x49d   : > { %5485 = vmatmul.mubr.msk.bf16.gmra.mxu0 %vm406_vm2, %v2725_v39  ;;  %5456 = vmatprep.mubr.msk.bf16.mxu1 %vm6272_vm0, %v7389_v20  ;;  %v2878_v39 = vld [vmem:[#allocation3 + $0x6b] sm:$0xff] }
 0x49e   : > { %5488 = vmatprep.mubr.msk.bf16.mxu0 %vm6272_vm0, %v7389_v20 }
 0x4a4   : > { %5457 = vmatmul.mubr.msk.bf16.gmra.mxu1 %vm406_vm2, %v2567_v38  ;;  %v2885_v38 = vpack.c.bf16 %v2878_v39, %v2878_v39 }
 0x4a5   : > { %5489 = vmatmul.mubr.msk.bf16.gmra.mxu0 %vm406_vm2, %v2726_v41  ;;  %5496 = vmatprep.mubr.msk.bf16.mxu1 %vm6272_vm0, %v7389_v20  ;;  %v3044_v41 = vpack.c.bf16 %v7563_v25, %v7563_v25 }
 0x4a6   : > { %5528 = vmatprep.mubr.msk.bf16.mxu0 %vm6272_vm0, %v7389_v20 }
 0x4ac   : > { %5497 = vmatmul.mubr.msk.bf16.vlgmr.msra.gmra.mxu1 %vm406_vm2, %v2879_v9  ;;  %v3356_v9 = vpack.c.bf16 %v3344_v58, %v3343_v24 }
 0x4ad   : > { %5529 = vmatmul.mubr.msk.bf16.vlgmr.msra.gmra.mxu0 %vm406_vm2, %v3038_v44  ;;  %5557 = vmatpush3.bf16.msra.mxu1 %v5870_v36  ;;  %v3197_v36 = vpack.c.bf16 %v7506_v30, %v7481_v35  ;;  %v5875_v44 = vld [vmem:[%s8281_s6 + $0x80] sm:$0xff]   ;;  %v3199_v30 = vpack.c.bf16 %v3031_v10, %v7518_v8 }
 0x4ae   : > { %5500 = vmatprep.mubr.msk.bf16.mxu1 %vm6272_vm0, %v7389_v20  ;;  %5532 = vmatprep.mubr.msk.bf16.mxu0 %vm6272_vm0, %v7389_v20  ;;  %v3345_v35 = vld [vmem:[#allocation3 + $0x25] sm:$0xff] }
 0x4af   : > { %5558 = vmatprep.subr.bf16.mxu1 %v7389_v20  ;;  %5589 = vmatpush3.bf16.msra.mxu0 %v5872_v33  ;;  %v3346_v33 = vld [vmem:[#allocation3 + $0x2d] sm:$0xff] }
 0x4b0   : > { %5590 = vmatprep.subr.bf16.mxu0 %v7389_v20  ;;  %v3357_v0 = vpack.c.bf16 %v3346_v33, %v3345_v35 }
 0x4b1   : > { %5559 = vmatpush3.bf16.msra.mxu1 %v5871_v40  ;;  %v3198_v40 = vpack.c.bf16 %v7520_v23, %v7500_v54  ;;  %v3350_v54 = vld [vmem:[#allocation3 + $0x4d] sm:$0xff] }
 0x4b2   : > { %5620 = vmatprep.subr.bf16.mxu1 %v7389_v20 }
 0x4b3   : > { %5591 = vmatpush3.bf16.msra.mxu0 %v5873_v45  ;;  %v3348_v45 = vld [vmem:[#allocation3 + $0x3d] sm:$0xff] }
 0x4b4   : > { %5501 = vmatmul.mubr.msk.bf16.gmra.mxu1 %vm406_vm2, %v2880_v22  ;;  %5652 = vmatprep.subr.bf16.mxu0 %v7389_v20  ;;  %v3358_v22 = vpack.c.bf16 %v3348_v45, %v3347_v55  ;;  %v3355_v45 = vld [vmem:[#allocation3 + $0x75] sm:$0xff] }
 0x4b5   : > { %5533 = vmatmul.mubr.msk.bf16.gmra.mxu0 %vm406_vm2, %v3039_v4  ;;  %5504 = vmatprep.mubr.msk.bf16.mxu1 %vm6272_vm0, %v7389_v20  ;;  %v3349_v4 = vld [vmem:[#allocation3 + $0x45] sm:$0xff] }
 0x4b6   : > { %5536 = vmatprep.mubr.msk.bf16.mxu0 %vm6272_vm0, %v7389_v20  ;;  %v3359_v23 = vpack.c.bf16 %v3350_v54, %v3349_v4 }
 0x4bc   : > { %5505 = vmatmul.mubr.msk.bf16.gmra.mxu1 %vm406_vm2, %v2881_v3 }
 0x4bd   : > { %5537 = vmatmul.mubr.msk.bf16.gmra.mxu0 %vm406_vm2, %v3040_v6  ;;  %5508 = vmatprep.mubr.msk.bf16.mxu1 %vm6272_vm0, %v7389_v20 }
 0x4be   : > { %5540 = vmatprep.mubr.msk.bf16.mxu0 %vm6272_vm0, %v7389_v20 }
 0x4c4   : > { %5509 = vmatmul.mubr.msk.bf16.gmra.mxu1 %vm406_vm2, %v2882_v60  ;;  %v3352_v60 = vld [vmem:[#allocation3 + $0x5d] sm:$0xff] }
 0x4c5   : > { %5541 = vmatmul.mubr.msk.bf16.gmra.mxu0 %vm406_vm2, %v3041_v18  ;;  %5512 = vmatprep.mubr.msk.bf16.mxu1 %vm6272_vm0, %v7389_v20 }
 0x4c6   : > { %5544 = vmatprep.mubr.msk.bf16.mxu0 %vm6272_vm0, %v7389_v20 }
 0x4cc   : > { %5513 = vmatmul.mubr.msk.bf16.gmra.mxu1 %vm406_vm2, %v2883_v32  ;;  %v3201_v32 = vpack.c.bf16 %v7553_v56, %v7539_v7  ;;  %v3354_v7 = vld [vmem:[#allocation3 + $0x6d] sm:$0xff] }
 0x4cd   : > { %5545 = vmatmul.mubr.msk.bf16.gmra.mxu0 %vm406_vm2, %v3042_v16  ;;  %5516 = vmatprep.mubr.msk.bf16.mxu1 %vm6272_vm0, %v7389_v20  ;;  %v3360_v16 = vpack.c.bf16 %v3352_v60, %v3351_v2  ;;  %v3502_v2 = vld [vmem:[#allocation3 + $0x16] sm:$0xff] }
 0x4ce   : > { %5548 = vmatprep.mubr.msk.bf16.mxu0 %vm6272_vm0, %v7389_v20 }
 0x4d4   : > { %5517 = vmatmul.mubr.msk.bf16.gmra.mxu1 %vm406_vm2, %v2884_v63 }
 0x4d5   : > { %5549 = vmatmul.mubr.msk.bf16.gmra.mxu0 %vm406_vm2, %v3043_v19  ;;  %5520 = vmatprep.mubr.msk.bf16.mxu1 %vm6272_vm0, %v7389_v20 }
 0x4d6   : > { %5552 = vmatprep.mubr.msk.bf16.mxu0 %vm6272_vm0, %v7389_v20 }
 0x4dc   : > { %5521 = vmatmul.mubr.msk.bf16.gmra.mxu1 %vm406_vm2, %v2885_v38 }
 0x4dd   : > { %5553 = vmatmul.mubr.msk.bf16.gmra.mxu0 %vm406_vm2, %v3044_v41  ;;  %5560 = vmatprep.mubr.msk.bf16.mxu1 %vm6272_vm0, %v7389_v20  ;;  %v3353_v41 = vld [vmem:[#allocation3 + $0x65] sm:$0xff] }
 0x4de   : > { %5592 = vmatprep.mubr.msk.bf16.mxu0 %vm6272_vm0, %v7389_v20 }
 0x4e4   : > { %5561 = vmatmul.mubr.msk.bf16.vlgmr.msra.gmra.mxu1 %vm406_vm2, %v3197_v36  ;;  %v3361_v36 = vpack.c.bf16 %v3354_v7, %v3353_v41  ;;  %v3505_v41 = vld [vmem:[#allocation3 + $0x2e] sm:$0xff] }
 0x4e5   : > { %5593 = vmatmul.mubr.msk.bf16.vlgmr.msra.gmra.mxu0 %vm406_vm2, %v3356_v9  ;;  %5621 = vmatpush3.bf16.msra.mxu1 %v5874_v14  ;;  %v3202_v14 = vpack.c.bf16 %v7563_v25, %v7551_v49 }
 0x4e6   : > { %5564 = vmatprep.mubr.msk.bf16.mxu1 %vm6272_vm0, %v7389_v20  ;;  %5596 = vmatprep.mubr.msk.bf16.mxu0 %vm6272_vm0, %v7389_v20 }
 0x4e7   : > { %5622 = vmatprep.subr.bf16.mxu1 %v7389_v20 }
 0x4e9   : > { %5623 = vmatpush3.bf16.msra.mxu1 %v5875_v44 }
 0x4ea   : > { %5688 = vmatprep.subr.bf16.mxu1 %v7389_v20 }
 0x4ec   : > { %5565 = vmatmul.mubr.msk.bf16.gmra.mxu1 %vm406_vm2, %v3198_v40 }
 0x4ed   : > { %5597 = vmatmul.mubr.msk.bf16.gmra.mxu0 %vm406_vm2, %v3357_v0  ;;  %5568 = vmatprep.mubr.msk.bf16.mxu1 %vm6272_vm0, %v7389_v20  ;;  %v3196_v0 = vld [vmem:[#allocation3 + $0x74] sm:$0xff] }
 0x4ee   : > { %5600 = vmatprep.mubr.msk.bf16.mxu0 %vm6272_vm0, %v7389_v20 }
 0x4f4   : > { %5569 = vmatmul.mubr.msk.bf16.gmra.mxu1 %vm406_vm2, %v3199_v30  ;;  %v3203_v30 = vpack.c.bf16 %v3196_v0, %v3196_v0 }
 0x4f5   : > { %5601 = vmatmul.mubr.msk.bf16.gmra.mxu0 %vm406_vm2, %v3358_v22  ;;  %5572 = vmatprep.mubr.msk.bf16.mxu1 %vm6272_vm0, %v7389_v20  ;;  %v3362_v22 = vpack.c.bf16 %v3355_v45, %v3355_v45 }
 0x4f6   : > { %5604 = vmatprep.mubr.msk.bf16.mxu0 %vm6272_vm0, %v7389_v20 }
 0x4fa   : > { %v2373_v57 = vpop.f32.mrf.mxu1 }
 0x4fb   : > { %v2494_v3 = vpop.f32.mrf.mxu0 }
 0x4fc   : > { %v7606_v8 = vadd.f32 %v2494_v3, %v2373_v57  ;;  %5573 = vmatmul.mubr.msk.bf16.gmra.mxu1 %vm406_vm2, %v3200_v62  ;;  %v5370_v6 = vpop.f32.mrf.mxu1 }
 0x4fd   : > { %5605 = vmatmul.mubr.msk.bf16.gmra.mxu0 %vm406_vm2, %v3359_v23  ;;  %v5402_v48 = vpop.f32.mrf.mxu0  ;;  %5576 = vmatprep.mubr.msk.bf16.mxu1 %vm6272_vm0, %v7389_v20 }
 0x4fe   : > { %5608 = vmatprep.mubr.msk.bf16.mxu0 %vm6272_vm0, %v7389_v20  ;;  %v2376_v17 = vpop.f32.mrf.mxu1 }
 0x4ff   : > { %v2497_v10 = vpop.f32.mrf.mxu0 }
 0x500   : > { %v7614_v51 = vadd.f32 %v2497_v10, %v2376_v17  ;;  %v5371_v18 = vpop.f32.mrf.mxu1  ;;  %v3503_v10 = vld [vmem:[#allocation3 + $0x1e] sm:$0xff] }
 0x501   : > { %v5403_v13 = vpop.f32.mrf.mxu0 }
 0x502   : > { %v2381_v53 = vpop.f32.mrf.mxu1 }
 0x503   : > { %v2502_v5 = vpop.f32.mrf.mxu0 }
 0x504   : > { %v7618_v31 = vadd.f32 %v2502_v5, %v2381_v53  ;;  %5577 = vmatmul.mubr.msk.bf16.gmra.mxu1 %vm406_vm2, %v3201_v32  ;;  %v5374_v63 = vpop.f32.mrf.mxu1  ;;  %v5876_v53 = vld [vmem:[%s8284_s9 + $0x38] sm:$0xff]   ;;  %v3515_v32 = vpack.c.bf16 %v3503_v10, %v3502_v2  ;;  %v5881_v2 = vld [vmem:[%s8284_s9 + $0x10] sm:$0xff]  }
 0x505   : > { %5609 = vmatmul.mubr.msk.bf16.gmra.mxu0 %vm406_vm2, %v3360_v16  ;;  %v5406_v19 = vpop.f32.mrf.mxu0  ;;  %5580 = vmatprep.mubr.msk.bf16.mxu1 %vm6272_vm0, %v7389_v20 }
 0x506   : > { %5612 = vmatprep.mubr.msk.bf16.mxu0 %vm6272_vm0, %v7389_v20  ;;  %v2384_v39 = vpop.f32.mrf.mxu1  ;;  %v5877_v19 = vld [vmem:[%s8284_s9 + $0x30] sm:$0xff]  }
 0x507   : > { %v2505_v38 = vpop.f32.mrf.mxu0 }
 0x508   : > { %v7626_v56 = vadd.f32 %v2505_v38, %v2384_v39  ;;  %v5375_v58 = vpop.f32.mrf.mxu1 }
 0x509   : > { %v5407_v24 = vpop.f32.mrf.mxu0 }
 0x50b   : > { %v2389_v9 = vpop.f32.mrf.mxu1 }
 0x50c   : > { %v2510_v44 = vpop.f32.mrf.mxu0  ;;  %5581 = vmatmul.mubr.msk.bf16.gmra.mxu1 %vm406_vm2, %v3202_v14  ;;  %v3504_v14 = vld [vmem:[#allocation3 + $0x26] sm:$0xff] }
 0x50d   : > { %v7630_v33 = vadd.f32 %v2510_v44, %v2389_v9  ;;  %5613 = vmatmul.mubr.msk.bf16.gmra.mxu0 %vm406_vm2, %v3361_v36  ;;  %v5378_v35 = vpop.f32.mrf.mxu1  ;;  %5584 = vmatprep.mubr.msk.bf16.mxu1 %vm6272_vm0, %v7389_v20  ;;  %v5878_v36 = vld [vmem:[%s8284_s9 + $0x28] sm:$0xff]  }
 0x50e   : > { %v5410_v40 = vpop.f32.mrf.mxu0  ;;  %5616 = vmatprep.mubr.msk.bf16.mxu0 %vm6272_vm0, %v7389_v20  ;;  %v3516_v35 = vpack.c.bf16 %v3505_v41, %v3504_v14 }
 0x50f   : > { %v2392_v49 = vpop.f32.mrf.mxu1 }
 0x510   : > { %v2513_v25 = vpop.f32.mrf.mxu0 }
 0x511   : > { %v7638_v55 = vadd.f32 %v2513_v25, %v2392_v49  ;;  %v5379_v54 = vpop.f32.mrf.mxu1  ;;  %v5879_v49 = vld [vmem:[%s8284_s9 + $0x20] sm:$0xff]  }
 0x512   : > { %v5411_v4 = vpop.f32.mrf.mxu0 }
 0x513   : > { %v2397_v57 = vpop.f32.mrf.mxu1 }
 0x514   : > { %v2518_v62 = vpop.f32.mrf.mxu0  ;;  %5585 = vmatmul.mubr.msk.bf16.gmra.mxu1 %vm406_vm2, %v3203_v30 }
 0x515   : > { %v7640_v23 = vadd.f32 %v2518_v62, %v2397_v57  ;;  %5617 = vmatmul.mubr.msk.bf16.gmra.mxu0 %vm406_vm2, %v3362_v22  ;;  %v5382_v3 = vpop.f32.mrf.mxu1  ;;  %5624 = vmatprep.mubr.msk.bf16.mxu1 %vm6272_vm0, %v7389_v20  ;;  %v3507_v22 = vld [vmem:[#allocation3 + $0x3e] sm:$0xff]  ;;  %v3506_v62 = vld [vmem:[#allocation3 + $0x36] sm:$0xff] }
 0x516   : > { %v5414_v6 = vpop.f32.mrf.mxu0  ;;  %5660 = vmatprep.mubr.msk.bf16.mxu0 %vm6272_vm0, %v7389_v20  ;;  %v5880_v3 = vld [vmem:[%s8284_s9 + $0x18] sm:$0xff]  }
 0x517   : > { %v2400_v48 = vpop.f32.mrf.mxu1 }
 0x518   : > { %v2521_v17 = vpop.f32.mrf.mxu0 }
 0x519   : > { %v7648_v60 = vadd.f32 %v2521_v17, %v2400_v48  ;;  %v5383_v18 = vpop.f32.mrf.mxu1  ;;  %v3517_v17 = vpack.c.bf16 %v3507_v22, %v3506_v62 }
 0x51a   : > { %v5415_v13 = vpop.f32.mrf.mxu0 }
 0x51b   : > { %v2405_v16 = vpop.f32.mrf.mxu1 }
 0x51c   : > { %v2526_v5 = vpop.f32.mrf.mxu0  ;;  %5625 = vmatmul.mubr.msk.bf16.vlgmr.msra.gmra.mxu1 %vm406_vm2, %v3515_v32 }
 0x51d   : > { %v7654_v63 = vadd.f32 %v2526_v5, %v2405_v16  ;;  %5628 = vmatprep.mubr.msk.bf16.mxu1 %vm6272_vm0, %v7389_v20  ;;  %5689 = vmatpush3.bf16.msra.mxu1 %v5876_v53  ;;  %v5386_v39 = vpop.f32.mrf.mxu1  ;;  %v3509_v16 = vld [vmem:[#allocation3 + $0x4e] sm:$0xff] }
 0x51e   : > { %v5418_v38 = vpop.f32.mrf.mxu0  ;;  %5690 = vmatprep.subr.bf16.mxu1 %v7389_v20  ;;  %v3508_v39 = vld [vmem:[#allocation3 + $0x46] sm:$0xff] }
 0x51f   : > { %v2408_v7 = vpop.f32.mrf.mxu1  ;;  %v5882_v38 = vld [vmem:[%s8284_s9 + $0x8] sm:$0xff]  }
 0x520   : > { %v2529_v58 = vpop.f32.mrf.mxu0 }
 0x521   : > { %v7662_v24 = vadd.f32 %v2529_v58, %v2408_v7  ;;  %5691 = vmatpush3.bf16.msra.mxu1 %v5877_v19  ;;  %v5387_v9 = vpop.f32.mrf.mxu1  ;;  %v3518_v58 = vpack.c.bf16 %v3509_v16, %v3508_v39 }
 0x522   : > { %v5419_v44 = vpop.f32.mrf.mxu0  ;;  %5692 = vmatprep.subr.bf16.mxu1 %v7389_v20 }
 0x523   : > { %v5883_v44 = vld [vmem:[%s8284_s9] sm:$0xff]  }
 0x524   : > { %v2413_v40 = vpop.f32.mrf.mxu1  ;;  %5629 = vmatmul.mubr.msk.bf16.gmra.mxu1 %vm406_vm2, %v3516_v35 }
 0x525   : > { %v2534_v0 = vpop.f32.mrf.mxu0  ;;  %5632 = vmatprep.mubr.msk.bf16.mxu1 %vm6272_vm0, %v7389_v20  ;;  %5693 = vmatpush3.bf16.msra.mxu1 %v5878_v36 }
 0x526   : > { %v7669_v45 = vadd.f32 %v2534_v0, %v2413_v40  ;;  %v5390_v25 = vpop.f32.mrf.mxu1  ;;  %5694 = vmatprep.subr.bf16.mxu1 %v7389_v20 }
 0x527   : > { %v5422_v30 = vpop.f32.mrf.mxu0 }
 0x528   : > { %v2416_v54 = vpop.f32.mrf.mxu1 }
 0x529   : > { %v2537_v4 = vpop.f32.mrf.mxu0  ;;  %5695 = vmatpush3.bf16.msra.mxu1 %v5879_v49  ;;  %v3511_v49 = vld [vmem:[#allocation3 + $0x5e] sm:$0xff] }
 0x52a   : > { %v7677_v57 = vadd.f32 %v2537_v4, %v2416_v54  ;;  %v5391_v6 = vpop.f32.mrf.mxu1  ;;  %5696 = vmatprep.subr.bf16.mxu1 %v7389_v20 }
 0x52b   : > { %v5423_v48 = vpop.f32.mrf.mxu0 }
 0x52c   : > { %v2421_v10 = vpop.f32.mrf.mxu1  ;;  %5633 = vmatmul.mubr.msk.bf16.gmra.mxu1 %vm406_vm2, %v3517_v17 }
 0x52d   : > { %v2542_v18 = vpop.f32.mrf.mxu0  ;;  %5636 = vmatprep.mubr.msk.bf16.mxu1 %vm6272_vm0, %v7389_v20  ;;  %5697 = vmatpush3.bf16.msra.mxu1 %v5880_v3 }
 0x52e   : > { %v7684_v13 = vadd.f32 %v2542_v18, %v2421_v10  ;;  %v5394_v53 = vpop.f32.mrf.mxu1  ;;  %5698 = vmatprep.subr.bf16.mxu1 %v7389_v20 }
 0x52f   : > { %v5426_v32 = vpop.f32.mrf.mxu0  ;;  %v3513_v53 = vld [vmem:[#allocation3 + $0x6e] sm:$0xff] }
 0x530   : > { %v2424_v5 = vpop.f32.mrf.mxu1 }
 0x531   : > { %v2545_v19 = vpop.f32.mrf.mxu0  ;;  %5699 = vmatpush3.bf16.msra.mxu1 %v5881_v2 }
 0x532   : > { %v5395_v41 = vpop.f32.mrf.mxu1  ;;  %5700 = vmatprep.subr.bf16.mxu1 %v7389_v20 }
 0x533   : > { %v5427_v7 = vpop.f32.mrf.mxu0 }
 0x534   : > { %v2640_v14 = vpop.f32.mrf.mxu1  ;;  %5637 = vmatmul.mubr.msk.bf16.gmra.mxu1 %vm406_vm2, %v3518_v58 }
 0x535   : > { %v2799_v36 = vpop.f32.mrf.mxu0  ;;  %v2694_v9 = vadd.f32 %v2640_v14, %v7606_v8  ;;  %5640 = vmatprep.mubr.msk.bf16.mxu1 %vm6272_vm0, %v7389_v20  ;;  %5701 = vmatpush3.bf16.msra.mxu1 %v5882_v38  ;;  %v3510_v8 = vld [vmem:[#allocation3 + $0x56] sm:$0xff] }
 0x536   : > { %v5434_v35 = vpop.f32.mrf.mxu1  ;;  %5702 = vmatprep.subr.bf16.mxu1 %v7389_v20  ;;  %v3519_v62 = vpack.c.bf16 %v3511_v49, %v3510_v8  ;;  %v3514_v14 = vld [vmem:[#allocation3 + $0x76] sm:$0xff] }
 0x537   : > { %v5466_v40 = vpop.f32.mrf.mxu0  ;;  %v7704_v0 = vadd.f32 %v2799_v36, %v2694_v9 }
 0x538   : > { %v2643_v25 = vpop.f32.mrf.mxu1  ;;  %v3521_v40 = vpack.c.bf16 %v3514_v14, %v3514_v14 }
 0x539   : > { %v2802_v30 = vpop.f32.mrf.mxu0  ;;  %v2695_v22 = vadd.f32 %v2643_v25, %v7614_v51  ;;  %5703 = vmatpush3.bf16.msra.mxu1 %v5883_v44  ;;  %v3512_v51 = vld [vmem:[#allocation3 + $0x66] sm:$0xff] }
 0x53a   : > { %v5435_v54 = vpop.f32.mrf.mxu1  ;;  %v3520_v38 = vpack.c.bf16 %v3513_v53, %v3512_v51 }
 0x53b   : > { %v5467_v4 = vpop.f32.mrf.mxu0  ;;  %v7707_v3 = vadd.f32 %v2802_v30, %v2695_v22 }
 0x53c   : > { %v2648_v6 = vpop.f32.mrf.mxu1  ;;  %5641 = vmatmul.mubr.msk.bf16.gmra.mxu1 %vm406_vm2, %v3519_v62 }
 0x53d   : > { %v2807_v48 = vpop.f32.mrf.mxu0  ;;  %v2696_v17 = vadd.f32 %v2648_v6, %v7618_v31  ;;  %5644 = vmatprep.mubr.msk.bf16.mxu1 %vm6272_vm0, %v7389_v20 }
 0x53e   : > { %v5438_v10 = vpop.f32.mrf.mxu1 }
 0x53f   : > { %v5470_v18 = vpop.f32.mrf.mxu0  ;;  %v7713_v2 = vadd.f32 %v2807_v48, %v2696_v17 }
 0x540   : > { %v2651_v32 = vpop.f32.mrf.mxu1 }
 0x541   : > { %v2810_v16 = vpop.f32.mrf.mxu0  ;;  %v2697_v5 = vadd.f32 %v2651_v32, %v7626_v56 }
 0x542   : > { %v5439_v19 = vpop.f32.mrf.mxu1 }
 0x543   : > { %v5471_v39 = vpop.f32.mrf.mxu0  ;;  %v7716_v41 = vadd.f32 %v2810_v16, %v2697_v5 }
 0x544   : > { %v2656_v7 = vpop.f32.mrf.mxu1  ;;  %5645 = vmatmul.mubr.msk.bf16.gmra.mxu1 %vm406_vm2, %v3520_v38 }
 0x545   : > { %v2815_v31 = vpop.f32.mrf.mxu0  ;;  %v2698_v58 = vadd.f32 %v2656_v7, %v7630_v33  ;;  %5648 = vmatprep.mubr.msk.bf16.mxu1 %vm6272_vm0, %v7389_v20 }
 0x546   : > { %v5442_v36 = vpop.f32.mrf.mxu1 }
 0x547   : > { %v5474_v9 = vpop.f32.mrf.mxu0  ;;  %v7722_v44 = vadd.f32 %v2815_v31, %v2698_v58 }
 0x548   : > { %v2659_v56 = vpop.f32.mrf.mxu1 }
 0x549   : > { %v2818_v35 = vpop.f32.mrf.mxu0  ;;  %v2699_v49 = vadd.f32 %v2659_v56, %v7638_v55 }
 0x54a   : > { %v5443_v25 = vpop.f32.mrf.mxu1 }
 0x54b   : > { %v5475_v30 = vpop.f32.mrf.mxu0  ;;  %v7725_v22 = vadd.f32 %v2818_v35, %v2699_v49 }
 0x54c   : > { %v2664_v8 = vpop.f32.mrf.mxu1  ;;  %5649 = vmatmul.mubr.msk.bf16.gmra.mxu1 %vm406_vm2, %v3521_v40 }
 0x54d   : > { %v2823_v54 = vpop.f32.mrf.mxu0  ;;  %v2700_v33 = vadd.f32 %v2664_v8, %v7640_v23  ;;  %5704 = vmatprep.mubr.msk.bf16.mxu1 %vm6272_vm0, %v7389_v20 }
 0x54e   : > { %v5446_v4 = vpop.f32.mrf.mxu1 }
 0x54f   : > { %v5478_v62 = vpop.f32.mrf.mxu0  ;;  %v7731_v6 = vadd.f32 %v2823_v54, %v2700_v33 }
 0x550   : > { %v2667_v48 = vpop.f32.mrf.mxu1 }
 0x551   : > { %v2826_v17 = vpop.f32.mrf.mxu0  ;;  %v2701_v55 = vadd.f32 %v2667_v48, %v7648_v60  ;;  %v5884_v60 = vld [vmem:[%s8282_s7 + $0x18] sm:$0xff]  }
 0x552   : > { %v5447_v10 = vpop.f32.mrf.mxu1  ;;  %5653 = vmatpush3.bf16.msra.mxu0 %v5884_v60 }
 0x553   : > { %v5479_v18 = vpop.f32.mrf.mxu0  ;;  %v7734_v51 = vadd.f32 %v2826_v17, %v2701_v55  ;;  %5654 = vmatprep.subr.bf16.mxu0 %v7389_v20 }
 0x554   : > { %v2672_v53 = vpop.f32.mrf.mxu1  ;;  %5705 = vmatmul.mubr.bf16.vlgmr.msra.gmra.mxu1 %v7147_v27 }
 0x555   : > { %v2831_v32 = vpop.f32.mrf.mxu0  ;;  %v2702_v23 = vadd.f32 %v2672_v53, %v7654_v63  ;;  %5708 = vmatprep.mubr.msk.bf16.mxu1 %vm6272_vm0, %v7389_v20 }
 0x556   : > { %v5450_v16 = vpop.f32.mrf.mxu1 }
 0x557   : > { %v5482_v5 = vpop.f32.mrf.mxu0  ;;  %v7740_v19 = vadd.f32 %v2831_v32, %v2702_v23 }
 0x558   : > { %v2675_v39 = vpop.f32.mrf.mxu1 }
 0x559   : > { %v2834_v38 = vpop.f32.mrf.mxu0  ;;  %v2703_v7 = vadd.f32 %v2675_v39, %v7662_v24 }
 0x55a   : > { %v5451_v31 = vpop.f32.mrf.mxu1 }
 0x55b   : > { %v5483_v58 = vpop.f32.mrf.mxu0  ;;  %v7746_v27 = vadd.f32 %v2834_v38, %v2703_v7 }
 0x55c   : > { %v2680_v63 = vpop.f32.mrf.mxu1  ;;  %5709 = vmatmul.mubr.bf16.gmra.mxu1 %v7166_v52 }
 0x55d   : > { %v2839_v14 = vpop.f32.mrf.mxu0  ;;  %v2704_v36 = vadd.f32 %v2680_v63, %v7669_v45  ;;  %5712 = vmatprep.mubr.msk.bf16.mxu1 %vm6272_vm0, %v7389_v20 }
 0x55e   : > { %v5454_v9 = vpop.f32.mrf.mxu1 }
 0x55f   : > { %v5486_v56 = vpop.f32.mrf.mxu0  ;;  %v7753_v35 = vadd.f32 %v2839_v14, %v2704_v36 }
 0x560   : > { %v2683_v24 = vpop.f32.mrf.mxu1 }
 0x561   : > { %v2842_v40 = vpop.f32.mrf.mxu0  ;;  %v2705_v49 = vadd.f32 %v2683_v24, %v7677_v57 }
 0x562   : > { %v5455_v25 = vpop.f32.mrf.mxu1 }
 0x563   : > { %v5487_v30 = vpop.f32.mrf.mxu0  ;;  %v7756_v8 = vadd.f32 %v2842_v40, %v2705_v49 }
 0x564   : > { %v2688_v54 = vpop.f32.mrf.mxu1  ;;  %5713 = vmatmul.mubr.bf16.gmra.mxu1 %v7180_v15 }
 0x565   : > { %v2847_v33 = vpop.f32.mrf.mxu0  ;;  %v2706_v52 = vadd.f32 %v2688_v54, %v7684_v13  ;;  %5716 = vmatprep.mubr.msk.bf16.mxu1 %vm6272_vm0, %v7389_v20 }
 0x566   : > { %v5458_v45 = vpop.f32.mrf.mxu1 }
 0x567   : > { %v5490_v4 = vpop.f32.mrf.mxu0  ;;  %v7762_v62 = vadd.f32 %v2847_v33, %v2706_v52 }
 0x568   : > { %v2691_v48 = vpop.f32.mrf.mxu1 }
 0x569   : > { %v2850_v17 = vpop.f32.mrf.mxu0 }
 0x56a   : > { %v5459_v57 = vpop.f32.mrf.mxu1 }
 0x56b   : > { %v5491_v55 = vpop.f32.mrf.mxu0  ;;  %v5885_v57 = vld [vmem:[%s8282_s7 + $0x10] sm:$0xff]  }
 0x56c   : > { %v2958_v10 = vpop.f32.mrf.mxu1  ;;  %5717 = vmatmul.mubr.bf16.gmra.mxu1 %v7193_v34  ;;  %5655 = vmatpush3.bf16.msra.mxu0 %v5885_v57 }
 0x56d   : > { %v3117_v18 = vpop.f32.mrf.mxu0  ;;  %v3012_v53 = vadd.f32 %v2958_v10, %v7704_v0  ;;  %5720 = vmatprep.mubr.msk.bf16.mxu1 %vm6272_vm0, %v7389_v20 }
 0x56e   : > { %v5498_v15 = vpop.f32.mrf.mxu1 }
 0x56f   : > { %v5530_v13 = vpop.f32.mrf.mxu0  ;;  %v7768_v32 = vadd.f32 %v3117_v18, %v3012_v53  ;;  %v7799_v53 = vld [vmem:[#allocation2 + $0x73] sm:$0xff] }
 0x570   : > { %v2961_v23 = vpop.f32.mrf.mxu1  ;;  %5656 = vmatprep.subr.bf16.mxu0 %v7799_v53 }
 0x571   : > { %v3120_v16 = vpop.f32.mrf.mxu0  ;;  %v3013_v5 = vadd.f32 %v2961_v23, %v7707_v3 }
 0x572   : > { %v5499_v39 = vpop.f32.mrf.mxu1 }
 0x573   : > { %v5531_v38 = vpop.f32.mrf.mxu0  ;;  %v7771_v60 = vadd.f32 %v3120_v16, %v3013_v5 }
 0x574   : > { %v2966_v7 = vpop.f32.mrf.mxu1  ;;  %5721 = vmatmul.mubr.bf16.gmra.mxu1 %v7206_v50  ;;  %v5887_v38 = vld [vmem:[%s8282_s7] sm:$0xff]  }
 0x575   : > { %v3125_v31 = vpop.f32.mrf.mxu0  ;;  %v3014_v34 = vadd.f32 %v2966_v7, %v7713_v2  ;;  %5724 = vmatprep.mubr.msk.bf16.mxu1 %vm6272_vm0, %v7389_v20 }
 0x576   : > { %v5502_v0 = vpop.f32.mrf.mxu1 }
 0x577   : > { %v5534_v58 = vpop.f32.mrf.mxu0  ;;  %v7777_v63 = vadd.f32 %v3125_v31, %v3014_v34 }
 0x578   : > { %v2969_v14 = vpop.f32.mrf.mxu1 }
 0x579   : > { %v3128_v36 = vpop.f32.mrf.mxu0  ;;  %v3015_v3 = vadd.f32 %v2969_v14, %v7716_v41 }
 0x57a   : > { %v5503_v9 = vpop.f32.mrf.mxu1 }
 0x57b   : > { %v5535_v56 = vpop.f32.mrf.mxu0  ;;  %v7780_v24 = vadd.f32 %v3128_v36, %v3015_v3 }
 0x57c   : > { %v2974_v40 = vpop.f32.mrf.mxu1  ;;  %5725 = vmatmul.mubr.bf16.gmra.mxu1 %v7219_v59 }
 0x57d   : > { %v3133_v49 = vpop.f32.mrf.mxu0  ;;  %v3016_v50 = vadd.f32 %v2974_v40, %v7722_v44  ;;  %5728 = vmatprep.mubr.msk.bf16.mxu1 %vm6272_vm0, %v7389_v20 }
 0x57e   : > { %v5506_v2 = vpop.f32.mrf.mxu1 }
 0x57f   : > { %v5538_v25 = vpop.f32.mrf.mxu0  ;;  %v7786_v30 = vadd.f32 %v3133_v49, %v3016_v50 }
 0x580   : > { %v2977_v54 = vpop.f32.mrf.mxu1 }
 0x581   : > { %v3136_v33 = vpop.f32.mrf.mxu0  ;;  %v3017_v41 = vadd.f32 %v2977_v54, %v7725_v22 }
 0x582   : > { %v5507_v52 = vpop.f32.mrf.mxu1 }
 0x583   : > { %v5539_v45 = vpop.f32.mrf.mxu0  ;;  %v7789_v4 = vadd.f32 %v3136_v33, %v3017_v41 }
 0x584   : > { %v2982_v48 = vpop.f32.mrf.mxu1  ;;  %5729 = vmatmul.mubr.bf16.gmra.mxu1 %v7229_v12 }
 0x585   : > { %v3141_v17 = vpop.f32.mrf.mxu0  ;;  %v3018_v59 = vadd.f32 %v2982_v48, %v7731_v6  ;;  %v5886_v6 = vld [vmem:[%s8282_s7 + $0x8] sm:$0xff]  }
 0x586   : > { %v5510_v44 = vpop.f32.mrf.mxu1  ;;  %5657 = vmatpush3.bf16.msra.mxu0 %v5886_v6 }
 0x587   : > { %v5542_v20 = vpop.f32.mrf.mxu0  ;;  %v7796_v55 = vadd.f32 %v3141_v17, %v3018_v59  ;;  %5658 = vmatprep.subr.bf16.mxu0 %v7799_v53 }
 0x588   : > { %v2985_v10 = vpop.f32.mrf.mxu1 }
 0x589   : > { %v3144_v22 = vpop.f32.mrf.mxu0  ;;  %v3019_v18 = vadd.f32 %v2985_v10, %v7734_v51 }
 0x58a   : > { %v5511_v12 = vpop.f32.mrf.mxu1  ;;  %5659 = vmatpush3.bf16.msra.mxu0 %v5887_v38 }
 0x58b   : > { %v5543_v15 = vpop.f32.mrf.mxu0  ;;  %v7805_v13 = vadd.f32 %v3144_v22, %v3019_v18  ;;  %5732 = vmatprep.subr.bf16.mxu0 %v7799_v53 }
 0x58c   : > { %v2990_v23 = vpop.f32.mrf.mxu1 }
 0x58d   : > { %v3149_v16 = vpop.f32.mrf.mxu0  ;;  %v3020_v5 = vadd.f32 %v2990_v23, %v7740_v19 }
 0x58e   : > { %v5514_v51 = vpop.f32.mrf.mxu1 }
 0x58f   : > { %v5546_v39 = vpop.f32.mrf.mxu0  ;;  %v7812_v7 = vadd.f32 %v3149_v16, %v3020_v5 }
 0x590   : > { %v2993_v31 = vpop.f32.mrf.mxu1 }
 0x591   : > { %v3152_v34 = vpop.f32.mrf.mxu0  ;;  %v3021_v0 = vadd.f32 %v2993_v31, %v7746_v27 }
 0x592   : > { %v5515_v58 = vpop.f32.mrf.mxu1 }
 0x593   : > { %v5547_v14 = vpop.f32.mrf.mxu0  ;;  %v7816_v19 = vadd.f32 %v3152_v34, %v3021_v0 }
 0x594   : > { %v2998_v36 = vpop.f32.mrf.mxu1 }
 0x595   : > { %v3157_v3 = vpop.f32.mrf.mxu0  ;;  %v3022_v9 = vadd.f32 %v2998_v36, %v7753_v35 }
 0x596   : > { %v5518_v56 = vpop.f32.mrf.mxu1 }
 0x597   : > { %v5550_v40 = vpop.f32.mrf.mxu0  ;;  %v7819_v49 = vadd.f32 %v3157_v3, %v3022_v9 }
 0x598   : > { %v3001_v50 = vpop.f32.mrf.mxu1 }
 0x599   : > { %v3160_v2 = vpop.f32.mrf.mxu0  ;;  %v3023_v25 = vadd.f32 %v3001_v50, %v7756_v8 }
 0x59a   : > { %v5519_v54 = vpop.f32.mrf.mxu1 }
 0x59b   : > { %v5551_v27 = vpop.f32.mrf.mxu0  ;;  %v7822_v33 = vadd.f32 %v3160_v2, %v3023_v25 }
 0x59c   : > { %v3006_v41 = vpop.f32.mrf.mxu1 }
 0x59d   : > { %v3165_v52 = vpop.f32.mrf.mxu0  ;;  %v3024_v45 = vadd.f32 %v3006_v41, %v7762_v62 }
 0x59e   : > { %v5522_v48 = vpop.f32.mrf.mxu1 }
 0x59f   : > { %v5554_v17 = vpop.f32.mrf.mxu0  ;;  %v7825_v59 = vadd.f32 %v3165_v52, %v3024_v45 }
 0x5a0   : > { %v3009_v35 = vpop.f32.mrf.mxu1 }
 0x5a1   : > { %v3168_v44 = vpop.f32.mrf.mxu0 }
 0x5a2   : > { %v5523_v20 = vpop.f32.mrf.mxu1 }
 0x5a3   : > { %v5555_v57 = vpop.f32.mrf.mxu0 }
 0x5a4   : > { %v3276_v10 = vpop.f32.mrf.mxu1 }
 0x5a5   : > { %v3435_v22 = vpop.f32.mrf.mxu0 }
 0x5a6   : > { %v5562_v18 = vpop.f32.mrf.mxu1 }
 0x5a7   : > { %v5594_v8 = vpop.f32.mrf.mxu0 }
 0x5a8   : > { %v3279_v12 = vpop.f32.mrf.mxu1 }
 0x5a9   : > { %v3438_v15 = vpop.f32.mrf.mxu0 }
 0x5aa   : > { %v5563_v6 = vpop.f32.mrf.mxu1 }
 0x5ab   : > { %v5595_v23 = vpop.f32.mrf.mxu0 }
 0x5ac   : > { %v3284_v16 = vpop.f32.mrf.mxu1 }
 0x5ad   : > { %v7827_v5 = vpop.f32.mrf.mxu0 }
 0x5ae   : > { %v5566_v62 = vpop.f32.mrf.mxu1 }
 0x5af   : > { %v5598_v51 = vpop.f32.mrf.mxu0 }
 0x5b0   : > { %v3287_v39 = vpop.f32.mrf.mxu1 }
 0x5b1   : > { %v7829_v38 = vpop.f32.mrf.mxu0 }
 0x5b2   : > { %v5567_v31 = vpop.f32.mrf.mxu1 }
 0x5b3   : > { %v5599_v34 = vpop.f32.mrf.mxu0 }
 0x5b4   : > { %v7831_v0 = vpop.f32.mrf.mxu1 }
 0x5b5   : > { %v7833_v58 = vpop.f32.mrf.mxu0 }
 0x5b6   : > { %v5570_v14 = vpop.f32.mrf.mxu1 }
 0x5b7   : > { %v5602_v36 = vpop.f32.mrf.mxu0 }
 0x5b8   : > { %v7835_v3 = vpop.f32.mrf.mxu1 }
 0x5b9   : > { %v7837_v9 = vpop.f32.mrf.mxu0 }
 0x5ba   : > { %v5571_v56 = vpop.f32.mrf.mxu1 }
 0x5bb   : > { %v5603_v40 = vpop.f32.mrf.mxu0 }
 0x5bc   : > { %v7839_v50 = vpop.f32.mrf.mxu1 }
 0x5bd   : > { %v7841_v2 = vpop.f32.mrf.mxu0 }
 0x5be   : > { %v5574_v25 = vpop.f32.mrf.mxu1 }
 0x5bf   : > { %v5606_v54 = vpop.f32.mrf.mxu0 }
 0x5c0   : > { %v7843_v27 = vpop.f32.mrf.mxu1 }
 0x5c1   : > { %v7845_v41 = vpop.f32.mrf.mxu0 }
 0x5c2   : > { %v5575_v52 = vpop.f32.mrf.mxu1 }
 0x5c3   : > { %v5607_v45 = vpop.f32.mrf.mxu0  ;;  %v3330_v52 = vadd.f32 %v3276_v10, %v7768_v32 }
 0x5c4   : > { %v7847_v48 = vpop.f32.mrf.mxu1  ;;  %v3663_v45 = vsub.s32 4, %v6523_v47 }
 0x5c5   : > { %v7849_v17 = vpop.f32.mrf.mxu0 }
 0x5c6   : > { %v5578_v35 = vpop.f32.mrf.mxu1 }
 0x5c7   : > { %v5610_v44 = vpop.f32.mrf.mxu0 }
 0x5c8   : > { %v7851_v20 = vpop.f32.mrf.mxu1 }
 0x5c9   : > { %v7853_v57 = vpop.f32.mrf.mxu0 }
 0x5ca   : > { %v5579_v18 = vpop.f32.mrf.mxu1 }
 0x5cb   : > { %v5611_v8 = vpop.f32.mrf.mxu0 }
 0x5cc   : > { %v7855_v6 = vpop.f32.mrf.mxu1 }
 0x5cd   : > { %v7857_v23 = vpop.f32.mrf.mxu0 }
 0x5ce   : > { %v5582_v62 = vpop.f32.mrf.mxu1 }
 0x5cf   : > { %v5614_v51 = vpop.f32.mrf.mxu0  ;;  %v3489_v62 = vadd.f32 %v3435_v22, %v3330_v52 }
 0x5d0   : > { %v7859_v31 = vpop.f32.mrf.mxu1  ;;  %v3331_v51 = vadd.f32 %v3279_v12, %v7771_v60 }
 0x5d1   : > { %v7861_v34 = vpop.f32.mrf.mxu0 }
 0x5d2   : > { %v5583_v14 = vpop.f32.mrf.mxu1  ;;  %v3490_v10 = vadd.f32 %v3438_v15, %v3331_v51 }
 0x5d3   : > { %v5615_v36 = vpop.f32.mrf.mxu0  ;;  %v7873_v14 = vld [vmem:[%s8285_s10] sm:$0xff] }
 0x5d4   : > { %v7863_v56 = vpop.f32.mrf.mxu1  ;;  %8293 = vst [vmem:[#allocation6_spill] sm:$0xff] %v7873_v14  ;;  %v7876_v36 = vrot.slane %v7873_v14, %v3663_v45 }
 0x5d5   : > { %v7865_v40 = vpop.f32.mrf.mxu0 }
 0x5d6   : > { %v5586_v25 = vpop.f32.mrf.mxu1 }
 0x5d7   : > { %v5618_v54 = vpop.f32.mrf.mxu0 }
 0x5d8   : > { %v3327_v35 = vpop.f32.mrf.mxu1 }
 0x5d9   : > { %v3486_v44 = vpop.f32.mrf.mxu0  ;;  %v3332_v35 = vadd.f32 %v3284_v16, %v7777_v63 }
 0x5da   : > { %v5587_v18 = vpop.f32.mrf.mxu1 }
 0x5db   : > { %v5619_v8 = vpop.f32.mrf.mxu0  ;;  %v3491_v18 = vadd.f32 %v7827_v5, %v3332_v35 }
 0x5dc   : > { %v3594_v25 = vpop.f32.mrf.mxu1  ;;  %v3333_v8 = vadd.f32 %v3287_v39, %v7780_v24 }
 0x5dd   : > { %v3648_v54 = vadd.f32 %v3594_v25, %v3489_v62  ;;  %v3334_v25 = vadd.f32 %v7831_v0, %v7786_v30 }
 0x5de   : > { %v5626_v32 = vpop.f32.mrf.mxu1  ;;  %v3492_v51 = vadd.f32 %v7829_v38, %v3333_v8  ;;  %v3336_v8 = vadd.f32 %v7839_v50, %v7796_v55 }
 0x5df   : > { %v7880_v44 = vadd.f32 %v7876_v36, %v3648_v54  ;;  %v3493_v35 = vadd.f32 %v7833_v58, %v3334_v25 }
 0x5e0   : > { %v3597_v22 = vpop.f32.mrf.mxu1 }
 0x5e1   : > { %v3678_v60 = vmin.f32 %v7880_v44, 20.0  ;;  %v3649_v12 = vadd.f32 %v3597_v22, %v3490_v10  ;;  %v3335_v22 = vadd.f32 %v7835_v3, %v7789_v4 }
 0x5e2   : > { %v5627_v52 = vpop.f32.mrf.mxu1 }
 0x5e3   : > { %v3691_v45 = vmul.f32 1.442695, %v3678_v60  ;;  %v7886_v14 = vadd.f32 %v7876_v36, %v3649_v12 }
 0x5e4   : > { %v3602_v62 = vpop.f32.mrf.mxu1 }
 0x5e5   : > { %6100 = vpow2.f32 %v3691_v45  ;;  %v3679_v63 = vmin.f32 %v7886_v14, 20.0  ;;  %v3650_v15 = vadd.f32 %v3602_v62, %v3491_v18  ;;  %v3494_v18 = vadd.f32 %v7837_v9, %v3335_v22 }
 0x5e6   : > { %v5630_v16 = vpop.f32.mrf.mxu1 }
 0x5e7   : > { %v3693_v54 = vmul.f32 1.442695, %v3679_v63  ;;  %v7893_v5 = vadd.f32 %v7876_v36, %v3650_v15  ;;  %v3337_v15 = vadd.f32 %v7843_v27, %v7805_v13  ;;  %v3338_v13 = vadd.f32 %v7847_v48, %v7812_v7 }
 0x5e8   : > { %v3605_v24 = vpop.f32.mrf.mxu1 }
 0x5e9   : > { %6102 = vpow2.f32 %v3693_v54  ;;  %v3680_v39 = vmin.f32 %v7893_v5, 20.0  ;;  %v3651_v32 = vadd.f32 %v3605_v24, %v3492_v51  ;;  %v3495_v51 = vadd.f32 %v7841_v2, %v3336_v8 }
 0x5ea   : > { %v5631_v10 = vpop.f32.mrf.mxu1  ;;  %v3497_v7 = vadd.f32 %v7849_v17, %v3338_v13  ;;  %v3340_v17 = vadd.f32 %v7855_v6, %v7819_v49 }
 0x5eb   : > { %v3695_v60 = vmul.f32 1.442695, %v3680_v39  ;;  %v7900_v38 = vadd.f32 %v7876_v36, %v3651_v32  ;;  %v3496_v10 = vadd.f32 %v7845_v41, %v3337_v15 }
 0x5ec   : > { %v3610_v30 = vpop.f32.mrf.mxu1  ;;  %v3499_v6 = vadd.f32 %v7857_v23, %v3340_v17 }
 0x5ed   : > { %6104 = vpow2.f32 %v3695_v60  ;;  %v3681_v0 = vmin.f32 %v7900_v38, 20.0  ;;  %v3652_v12 = vadd.f32 %v3610_v30, %v3493_v35 }
 0x5ee   : > { %v5634_v52 = vpop.f32.mrf.mxu1 }
 0x5ef   : > { %v3697_v45 = vmul.f32 1.442695, %v3681_v0  ;;  %v7907_v58 = vadd.f32 %v7876_v36, %v3652_v12 }
 0x5f0   : > { %v3613_v4 = vpop.f32.mrf.mxu1 }
 0x5f1   : > { %6106 = vpow2.f32 %v3697_v45  ;;  %v3682_v3 = vmin.f32 %v7907_v58, 20.0  ;;  %v3653_v62 = vadd.f32 %v3613_v4, %v3494_v18  ;;  %v3339_v18 = vadd.f32 %v7851_v20, %v7816_v19 }
 0x5f2   : > { %v6101_v63 = vpop.eup %6100  ;;  %v5635_v16 = vpop.f32.mrf.mxu1 }
 0x5f3   : > { %v3717_v9 = vadd.f32 2.0, %v6101_v63  ;;  %v3699_v25 = vmul.f32 1.442695, %v3682_v3  ;;  %v7914_v55 = vadd.f32 %v7876_v36, %v3653_v62  ;;  %v3498_v20 = vadd.f32 %v7853_v57, %v3339_v18 }
 0x5f4   : > { %v3618_v50 = vpop.f32.mrf.mxu1  ;;  %v3341_v57 = vadd.f32 %v7859_v31, %v7822_v33 }
 0x5f5   : > { %v7916_v54 = vmul.f32 %v6101_v63, %v3717_v9  ;;  %6108 = vpow2.f32 %v3699_v25  ;;  %v3683_v24 = vmin.f32 %v7914_v55, 20.0  ;;  %v3654_v39 = vadd.f32 %v3618_v50, %v3495_v51 }
 0x5f6   : > { %v6103_v32 = vpop.eup %6102  ;;  %v5638_v35 = vpop.f32.mrf.mxu1 }
 0x5f7   : > { %v3756_v2 = vadd.f32 2.0, %v7916_v54  ;;  %v3718_v27 = vadd.f32 2.0, %v6103_v32  ;;  %v3701_v22 = vmul.f32 1.442695, %v3683_v24  ;;  %v7924_v60 = vadd.f32 %v7876_v36, %v3654_v39 }
 0x5f8   : > { %v3621_v30 = vpop.f32.mrf.mxu1 }
 0x5f9   : > { %6110 = vrcp.f32 %v3756_v2  ;;  %v3731_v0 = vmul.f32 %v6103_v32, %v3718_v27  ;;  %v3655_v12 = vadd.f32 %v3621_v30, %v3496_v10  ;;  %v3684_v41 = vmin.f32 %v7924_v60, 20.0 }
 0x5fa   : > { %v6105_v52 = vpop.eup %6104  ;;  %6112 = vpow2.f32 %v3701_v22  ;;  %v5639_v8 = vpop.f32.mrf.mxu1 }
 0x5fb   : > { %v3757_v48 = vadd.f32 2.0, %v3731_v0  ;;  %v3719_v45 = vadd.f32 2.0, %v6105_v52  ;;  %v7931_v4 = vadd.f32 %v7876_v36, %v3655_v12  ;;  %v3703_v3 = vmul.f32 1.442695, %v3684_v41 }
 0x5fc   : > { %v3626_v62 = vpop.f32.mrf.mxu1  ;;  %v3500_v41 = vadd.f32 %v7861_v34, %v3341_v57  ;;  %v3744_v34 = vmul.f32 %v3731_v0, %v7886_v14 }
 0x5fd   : > { %6114 = vrcp.f32 %v3757_v48  ;;  %v7933_v63 = vmul.f32 %v6105_v52, %v3719_v45  ;;  %v3685_v15 = vmin.f32 %v7931_v4, 20.0  ;;  %v3656_v16 = vadd.f32 %v3626_v62, %v3497_v7 }
 0x5fe   : > { %v6107_v19 = vpop.eup %6106  ;;  %6116 = vpow2.f32 %v3703_v3  ;;  %v5642_v51 = vpop.f32.mrf.mxu1  ;;  %v3342_v7 = vadd.f32 %v7863_v56, %v7825_v59  ;;  %v3743_v48 = vmul.f32 %v7916_v54, %v7880_v44 }
 0x5ff   : > { %v3758_v9 = vadd.f32 2.0, %v7933_v63  ;;  %v3720_v25 = vadd.f32 2.0, %v6107_v19  ;;  %v3705_v50 = vmul.f32 1.442695, %v3685_v15  ;;  %v7941_v24 = vadd.f32 %v7876_v36, %v3656_v16 }
 0x600   : > { %v3629_v39 = vpop.f32.mrf.mxu1  ;;  %v3501_v54 = vadd.f32 %v7865_v40, %v3342_v7 }
 0x601   : > { %6118 = vrcp.f32 %v3758_v9  ;;  %v7943_v32 = vmul.f32 %v6107_v19, %v3720_v25  ;;  %v3657_v10 = vadd.f32 %v3629_v39, %v3498_v20  ;;  %v3686_v13 = vmin.f32 %v7941_v24, 20.0 }
 0x602   : > { %v6109_v35 = vpop.eup %6108  ;;  %6120 = vpow2.f32 %v3705_v50  ;;  %v5643_v49 = vpop.f32.mrf.mxu1 }
 0x603   : > { %v3759_v2 = vadd.f32 2.0, %v7943_v32  ;;  %v3721_v27 = vadd.f32 2.0, %v6109_v35  ;;  %v7951_v22 = vadd.f32 %v7876_v36, %v3657_v10  ;;  %v3707_v30 = vmul.f32 1.442695, %v3686_v13 }
 0x604   : > { %v3634_v12 = vpop.f32.mrf.mxu1 }
 0x605   : > { %6122 = vrcp.f32 %v3759_v2  ;;  %v7953_v52 = vmul.f32 %v6109_v35, %v3721_v27  ;;  %v3687_v18 = vmin.f32 %v7951_v22, 20.0  ;;  %v3658_v33 = vadd.f32 %v3634_v12, %v3499_v6  ;;  %v5888_v2 = vld [vmem:[%s8283_s8 + $0x18] sm:$0xff]  }
 0x606   : > { %v6111_v31 = vpop.eup %6110  ;;  %6124 = vpow2.f32 %v3707_v30  ;;  %v5646_v8 = vpop.f32.mrf.mxu1  ;;  %v3745_v12 = vmul.f32 %v7933_v63, %v7893_v5 }
 0x607   : > { %v6113_v23 = vpop.eup %6112  ;;  %v3760_v45 = vadd.f32 2.0, %v7953_v52  ;;  %v3709_v3 = vmul.f32 1.442695, %v3687_v18  ;;  %v7963_v15 = vadd.f32 %v7876_v36, %v3658_v33  ;;  %v3782_v19 = vmul.f32 %v6111_v31, %v3743_v48 }
 0x608   : > { %v3722_v62 = vadd.f32 2.0, %v6113_v23  ;;  %v3637_v16 = vpop.f32.mrf.mxu1  ;;  %v3746_v8 = vmul.f32 %v7943_v32, %v7900_v38 }
 0x609   : > { %6126 = vrcp.f32 %v3760_v45  ;;  %v3659_v20 = vadd.f32 %v3637_v16, %v3500_v41  ;;  %v3688_v59 = vmin.f32 %v7963_v15, 20.0  ;;  %v3795_v10 = vadd.f32 %v3782_v19, %v7137_v26 }
 0x60a   : > { %v6115_v51 = vpop.eup %6114  ;;  %v7966_v17 = vmul.f32 %v6113_v23, %v3722_v62  ;;  %6128 = vpow2.f32 %v3709_v3  ;;  %v5647_v56 = vpop.f32.mrf.mxu1 }
 0x60b   : > { %v6117_v44 = vpop.eup %6116  ;;  %v3783_v9 = vmul.f32 %v6115_v51, %v3744_v34  ;;  %v7971_v25 = vadd.f32 %v7876_v36, %v3659_v20  ;;  %v3711_v14 = vmul.f32 1.442695, %v3688_v59  ;;  %v3747_v56 = vmul.f32 %v7953_v52, %v7907_v58 }
 0x60c   : > { %v3761_v50 = vadd.f32 2.0, %v7966_v17  ;;  %v3723_v39 = vadd.f32 2.0, %v6117_v44  ;;  %v3642_v0 = vpop.f32.mrf.mxu1 }
 0x60d   : > { %v3796_v35 = vadd.f32 %v3783_v9, %v7139_v42  ;;  %v3689_v57 = vmin.f32 %v7971_v25, 20.0  ;;  %v3660_v13 = vadd.f32 %v3642_v0, %v3501_v54 }
 0x60e   : > { %v6119_v49 = vpop.eup %6118  ;;  %6130 = vrcp.f32 %v3761_v50  ;;  %v7977_v6 = vmul.f32 %v6117_v44, %v3723_v39  ;;  %v5650_v40 = vpop.f32.mrf.mxu1 }
 0x60f   : > { %v6121_v27 = vpop.eup %6120  ;;  %v3808_v30 = vpack.c.bf16 %v3796_v35, %v3795_v10  ;;  %6132 = vpow2.f32 %v3711_v14  ;;  %v3713_v26 = vmul.f32 1.442695, %v3689_v57  ;;  %v7986_v33 = vadd.f32 %v7876_v36, %v3660_v13 }
 0x610   : > { %v3762_v42 = vadd.f32 2.0, %v7977_v6  ;;  %v3724_v18 = vadd.f32 2.0, %v6121_v27  ;;  %v3645_v31 = vpop.f32.mrf.mxu1  ;;  %v3784_v41 = vmul.f32 %v6119_v49, %v3745_v12 }
 0x611   : > { %6134 = vpow2.f32 %v3713_v26  ;;  %5661 = vmatmul.mubr.msk.bf16.vlgmr.msra.gmra.mxu0 %vm1724_vm1, %v3808_v30  ;;  %v3690_v5 = vmin.f32 %v7986_v33, 20.0  ;;  %v3749_v30 = vmul.f32 %v7977_v6, %v7924_v60 }
 0x612   : > { %v6123_v23 = vpop.eup %6122  ;;  %6136 = vrcp.f32 %v3762_v42  ;;  %v3737_v7 = vmul.f32 %v6121_v27, %v3724_v18  ;;  %v5651_v63 = vpop.f32.mrf.mxu1  ;;  %5664 = vmatprep.mubr.msk.bf16.mxu0 %vm6272_vm0, %v7799_v53  ;;  %5733 = vmatpush3.bf16.msra.mxu0 %v5888_v2  ;;  %v3797_v62 = vadd.f32 %v3784_v41, %v7159_v1  ;;  %v3748_v1 = vmul.f32 %v7966_v17, %v7914_v55 }
 0x613   : > { %v6125_v36 = vpop.eup %6124  ;;  %v3785_v48 = vmul.f32 %v6123_v23, %v3746_v8  ;;  %5734 = vmatprep.subr.bf16.mxu0 %v7799_v53  ;;  %v3715_v38 = vmul.f32 1.442695, %v3690_v5 }
 0x614   : > { %v3763_v45 = vadd.f32 2.0, %v3737_v7  ;;  %v3725_v3 = vadd.f32 2.0, %v6125_v36  ;;  %v7995_v32 = vpop.f32.mrf.mxu1  ;;  %v3750_v31 = vmul.f32 %v3737_v7, %v7931_v4 }
 0x615   : > { %v3798_v16 = vadd.f32 %v3785_v48, %v7161_v61 }
 0x616   : > { %v6127_v19 = vpop.eup %6126  ;;  %6138 = vrcp.f32 %v3763_v45  ;;  %v3738_v34 = vmul.f32 %v6125_v36, %v3725_v3  ;;  %v5706_v20 = vpop.f32.mrf.mxu1 }
 0x617   : > { %v6129_v51 = vpop.eup %6128  ;;  %v3809_v59 = vpack.c.bf16 %v3798_v16, %v3797_v62  ;;  %6140 = vpow2.f32 %v3715_v38  ;;  %v3786_v50 = vmul.f32 %v6127_v19, %v3747_v56 }
 0x618   : > { %v3764_v44 = vadd.f32 2.0, %v3738_v34  ;;  %v3726_v54 = vadd.f32 2.0, %v6129_v51  ;;  %v8001_v9 = vpop.f32.mrf.mxu1  ;;  %v3751_v45 = vmul.f32 %v3738_v34, %v7941_v24 }
 0x619   : > { %5665 = vmatmul.mubr.msk.bf16.gmra.mxu0 %vm1724_vm1, %v3809_v59  ;;  %v3799_v13 = vadd.f32 %v3786_v50, %v7174_v11 }
 0x61a   : > { %6142 = vrcp.f32 %v3764_v44  ;;  %v3739_v61 = vmul.f32 %v6129_v51, %v3726_v54  ;;  %v5707_v39 = vpop.f32.mrf.mxu1  ;;  %5668 = vmatprep.mubr.msk.bf16.mxu0 %vm6272_vm0, %v7799_v53 }
 0x61b   : > { %v6131_v14 = vpop.eup %6130 }
 0x61c   : > { %v6133_v0 = vpop.eup %6132  ;;  %v3787_v10 = vmul.f32 %v6131_v14, %v3748_v1  ;;  %v3765_v58 = vadd.f32 2.0, %v3739_v61  ;;  %v8008_v52 = vpop.f32.mrf.mxu1  ;;  %v3752_v16 = vmul.f32 %v3739_v61, %v7951_v22 }
 0x61d   : > { %v3727_v35 = vadd.f32 2.0, %v6133_v0 }
 0x61e   : > { %v6135_v57 = vpop.eup %6134  ;;  %v3800_v49 = vadd.f32 %v3787_v10, %v7176_v43  ;;  %6144 = vrcp.f32 %v3765_v58  ;;  %v5710_v55 = vpop.f32.mrf.mxu1 }
 0x61f   : > { %v6137_v17 = vpop.eup %6136  ;;  %v3740_v40 = vmul.f32 %v6133_v0, %v3727_v35  ;;  %v3728_v2 = vadd.f32 2.0, %v6135_v57 }
 0x620   : > { %v3810_v27 = vpack.c.bf16 %v3800_v49, %v3799_v13  ;;  %v8014_v12 = vpop.f32.mrf.mxu1  ;;  %v3788_v18 = vmul.f32 %v6137_v17, %v3749_v30  ;;  %v8295_v49 = vld [vmem:[#allocation5_spill] sm:$0xff] }
 0x621   : > { %v3766_v26 = vadd.f32 2.0, %v3740_v40  ;;  %v3741_v42 = vmul.f32 %v6135_v57, %v3728_v2  ;;  %v3753_v59 = vmul.f32 %v3740_v40, %v7963_v15  ;;  %v8294_v15 = vld [vmem:[#allocation4_spill] sm:$0xff] }
 0x622   : > { %5669 = vmatmul.mubr.msk.bf16.gmra.mxu0 %vm1724_vm1, %v3810_v27  ;;  %v5711_v11 = vpop.f32.mrf.mxu1  ;;  %v3801_v6 = vadd.f32 %v3788_v18, %v7187_v37  ;;  %v5889_v18 = vld [vmem:[%s8283_s8 + $0x10] sm:$0xff]  }
 0x623   : > { %v6139_v43 = vpop.eup %6138  ;;  %6146 = vrcp.f32 %v3766_v26  ;;  %v3767_v41 = vadd.f32 2.0, %v3741_v42  ;;  %5672 = vmatprep.mubr.msk.bf16.mxu0 %vm6272_vm0, %v7799_v53  ;;  %v3754_v50 = vmul.f32 %v3741_v42, %v7971_v25  ;;  %5735 = vmatpush3.bf16.msra.mxu0 %v5889_v18  ;;  %v5891_v11 = vld [vmem:[%s8283_s8] sm:$0xff]  }
 0x624   : > { %v6141_v8 = vpop.eup %6140  ;;  %v3789_v23 = vmul.f32 %v6139_v43, %v3750_v31  ;;  %v8020_v5 = vpop.f32.mrf.mxu1  ;;  %5736 = vmatprep.subr.bf16.mxu0 %v7799_v53  ;;  %v5890_v31 = vld [vmem:[%s8283_s8 + $0x8] sm:$0xff]   ;;  %v3825_v43 = vsub.s32 5, %v6523_v47 }
 0x625   : > { %6148 = vrcp.f32 %v3767_v41  ;;  %v3729_v60 = vadd.f32 2.0, %v6141_v8  ;;  %v8296_v41 = vld [vmem:[#allocation6_spill] sm:$0xff] }
 0x626   : > { %v3802_v63 = vadd.f32 %v3789_v23, %v7189_v28  ;;  %v5714_v4 = vpop.f32.mrf.mxu1 }
 0x627   : > { %v6143_v7 = vpop.eup %6142  ;;  %v3742_v36 = vmul.f32 %v6141_v8, %v3729_v60  ;;  %5737 = vmatpush3.bf16.msra.mxu0 %v5890_v31  ;;  %v8075_v8 = vrot.slane %v8296_v41, %v3825_v43 }
 0x628   : > { %v3811_v48 = vpack.c.bf16 %v3802_v63, %v3801_v6  ;;  %v8025_v3 = vpop.f32.mrf.mxu1  ;;  %v3790_v62 = vmul.f32 %v6143_v7, %v3751_v45  ;;  %5738 = vmatprep.subr.bf16.mxu0 %v7799_v53 }
 0x629   : > { %v3768_v38 = vadd.f32 2.0, %v3742_v36  ;;  %v3755_v58 = vmul.f32 %v3742_v36, %v7986_v33 }
 0x62a   : > { %5673 = vmatmul.mubr.msk.bf16.gmra.mxu0 %vm1724_vm1, %v3811_v48  ;;  %v5715_v19 = vpop.f32.mrf.mxu1  ;;  %v3803_v51 = vadd.f32 %v3790_v62, %v7200_v21 }
 0x62b   : > { %v6145_v20 = vpop.eup %6144  ;;  %6150 = vrcp.f32 %v3768_v38  ;;  %5676 = vmatprep.mubr.msk.bf16.mxu0 %vm6272_vm0, %v7799_v53  ;;  %5739 = vmatpush3.bf16.msra.mxu0 %v5891_v11 }
 0x62c   : > { %v3791_v37 = vmul.f32 %v6145_v20, %v3752_v16  ;;  %v8031_v28 = vpop.f32.mrf.mxu1 }
 0x62e   : > { %v3804_v24 = vadd.f32 %v3791_v37, %v7202_v29  ;;  %v5718_v34 = vpop.f32.mrf.mxu1 }
 0x630   : > { %v6147_v56 = vpop.eup %6146  ;;  %v3812_v22 = vpack.c.bf16 %v3804_v24, %v3803_v51  ;;  %v8036_v44 = vpop.f32.mrf.mxu1 }
 0x631   : > { %v3792_v54 = vmul.f32 %v6147_v56, %v3753_v59 }
 0x632   : > { %v6149_v1 = vpop.eup %6148  ;;  %5677 = vmatmul.mubr.msk.bf16.gmra.mxu0 %vm1724_vm1, %v3812_v22  ;;  %v5719_v61 = vpop.f32.mrf.mxu1 }
 0x633   : > { %v3793_v39 = vmul.f32 %v6149_v1, %v3754_v50  ;;  %5680 = vmatprep.mubr.msk.bf16.mxu0 %vm6272_vm0, %v7799_v53  ;;  %v3805_v29 = vadd.f32 %v3792_v54, %v7213_v46 }
 0x634   : > { %v8042_v21 = vpop.f32.mrf.mxu1 }
 0x635   : > { %v3806_v14 = vadd.f32 %v3793_v39, %v8294_v15 }
 0x636   : > { %v5722_v0 = vpop.f32.mrf.mxu1 }
 0x637   : > { %v3813_v10 = vpack.c.bf16 %v3806_v14, %v3805_v29 }
 0x638   : > { %v6151_v35 = vpop.eup %6150  ;;  %v8047_v25 = vpop.f32.mrf.mxu1 }
 0x639   : > { %v3794_v57 = vmul.f32 %v6151_v35, %v3755_v58 }
 0x63a   : > { %5681 = vmatmul.mubr.msk.bf16.gmra.mxu0 %vm1724_vm1, %v3813_v10  ;;  %v5723_v13 = vpop.f32.mrf.mxu1 }
 0x63b   : > { %5684 = vmatprep.mubr.msk.bf16.mxu0 %vm6272_vm0, %v7799_v53  ;;  %v3807_v55 = vadd.f32 %v3794_v57, %v8295_v49 }
 0x63c   : > { %v8053_v17 = vpop.f32.mrf.mxu1 }
 0x63d   : > { %v3814_v40 = vpack.c.bf16 %v3807_v55, %v3807_v55 }
 0x63e   : > { %v5726_v46 = vpop.f32.mrf.mxu1 }
 0x640   : > { %v8055_v2 = vpop.f32.mrf.mxu1 }
 0x642   : > { %5685 = vmatmul.mubr.msk.bf16.gmra.mxu0 %vm1724_vm1, %v3814_v40  ;;  %v5727_v33 = vpop.f32.mrf.mxu1 }
 0x643   : > { %5740 = vmatprep.mubr.msk.bf16.mxu0 %vm6272_vm0, %v7799_v53 }
 0x644   : > { %v8060_v27 = vpop.f32.mrf.mxu1 }
 0x646   : > { %v5730_v30 = vpop.f32.mrf.mxu1 }
 0x648   : > { %v4241_v26 = vpop.f32.mrf.mxu1 }
 0x64a   : > { %v5731_v42 = vpop.f32.mrf.mxu1 }
 0x6d1   : > { %v3906_v23 = vpop.f32.mrf.mxu0 }
 0x6d2   : > { %v8078_v60 = vadd.f32 %v3906_v23, %v8075_v8 }
 0x6d3   : > { %v5662_v6 = vpop.f32.mrf.mxu0 }
 0x6d4   : > { %v3960_v63 = vmin.f32 %v8078_v60, 20.0 }
 0x6d5   : > { %v3909_v4 = vpop.f32.mrf.mxu0 }
 0x6d6   : > { %v3973_v7 = vmul.f32 1.442695, %v3960_v63  ;;  %v8082_v53 = vadd.f32 %v3909_v4, %v8075_v8 }
 0x6d7   : > { %v5663_v36 = vpop.f32.mrf.mxu0 }
 0x6d8   : > { %6152 = vpow2.f32 %v3973_v7  ;;  %v3961_v48 = vmin.f32 %v8082_v53, 20.0 }
 0x6d9   : > { %v3914_v45 = vpop.f32.mrf.mxu0 }
 0x6da   : > { %v3975_v38 = vmul.f32 1.442695, %v3961_v48  ;;  %v8086_v62 = vadd.f32 %v3914_v45, %v8075_v8 }
 0x6db   : > { %v5666_v16 = vpop.f32.mrf.mxu0 }
 0x6dc   : > { %6154 = vpow2.f32 %v3975_v38  ;;  %v3962_v19 = vmin.f32 %v8086_v62, 20.0 }
 0x6dd   : > { %v3917_v20 = vpop.f32.mrf.mxu0 }
 0x6de   : > { %v3977_v37 = vmul.f32 1.442695, %v3962_v19  ;;  %v8090_v51 = vadd.f32 %v3917_v20, %v8075_v8 }
 0x6df   : > { %v5667_v24 = vpop.f32.mrf.mxu0 }
 0x6e0   : > { %6156 = vpow2.f32 %v3977_v37  ;;  %v3963_v34 = vmin.f32 %v8090_v51, 20.0 }
 0x6e2   : > { %v3979_v59 = vmul.f32 1.442695, %v3963_v34  ;;  %v3922_v56 = vpop.f32.mrf.mxu0 }
 0x6e3   : > { %v8094_v22 = vadd.f32 %v3922_v56, %v8075_v8 }
 0x6e4   : > { %6158 = vpow2.f32 %v3979_v59  ;;  %v5670_v54 = vpop.f32.mrf.mxu0 }
 0x6e5   : > { %v6153_v50 = vpop.eup %6152  ;;  %v3964_v1 = vmin.f32 %v8094_v22, 20.0 }
 0x6e6   : > { %v3999_v61 = vadd.f32 2.0, %v6153_v50  ;;  %v3925_v39 = vpop.f32.mrf.mxu0 }
 0x6e7   : > { %v3981_v29 = vmul.f32 1.442695, %v3964_v1  ;;  %v8098_v15 = vadd.f32 %v3925_v39, %v8075_v8 }
 0x6e8   : > { %v4012_v14 = vmul.f32 %v6153_v50, %v3999_v61  ;;  %v5671_v0 = vpop.f32.mrf.mxu0 }
 0x6e9   : > { %v6155_v10 = vpop.eup %6154  ;;  %6160 = vpow2.f32 %v3981_v29  ;;  %v3965_v58 = vmin.f32 %v8098_v15, 20.0 }
 0x6ea   : > { %v4038_v35 = vadd.f32 2.0, %v4012_v14  ;;  %v4000_v57 = vadd.f32 2.0, %v6155_v10  ;;  %v3930_v13 = vpop.f32.mrf.mxu0 }
 0x6eb   : > { %v3983_v49 = vmul.f32 1.442695, %v3965_v58  ;;  %v8102_v55 = vadd.f32 %v3930_v13, %v8075_v8 }
 0x6ec   : > { %v4013_v46 = vmul.f32 %v6155_v10, %v4000_v57  ;;  %v5674_v40 = vpop.f32.mrf.mxu0 }
 0x6ed   : > { %v6157_v33 = vpop.eup %6156  ;;  %6162 = vpow2.f32 %v3983_v49  ;;  %v3966_v30 = vmin.f32 %v8102_v55, 20.0 }
 0x6ee   : > { %6164 = vrcp.f32 %v4038_v35  ;;  %v4039_v26 = vadd.f32 2.0, %v4013_v46  ;;  %v4001_v42 = vadd.f32 2.0, %v6157_v33  ;;  %v3933_v18 = vpop.f32.mrf.mxu0  ;;  %v4025_v35 = vmul.f32 %v4012_v14, %v8078_v60 }
 0x6ef   : > { %v3985_v31 = vmul.f32 1.442695, %v3966_v30  ;;  %v8106_v11 = vadd.f32 %v3933_v18, %v8075_v8  ;;  %v4026_v57 = vmul.f32 %v4013_v46, %v8082_v53 }
 0x6f0   : > { %6166 = vrcp.f32 %v4039_v26  ;;  %v8108_v43 = vmul.f32 %v6157_v33, %v4001_v42  ;;  %v5675_v23 = vpop.f32.mrf.mxu0 }
 0x6f1   : > { %v6159_v6 = vpop.eup %6158  ;;  %6168 = vpow2.f32 %v3985_v31  ;;  %v3967_v63 = vmin.f32 %v8106_v11, 20.0 }
 0x6f2   : > { %v4040_v4 = vadd.f32 2.0, %v8108_v43  ;;  %v4002_v7 = vadd.f32 2.0, %v6159_v6  ;;  %v3938_v36 = vpop.f32.mrf.mxu0 }
 0x6f3   : > { %v3987_v48 = vmul.f32 1.442695, %v3967_v63  ;;  %v8113_v45 = vadd.f32 %v3938_v36, %v8075_v8 }
 0x6f4   : > { %v4015_v38 = vmul.f32 %v6159_v6, %v4002_v7  ;;  %v5678_v16 = vpop.f32.mrf.mxu0 }
 0x6f5   : > { %6170 = vpow2.f32 %v3987_v48  ;;  %v3968_v19 = vmin.f32 %v8113_v45, 20.0 }
 0x6f6   : > { %v6161_v20 = vpop.eup %6160  ;;  %6172 = vrcp.f32 %v4040_v4  ;;  %v4041_v37 = vadd.f32 2.0, %v4015_v38  ;;  %v3941_v24 = vpop.f32.mrf.mxu0 }
 0x6f7   : > { %v4003_v34 = vadd.f32 2.0, %v6161_v20  ;;  %v3989_v59 = vmul.f32 1.442695, %v3968_v19  ;;  %v8117_v56 = vadd.f32 %v3941_v24, %v8075_v8  ;;  %v4027_v24 = vmul.f32 %v8108_v43, %v8086_v62 }
 0x6f8   : > { %6174 = vrcp.f32 %v4041_v37  ;;  %v5679_v54 = vpop.f32.mrf.mxu0  ;;  %v8134_v37 = vld [vmem:[#allocation2 + $0x73] sm:$0xff] }
 0x6f9   : > { %v8119_v50 = vmul.f32 %v6161_v20, %v4003_v34  ;;  %6176 = vpow2.f32 %v3989_v59  ;;  %v3969_v1 = vmin.f32 %v8117_v56, 20.0  ;;  %v4028_v34 = vmul.f32 %v4015_v38, %v8090_v51 }
 0x6fa   : > { %v6163_v61 = vpop.eup %6162  ;;  %v3946_v39 = vpop.f32.mrf.mxu0 }
 0x6fb   : > { %v6165_v29 = vpop.eup %6164  ;;  %v4042_v0 = vadd.f32 2.0, %v8119_v50  ;;  %v4004_v10 = vadd.f32 2.0, %v6163_v61  ;;  %v3991_v58 = vmul.f32 1.442695, %v3969_v1  ;;  %v8126_v13 = vadd.f32 %v3946_v39, %v8075_v8 }
 0x6fc   : > { %v5682_v49 = vpop.f32.mrf.mxu0  ;;  %v4064_v26 = vmul.f32 %v6165_v29, %v4025_v35 }
 0x6fd   : > { %v6167_v40 = vpop.eup %6166  ;;  %v4017_v33 = vmul.f32 %v6163_v61, %v4004_v10  ;;  %6178 = vpow2.f32 %v3991_v58  ;;  %v3970_v18 = vmin.f32 %v8126_v13, 20.0 }
 0x6fe   : > { %v6169_v30 = vpop.eup %6168  ;;  %v4065_v42 = vmul.f32 %v6167_v40, %v4026_v57  ;;  %v3949_v31 = vpop.f32.mrf.mxu0  ;;  %6180 = vrcp.f32 %v4042_v0 }
 0x6ff   : > { %v4043_v23 = vadd.f32 2.0, %v4017_v33  ;;  %v4005_v6 = vadd.f32 2.0, %v6169_v30  ;;  %v8130_v60 = vadd.f32 %v3949_v31, %v8075_v8  ;;  %v3993_v14 = vmul.f32 1.442695, %v3970_v18 }
 0x700   : > { %v4077_v53 = vpack.c.bf16 %v4065_v42, %v4064_v26  ;;  %v5683_v46 = vpop.f32.mrf.mxu0  ;;  %v4029_v26 = vmul.f32 %v8119_v50, %v8094_v22  ;;  %v4030_v42 = vmul.f32 %v4017_v33, %v8098_v15 }
 0x701   : > { %6182 = vrcp.f32 %v4043_v23  ;;  %v4018_v63 = vmul.f32 %v6169_v30, %v4005_v6  ;;  %v3971_v4 = vmin.f32 %v8130_v60, 20.0 }
 0x702   : > { %v6171_v7 = vpop.eup %6170  ;;  %6184 = vpow2.f32 %v3993_v14  ;;  %v3954_v36 = vpop.f32.mrf.mxu0  ;;  %5741 = vmatmul.mubr.msk.bf16.vlgmr.msra.gmra.mxu0 %vm1724_vm1, %v4077_v53 }
 0x703   : > { %v6173_v48 = vpop.eup %6172  ;;  %v4044_v16 = vadd.f32 2.0, %v4018_v63  ;;  %v4006_v19 = vadd.f32 2.0, %v6171_v7  ;;  %v3995_v20 = vmul.f32 1.442695, %v3971_v4  ;;  %5744 = vmatprep.mubr.msk.bf16.mxu0 %vm6272_vm0, %v8134_v37  ;;  %v8142_v59 = vadd.f32 %v3954_v36, %v8075_v8 }
 0x704   : > { %v5686_v54 = vpop.f32.mrf.mxu0  ;;  %v4066_v29 = vmul.f32 %v6173_v48, %v4027_v24  ;;  %v4031_v22 = vmul.f32 %v4018_v63, %v8102_v55 }
 0x705   : > { %v6175_v1 = vpop.eup %6174  ;;  %v4019_v61 = vmul.f32 %v6171_v7, %v4006_v19  ;;  %6186 = vpow2.f32 %v3995_v20  ;;  %v3972_v10 = vmin.f32 %v8142_v59, 20.0 }
 0x706   : > { %v6177_v39 = vpop.eup %6176  ;;  %v4067_v0 = vmul.f32 %v6175_v1, %v4028_v34  ;;  %v3957_v58 = vpop.f32.mrf.mxu0  ;;  %6188 = vrcp.f32 %v4044_v16 }
 0x707   : > { %v4045_v35 = vadd.f32 2.0, %v4019_v61  ;;  %v4007_v57 = vadd.f32 2.0, %v6177_v39  ;;  %v3997_v62 = vmul.f32 1.442695, %v3972_v10  ;;  %v4032_v15 = vmul.f32 %v4019_v61, %v8106_v11 }
 0x708   : > { %v4078_v49 = vpack.c.bf16 %v4067_v0, %v4066_v29  ;;  %v5687_v43 = vpop.f32.mrf.mxu0 }
 0x709   : > { %6190 = vrcp.f32 %v4045_v35  ;;  %v4020_v51 = vmul.f32 %v6177_v39, %v4007_v57 }
 0x70a   : > { %6192 = vpow2.f32 %v3997_v62  ;;  %5745 = vmatmul.mubr.msk.bf16.gmra.mxu0 %vm1724_vm1, %v4078_v49  ;;  %v6179_v8 = vpop.eup %6178 }
 0x70b   : > { %5748 = vmatprep.mubr.msk.bf16.mxu0 %vm6272_vm0, %v8134_v37  ;;  %v6181_v38 = vpop.eup %6180  ;;  %v4046_v40 = vadd.f32 2.0, %v4020_v51  ;;  %v4008_v30 = vadd.f32 2.0, %v6179_v8  ;;  %v4033_v11 = vmul.f32 %v4020_v51, %v8113_v45 }
 0x70c   : > { %v4068_v6 = vmul.f32 %v6181_v38, %v4029_v26 }
 0x70d   : > { %v4021_v31 = vmul.f32 %v6179_v8, %v4008_v30  ;;  %6194 = vrcp.f32 %v4046_v40 }
 0x70e   : > { %v6183_v18 = vpop.eup %6182 }
 0x70f   : > { %v6185_v23 = vpop.eup %6184  ;;  %v4069_v53 = vmul.f32 %v6183_v18, %v4030_v42  ;;  %v4047_v14 = vadd.f32 2.0, %v4021_v31  ;;  %v4034_v63 = vmul.f32 %v4021_v31, %v8117_v56 }
 0x710   : > { %v4009_v46 = vadd.f32 2.0, %v6185_v23 }
 0x711   : > { %v4079_v4 = vpack.c.bf16 %v4069_v53, %v4068_v6  ;;  %6196 = vrcp.f32 %v4047_v14 }
 0x712   : > { %v4022_v7 = vmul.f32 %v6185_v23, %v4009_v46  ;;  %v6187_v36 = vpop.eup %6186 }
 0x713   : > { %5749 = vmatmul.mubr.msk.bf16.gmra.mxu0 %vm1724_vm1, %v4079_v4  ;;  %v6189_v48 = vpop.eup %6188  ;;  %v4010_v19 = vadd.f32 2.0, %v6187_v36 }
 0x714   : > { %v4048_v16 = vadd.f32 2.0, %v4022_v7  ;;  %5752 = vmatprep.mubr.msk.bf16.mxu0 %vm6272_vm0, %v8134_v37  ;;  %v4070_v24 = vmul.f32 %v6189_v48, %v4031_v22  ;;  %v4035_v49 = vmul.f32 %v4022_v7, %v8126_v13  ;;  %v4379_v13 = vsub.s32 6, %v6523_v47 }
 0x715   : > { %v4023_v33 = vmul.f32 %v6187_v36, %v4010_v19 }
 0x716   : > { %v6191_v50 = vpop.eup %6190  ;;  %6198 = vrcp.f32 %v4048_v16 }
 0x717   : > { %v6193_v20 = vpop.eup %6192  ;;  %v4071_v34 = vmul.f32 %v6191_v50, %v4032_v15  ;;  %v4049_v54 = vadd.f32 2.0, %v4023_v33  ;;  %v4036_v62 = vmul.f32 %v4023_v33, %v8130_v60  ;;  %v8173_v60 = vrot.slane %v8296_v41, %v4379_v13 }
 0x718   : > { %v4011_v1 = vadd.f32 2.0, %v6193_v20 }
 0x719   : > { %v4080_v39 = vpack.c.bf16 %v4071_v34, %v4070_v24  ;;  %6200 = vrcp.f32 %v4049_v54 }
 0x71a   : > { %v4024_v29 = vmul.f32 %v6193_v20, %v4011_v1  ;;  %v6195_v55 = vpop.eup %6194 }
 0x71b   : > { %5753 = vmatmul.mubr.msk.bf16.gmra.mxu0 %vm1724_vm1, %v4080_v39  ;;  %v4072_v10 = vmul.f32 %v6195_v55, %v4033_v11 }
 0x71c   : > { %v4050_v0 = vadd.f32 2.0, %v4024_v29  ;;  %5756 = vmatprep.mubr.msk.bf16.mxu0 %vm6272_vm0, %v8134_v37  ;;  %v4037_v38 = vmul.f32 %v4024_v29, %v8142_v59 }
 0x71e   : > { %6202 = vrcp.f32 %v4050_v0  ;;  %v6197_v61 = vpop.eup %6196 }
 0x71f   : > { %v4073_v58 = vmul.f32 %v6197_v61, %v4034_v63 }
 0x721   : > { %v4081_v35 = vpack.c.bf16 %v4073_v58, %v4072_v10 }
 0x723   : > { %5757 = vmatmul.mubr.msk.bf16.gmra.mxu0 %vm1724_vm1, %v4081_v35  ;;  %v6199_v57 = vpop.eup %6198 }
 0x724   : > { %5760 = vmatprep.mubr.msk.bf16.mxu0 %vm6272_vm0, %v8134_v37  ;;  %v4074_v8 = vmul.f32 %v6199_v57, %v4035_v49 }
 0x726   : > { %v6201_v43 = vpop.eup %6200 }
 0x727   : > { %v4075_v45 = vmul.f32 %v6201_v43, %v4036_v62 }
 0x729   : > { %v4082_v51 = vpack.c.bf16 %v4075_v45, %v4074_v8 }
 0x72b   : > { %v6203_v56 = vpop.eup %6202  ;;  %5761 = vmatmul.mubr.msk.bf16.gmra.mxu0 %vm1724_vm1, %v4082_v51 }
 0x72c   : > { %5764 = vmatprep.mubr.msk.bf16.mxu0 %vm6272_vm0, %v8134_v37  ;;  %v4076_v40 = vmul.f32 %v6203_v56, %v4037_v38 }
 0x72e   : > { %v4083_v30 = vpack.c.bf16 %v4076_v40, %v4076_v40 }
 0x733   : > { %5765 = vmatmul.mubr.msk.bf16.gmra.mxu0 %vm1724_vm1, %v4083_v30 }
 0x7c2   : > { %v4323_v26 = vpop.f32.mrf.mxu0 }
 0x7c3   : > { %v4324_v42 = vadd.f32 %v4323_v26, %v7995_v32 }
 0x7c4   : > { %v5742_v18 = vpop.f32.mrf.mxu0 }
 0x7c5   : > { %v8177_v59 = vadd.f32 %v8173_v60, %v4324_v42 }
 0x7c6   : > { %v4326_v31 = vpop.f32.mrf.mxu0 }
 0x7c7   : > { %v4394_v23 = vmin.f32 %v8177_v59, 20.0  ;;  %v4327_v37 = vadd.f32 %v4326_v31, %v8001_v9 }
 0x7c8   : > { %v5743_v6 = vpop.f32.mrf.mxu0 }
 0x7c9   : > { %v4407_v53 = vmul.f32 1.442695, %v4394_v23  ;;  %v8182_v14 = vadd.f32 %v8173_v60, %v4327_v37 }
 0x7ca   : > { %v4331_v47 = vpop.f32.mrf.mxu0 }
 0x7cb   : > { %6204 = vpow2.f32 %v4407_v53  ;;  %v4395_v41 = vmin.f32 %v8182_v14, 20.0  ;;  %v4332_v32 = vadd.f32 %v4331_v47, %v8008_v52 }
 0x7cc   : > { %v5746_v46 = vpop.f32.mrf.mxu0 }
 0x7cd   : > { %v4409_v4 = vmul.f32 1.442695, %v4395_v41  ;;  %v8187_v7 = vadd.f32 %v8173_v60, %v4332_v32 }
 0x7ce   : > { %v4334_v36 = vpop.f32.mrf.mxu0 }
 0x7cf   : > { %6206 = vpow2.f32 %v4409_v4  ;;  %v4396_v9 = vmin.f32 %v8187_v7, 20.0  ;;  %v4335_v48 = vadd.f32 %v4334_v36, %v8014_v12 }
 0x7d0   : > { %v5747_v16 = vpop.f32.mrf.mxu0 }
 0x7d1   : > { %v4411_v19 = vmul.f32 1.442695, %v4396_v9  ;;  %v8192_v22 = vadd.f32 %v8173_v60, %v4335_v48 }
 0x7d3   : > { %6208 = vpow2.f32 %v4411_v19  ;;  %v4397_v15 = vmin.f32 %v8192_v22, 20.0  ;;  %v4339_v52 = vpop.f32.mrf.mxu0 }
 0x7d4   : > { %v4340_v50 = vadd.f32 %v4339_v52, %v8020_v5 }
 0x7d5   : > { %v4413_v33 = vmul.f32 1.442695, %v4397_v15  ;;  %v5750_v20 = vpop.f32.mrf.mxu0 }
 0x7d6   : > { %v8197_v24 = vadd.f32 %v8173_v60, %v4340_v50 }
 0x7d7   : > { %6210 = vpow2.f32 %v4413_v33  ;;  %v4342_v34 = vpop.f32.mrf.mxu0 }
 0x7d8   : > { %v6205_v54 = vpop.eup %6204  ;;  %v4398_v12 = vmin.f32 %v8197_v24, 20.0  ;;  %v4343_v1 = vadd.f32 %v4342_v34, %v8025_v3 }
 0x7d9   : > { %v4433_v39 = vadd.f32 2.0, %v6205_v54  ;;  %v5751_v29 = vpop.f32.mrf.mxu0 }
 0x7da   : > { %v4415_v0 = vmul.f32 1.442695, %v4398_v12  ;;  %v8202_v55 = vadd.f32 %v8173_v60, %v4343_v1 }
 0x7db   : > { %v4446_v11 = vmul.f32 %v6205_v54, %v4433_v39  ;;  %v4347_v5 = vpop.f32.mrf.mxu0 }
 0x7dc   : > { %v6207_v63 = vpop.eup %6206  ;;  %6212 = vpow2.f32 %v4415_v0  ;;  %v4399_v61 = vmin.f32 %v8202_v55, 20.0  ;;  %v4348_v10 = vadd.f32 %v4347_v5, %v8031_v28 }
 0x7dd   : > { %v4472_v58 = vadd.f32 2.0, %v4446_v11  ;;  %v4434_v35 = vadd.f32 2.0, %v6207_v63  ;;  %v5754_v57 = vpop.f32.mrf.mxu0 }
 0x7de   : > { %v4417_v49 = vmul.f32 1.442695, %v4399_v61  ;;  %v8207_v3 = vadd.f32 %v8173_v60, %v4348_v10 }
 0x7df   : > { %6214 = vrcp.f32 %v4472_v58  ;;  %v4447_v62 = vmul.f32 %v6207_v63, %v4434_v35  ;;  %v4350_v43 = vpop.f32.mrf.mxu0 }
 0x7e0   : > { %v6209_v8 = vpop.eup %6208  ;;  %6216 = vpow2.f32 %v4417_v49  ;;  %v4400_v45 = vmin.f32 %v8207_v3, 20.0  ;;  %v4351_v51 = vadd.f32 %v4350_v43, %v8036_v44 }
 0x7e1   : > { %v4473_v56 = vadd.f32 2.0, %v4447_v62  ;;  %v4435_v38 = vadd.f32 2.0, %v6209_v8  ;;  %v5755_v40 = vpop.f32.mrf.mxu0  ;;  %v4460_v1 = vmul.f32 %v4447_v62, %v8182_v14 }
 0x7e2   : > { %v4419_v28 = vmul.f32 1.442695, %v4400_v45  ;;  %v8212_v30 = vadd.f32 %v8173_v60, %v4351_v51 }
 0x7e3   : > { %6218 = vrcp.f32 %v4473_v56  ;;  %v4448_v13 = vmul.f32 %v6209_v8, %v4435_v38  ;;  %v4355_v18 = vpop.f32.mrf.mxu0 }
 0x7e4   : > { %v6211_v26 = vpop.eup %6210  ;;  %6220 = vpow2.f32 %v4419_v28  ;;  %v4401_v42 = vmin.f32 %v8212_v30, 20.0  ;;  %v4356_v37 = vadd.f32 %v4355_v18, %v8042_v21  ;;  %v4459_v21 = vmul.f32 %v4446_v11, %v8177_v59 }
 0x7e5   : > { %v4474_v31 = vadd.f32 2.0, %v4448_v13  ;;  %v4436_v23 = vadd.f32 2.0, %v6211_v26  ;;  %v5758_v6 = vpop.f32.mrf.mxu0  ;;  %v4461_v14 = vmul.f32 %v4448_v13, %v8187_v7 }
 0x7e6   : > { %v4421_v44 = vmul.f32 1.442695, %v4401_v42  ;;  %v8217_v47 = vadd.f32 %v8173_v60, %v4356_v37 }
 0x7e7   : > { %6222 = vrcp.f32 %v4474_v31  ;;  %v4449_v53 = vmul.f32 %v6211_v26, %v4436_v23  ;;  %v4358_v41 = vpop.f32.mrf.mxu0 }
 0x7e8   : > { %6224 = vpow2.f32 %v4421_v44  ;;  %v4402_v4 = vmin.f32 %v8217_v47, 20.0  ;;  %v4359_v36 = vadd.f32 %v4358_v41, %v8047_v25 }
 0x7e9   : > { %v6213_v32 = vpop.eup %6212  ;;  %v4475_v46 = vadd.f32 2.0, %v4449_v53  ;;  %v5759_v48 = vpop.f32.mrf.mxu0  ;;  %v4462_v7 = vmul.f32 %v4449_v53, %v8192_v22 }
 0x7ea   : > { %v4437_v9 = vadd.f32 2.0, %v6213_v32  ;;  %v4423_v16 = vmul.f32 1.442695, %v4402_v4  ;;  %v8224_v19 = vadd.f32 %v8173_v60, %v4359_v36 }
 0x7eb   : > { %6226 = vrcp.f32 %v4475_v46  ;;  %v4363_v50 = vpop.f32.mrf.mxu0 }
 0x7ec   : > { %v6215_v15 = vpop.eup %6214  ;;  %v4450_v52 = vmul.f32 %v6213_v32, %v4437_v9  ;;  %6228 = vpow2.f32 %v4423_v16  ;;  %v4403_v20 = vmin.f32 %v8224_v19, 20.0  ;;  %v4364_v59 = vadd.f32 %v4363_v50, %v8053_v17 }
 0x7ed   : > { %v6217_v33 = vpop.eup %6216  ;;  %v4498_v25 = vmul.f32 %v6215_v15, %v4459_v21  ;;  %v5762_v12 = vpop.f32.mrf.mxu0 }
 0x7ee   : > { %v4476_v34 = vadd.f32 2.0, %v4450_v52  ;;  %v4438_v54 = vadd.f32 2.0, %v6217_v33  ;;  %v4425_v39 = vmul.f32 1.442695, %v4403_v20  ;;  %v8236_v29 = vadd.f32 %v8173_v60, %v4364_v59 }
 0x7ef   : > { %4511 = vst [vmem:[%s8229_s26] sm:$0xff] %v4498_v25  ;;  %v4366_v5 = vpop.f32.mrf.mxu0  ;;  %v4463_v22 = vmul.f32 %v4450_v52, %v8197_v24 }
 0x7f0   : > { %v6219_v0 = vpop.eup %6218  ;;  %6230 = vrcp.f32 %v4476_v34  ;;  %v4451_v11 = vmul.f32 %v6217_v33, %v4438_v54  ;;  %v4404_v17 = vmin.f32 %v8236_v29, 20.0  ;;  %v4367_v10 = vadd.f32 %v4366_v5, %v8055_v2 }
 0x7f1   : > { %v6221_v63 = vpop.eup %6220  ;;  %v4499_v61 = vmul.f32 %v6219_v0, %v4460_v1  ;;  %6232 = vpow2.f32 %v4425_v39  ;;  %v5763_v57 = vpop.f32.mrf.mxu0 }
 0x7f2   : > { %v4477_v58 = vadd.f32 2.0, %v4451_v11  ;;  %v4439_v35 = vadd.f32 2.0, %v6221_v63  ;;  %v4427_v49 = vmul.f32 1.442695, %v4404_v17  ;;  %v8243_v62 = vadd.f32 %v8173_v60, %v4367_v10 }
 0x7f3   : > { %4512 = vst [vmem:[%s8229_s26 + $0x8] sm:$0xff] %v4499_v61  ;;  %v4371_v45 = vpop.f32.mrf.mxu0  ;;  %v4464_v21 = vmul.f32 %v4451_v11, %v8202_v55 }
 0x7f4   : > { %v6223_v43 = vpop.eup %6222  ;;  %6234 = vrcp.f32 %v4477_v58  ;;  %v4452_v8 = vmul.f32 %v6221_v63, %v4439_v35  ;;  %v4405_v2 = vmin.f32 %v8243_v62, 20.0  ;;  %v4372_v38 = vadd.f32 %v4371_v45, %v8060_v27 }
 0x7f5   : > { %v6225_v51 = vpop.eup %6224  ;;  %v4500_v56 = vmul.f32 %v6223_v43, %v4461_v14  ;;  %6236 = vpow2.f32 %v4427_v49  ;;  %v5766_v26 = vpop.f32.mrf.mxu0 }
 0x7f6   : > { %v4478_v40 = vadd.f32 2.0, %v4452_v8  ;;  %v4440_v28 = vadd.f32 2.0, %v6225_v51  ;;  %v4429_v13 = vmul.f32 1.442695, %v4405_v2  ;;  %v8250_v42 = vadd.f32 %v8173_v60, %v4372_v38 }
 0x7f7   : > { %4513 = vst [vmem:[%s8229_s26 + $0x10] sm:$0xff] %v4500_v56  ;;  %v4374_v23 = vpop.f32.mrf.mxu0  ;;  %v4465_v52 = vmul.f32 %v4452_v8, %v8207_v3 }
 0x7f8   : > { %v6227_v18 = vpop.eup %6226  ;;  %6238 = vrcp.f32 %v4478_v40  ;;  %v4453_v31 = vmul.f32 %v6225_v51, %v4440_v28  ;;  %v4406_v44 = vmin.f32 %v8250_v42, 20.0 }
 0x7f9   : > { %v4501_v37 = vmul.f32 %v6227_v18, %v4462_v7  ;;  %6240 = vpow2.f32 %v4429_v13  ;;  %v6229_v27 = vpop.eup %6228  ;;  %v5767_v41 = vpop.f32.mrf.mxu0 }
 0x7fa   : > { %v4479_v6 = vadd.f32 2.0, %v4453_v31  ;;  %v4441_v32 = vadd.f32 2.0, %v6229_v27  ;;  %v4431_v46 = vmul.f32 1.442695, %v4406_v44  ;;  %v4466_v55 = vmul.f32 %v4453_v31, %v8212_v30 }
 0x7fb   : > { %4514 = vst [vmem:[%s8229_s26 + $0x18] sm:$0xff] %v4501_v37 }
 0x7fc   : > { %6242 = vrcp.f32 %v4479_v6  ;;  %v4454_v53 = vmul.f32 %v6229_v27, %v4441_v32 }
 0x7fd   : > { %v6231_v60 = vpop.eup %6230  ;;  %6244 = vpow2.f32 %v4431_v46 }
 0x7fe   : > { %v6233_v4 = vpop.eup %6232  ;;  %v4502_v36 = vmul.f32 %v6231_v60, %v4463_v22  ;;  %v4480_v9 = vadd.f32 2.0, %v4454_v53  ;;  %v4467_v61 = vmul.f32 %v4454_v53, %v8217_v47 }
 0x7ff   : > { %v4442_v48 = vadd.f32 2.0, %v6233_v4 }
 0x800   : > { %4515 = vst [vmem:[%s8229_s26 + $0x20] sm:$0xff] %v4502_v36  ;;  %6246 = vrcp.f32 %v4480_v9 }
 0x801   : > { %v6235_v16 = vpop.eup %6234  ;;  %v4455_v15 = vmul.f32 %v6233_v4, %v4442_v48 }
 0x802   : > { %v6237_v50 = vpop.eup %6236  ;;  %v4503_v33 = vmul.f32 %v6235_v16, %v4464_v21 }
 0x803   : > { %v4481_v25 = vadd.f32 2.0, %v4455_v15  ;;  %v4443_v24 = vadd.f32 2.0, %v6237_v50  ;;  %v4468_v30 = vmul.f32 %v4455_v15, %v8224_v19 }
 0x804   : > { %4516 = vst [vmem:[%s8229_s26 + $0x28] sm:$0xff] %v4503_v33 }
 0x805   : > { %v6239_v20 = vpop.eup %6238  ;;  %6248 = vrcp.f32 %v4481_v25  ;;  %v4456_v59 = vmul.f32 %v6237_v50, %v4443_v24 }
 0x806   : > { %v6241_v34 = vpop.eup %6240  ;;  %v4504_v54 = vmul.f32 %v6239_v20, %v4465_v52 }
 0x807   : > { %v4482_v12 = vadd.f32 2.0, %v4456_v59  ;;  %v4444_v1 = vadd.f32 2.0, %v6241_v34  ;;  %v4469_v49 = vmul.f32 %v4456_v59, %v8236_v29 }
 0x808   : > { %4517 = vst [vmem:[%s8229_s26 + $0x30] sm:$0xff] %v4504_v54 }
 0x809   : > { %v6243_v39 = vpop.eup %6242  ;;  %6250 = vrcp.f32 %v4482_v12  ;;  %v4457_v0 = vmul.f32 %v6241_v34, %v4444_v1 }
 0x80a   : > { %v6245_v11 = vpop.eup %6244  ;;  %v4505_v5 = vmul.f32 %v6243_v39, %v4466_v55 }
 0x80b   : > { %v4483_v63 = vadd.f32 2.0, %v4457_v0  ;;  %v4445_v3 = vadd.f32 2.0, %v6245_v11  ;;  %v4470_v47 = vmul.f32 %v4457_v0, %v8243_v62 }
 0x80c   : > { %4518 = vst [vmem:[%s8229_s26 + $0x38] sm:$0xff] %v4505_v5 }
 0x80d   : > { %6252 = vrcp.f32 %v4483_v63  ;;  %v4458_v17 = vmul.f32 %v6245_v11, %v4445_v3  ;;  %v6247_v10 = vpop.eup %6246 }
 0x80e   : > { %v4506_v58 = vmul.f32 %v6247_v10, %v4467_v61 }
 0x80f   : > { %v4484_v35 = vadd.f32 2.0, %v4458_v17  ;;  %v4471_v56 = vmul.f32 %v4458_v17, %v8250_v42 }
 0x810   : > { %4519 = vst [vmem:[%s8229_s26 + $0x40] sm:$0xff] %v4506_v58 }
 0x811   : > { %6254 = vrcp.f32 %v4484_v35 }
 0x812   : > { %v6249_v57 = vpop.eup %6248 }
 0x813   : > { %v4507_v14 = vmul.f32 %v6249_v57, %v4468_v30 }
 0x815   : > { %4520 = vst [vmem:[%s8229_s26 + $0x48] sm:$0xff] %v4507_v14 }
 0x816   : > { %v6251_v43 = vpop.eup %6250 }
 0x817   : > { %v4508_v8 = vmul.f32 %v6251_v43, %v4469_v49 }
 0x819   : > { %4521 = vst [vmem:[%s8229_s26 + $0x50] sm:$0xff] %v4508_v8 }
 0x81a   : > { %v6253_v45 = vpop.eup %6252 }
 0x81b   : > { %v4509_v51 = vmul.f32 %v6253_v45, %v4470_v47 }
 0x81d   : > { %4522 = vst [vmem:[%s8229_s26 + $0x58] sm:$0xff] %v4509_v51 }
 0x81e   : > { %v6255_v2 = vpop.eup %6254 }
 0x81f   : > { %v4510_v38 = vmul.f32 %v6255_v2, %v4471_v56 }
 0x821   : > { %4523 = vst [vmem:[%s8229_s26 + $0x60] sm:$0xff] %v4510_v38 }
 0x822 PF: > { %s21_s17 = sadd.s32 1, %s6269_s17  }
 0x823   : > { %p18_p4 = scmp.ge.s32.totalorder %s21_s17, 4  }
 0x825   :  { %20 = sbr.rel (!%p18_p4) target bundleno = 1 (0x1), region = 105 }

</bundles_post_ra>
